<compile_context>
chip_gen: v7x
topology: tpu7x:2x2x1
jax: 0.10.0
libtpu: 0.0.40
codegen_flags: <defaults>
</compile_context>

<pallas_src>
import jax
import jax.numpy as jnp
from jax import lax
from jax.experimental import pallas as pl
from jax.experimental.pallas import tpu as pltpu

# ---- small stand-in config for bert-base (768 -> 128, 12 layers -> 2) ----
VOCAB = 64
H = 128            # hidden size (stand-in for 768)
N_HEADS = 4
D_HEAD = H // N_HEADS
N_LAYERS = 2
FFN = 4 * H
MAX_POS = 32
N_CLASSES = 3      # nn.Linear(768, 3) for both dense and dense2
PAD = 128          # lane-dense padding for the classifier head outputs


# ------------------------- in-kernel helper math ---------------------------

def _ln(x, g, b):
    mu = jnp.mean(x, axis=-1, keepdims=True)
    var = jnp.mean(jnp.square(x - mu), axis=-1, keepdims=True)
    return (x - mu) * lax.rsqrt(var + 1e-12) * g + b


def _gelu(x):
    # tanh-approximation GELU (f32)
    c = jnp.float32(0.7978845608028654)  # sqrt(2/pi)
    return 0.5 * x * (1.0 + jnp.tanh(c * (x + 0.044715 * x * x * x)))


# ------------------------------ fused kernel -------------------------------

def _encoder_kernel(x_ref, amask_ref, idx_ref,
                    embg_ref, embb_ref,
                    wqkv_ref, bqkv_ref, wo_ref, bo_ref,
                    ln1g_ref, ln1b_ref,
                    w1_ref, b1_ref, w2_ref, b2_ref,
                    ln2g_ref, ln2b_ref,
                    whead_ref, bhead_ref,
                    out_ref):
    BC, S, Hd = x_ref.shape
    scale = jnp.float32(1.0 / (D_HEAD ** 0.5))

    # embeddings (already summed outside) -> embedding layernorm
    x = x_ref[...].astype(jnp.float32).reshape(BC * S, Hd)
    x = _ln(x, embg_ref[...], embb_ref[...])

    amask = amask_ref[...].astype(jnp.float32)               # [BC, 1, S] additive

    for l in range(N_LAYERS):
        # ---- fused QKV projection: one [BC*S, H] x [H, 3H] matmul ----
        qkv = jnp.dot(x.astype(jnp.bfloat16), wqkv_ref[l],
                      preferred_element_type=jnp.float32) + bqkv_ref[l]
        q3 = qkv[:, 0 * Hd:1 * Hd].reshape(BC, S, Hd)
        k3 = qkv[:, 1 * Hd:2 * Hd].reshape(BC, S, Hd)
        v3 = qkv[:, 2 * Hd:3 * Hd].reshape(BC, S, Hd)

        # ---- all heads inside one kernel invocation; the per-head output
        #      projection is accumulated so the attention result stays a
        #      lane-dense [BC*S, 128] slab (no narrow stores, no HBM churn).
        wo_l = wo_ref[l]                                     # [H, H] bf16
        attn = jnp.zeros((BC * S, Hd), jnp.float32)
        for hh in range(N_HEADS):
            lo = hh * D_HEAD
            qh = q3[:, :, lo:lo + D_HEAD].astype(jnp.bfloat16)
            kh = k3[:, :, lo:lo + D_HEAD].astype(jnp.bfloat16)
            vh = v3[:, :, lo:lo + D_HEAD].astype(jnp.bfloat16)
            s = jnp.einsum('bqd,bkd->bqk', qh, kh,
                           preferred_element_type=jnp.float32) * scale
            s = s + amask                                    # padding mask
            s = s - jnp.max(s, axis=-1, keepdims=True)
            p = jnp.exp(s)
            p = p * pl.reciprocal(jnp.sum(p, axis=-1, keepdims=True), approx=True)
            ctx_h = jnp.einsum('bqk,bkd->bqd', p.astype(jnp.bfloat16), vh,
                               preferred_element_type=jnp.float32)
            ctx_h = ctx_h.reshape(BC * S, D_HEAD)
            attn = attn + jnp.dot(ctx_h.astype(jnp.bfloat16),
                                  wo_l[lo:lo + D_HEAD, :],
                                  preferred_element_type=jnp.float32)
        attn = attn + bo_ref[l]

        # ---- residual + LN, FFN, residual + LN (all fused in-epilogue) ----
        x = _ln(x + attn, ln1g_ref[l], ln1b_ref[l])
        h1 = _gelu(jnp.dot(x.astype(jnp.bfloat16), w1_ref[l],
                           preferred_element_type=jnp.float32) + b1_ref[l])
        h2 = jnp.dot(h1.astype(jnp.bfloat16), w2_ref[l],
                     preferred_element_type=jnp.float32) + b2_ref[l]
        x = _ln(x + h2, ln2g_ref[l], ln2b_ref[l])

    # ---- get_rep_cls_and_mask: [MASK]-token hidden state (one-hot select) ----
    hidden = x.reshape(BC, S, Hd)
    idx = idx_ref[...].astype(jnp.float32)                   # [BC, 1, S] one-hot
    mask_h = jnp.sum(hidden * idx[:, 0, :, None], axis=1)    # [BC, H]
    # ([CLS] hidden state is produced by get_rep_cls_and_mask in the
    #  reference but never used in forward(), so it is not materialized.)

    # ---- both classifier heads (dense, dense2) in one lane-dense matmul ----
    logits = jnp.dot(mask_h.astype(jnp.bfloat16), whead_ref[...],
                     preferred_element_type=jnp.float32) + bhead_ref[...]
    out_ref[0] = logits.astype(out_ref.dtype)                # [BC, 2*PAD]


# ------------------------------ host wrapper --------------------------------

def _full_spec(shape):
    zeros = (0,) * len(shape)
    return pl.BlockSpec(shape, lambda c, _z=zeros: _z)


def encoder_and_heads(p, input_ids, attention_mask, index_mask):
    """input_ids/attention_mask/index_mask: [TB, S] -> padded logits [TB, 2*PAD]."""
    TB, S = input_ids.shape

    # embedding gathers stay in JAX glue (no clean Pallas gather at this size)
    x = (jnp.take(p["word_emb"], input_ids, axis=0)
         + p["pos_emb"][:S][None, :, :]
         + p["type_emb"][0][None, None, :]).astype(jnp.float32)     # [TB, S, H]
    amask = ((1.0 - attention_mask.astype(jnp.float32)) * -1e9).reshape(TB, 1, S)
    idx = index_mask.astype(jnp.float32).reshape(TB, 1, S)

    # 'parallel' batch-chunk axis (v7x megacore can take one chunk per core)
    nchunk = 2 if (TB % 2 == 0 and TB >= 2) else 1
    bc = TB // nchunk

    weights = (p["emb_ln_g"], p["emb_ln_b"],
               p["wqkv"], p["bqkv"], p["wo"], p["bo"],
               p["ln1_g"], p["ln1_b"],
               p["w1"], p["b1"], p["w2"], p["b2"],
               p["ln2_g"], p["ln2_b"],
               p["w_head"], p["b_head"])

    in_specs = ([pl.BlockSpec((bc, S, H), lambda c: (c, 0, 0)),
                 pl.BlockSpec((bc, 1, S), lambda c: (c, 0, 0)),
                 pl.BlockSpec((bc, 1, S), lambda c: (c, 0, 0))]
                + [_full_spec(w.shape) for w in weights])

    out = pl.pallas_call(
        _encoder_kernel,
        out_shape=jax.ShapeDtypeStruct((nchunk, bc, 2 * PAD), jnp.float32),
        grid=(nchunk,),
        in_specs=in_specs,
        out_specs=pl.BlockSpec((1, bc, 2 * PAD), lambda c: (c, 0, 0)),
        compiler_params=pltpu.CompilerParams(
            dimension_semantics=("parallel",)),
    )(x, amask, idx, *weights)
    return out.reshape(TB, 2 * PAD)


def bertcom2_forward(params, input_ids, attention_mask,
                     input_ids1, attention_mask1, index_mask, index_mask1):
    """Matches Bertcom2Model.forward -> (dense(m), dense(m1), dense2(m), dense2(m1))."""
    B = input_ids.shape[0]
    # shared encoder & shared heads -> run both branches as one batch
    ids = jnp.concatenate([input_ids, input_ids1], axis=0)
    am = jnp.concatenate([attention_mask, attention_mask1], axis=0)
    im = jnp.concatenate([index_mask, index_mask1], axis=0)

    logits = encoder_and_heads(params, ids, am, im)       # [2B, 2*PAD]
    d = logits[:, :N_CLASSES]                             # self.dense
    d2 = logits[:, PAD:PAD + N_CLASSES]                   # self.dense2
    return d[:B], d[B:], d2[:B], d2[B:]


# ------------------------- deterministic param init ------------------------

def init_params(key):
    n_keys = 4 * N_LAYERS + 2 + 3
    keys = iter(jax.random.split(key, n_keys))

    def nrm(shape, scale=0.02):
        return scale * jax.random.normal(next(keys), shape, jnp.float32)

    wqkv, wo, w1, w2 = [], [], [], []
    for _ in range(N_LAYERS):
        wqkv.append(nrm((H, 3 * H)))     # fused [Wq | Wk | Wv]
        wo.append(nrm((H, H)))
        w1.append(nrm((H, FFN)))
        w2.append(nrm((FFN, H)))

    dense_w = nrm((H, N_CLASSES))        # self.dense  : Linear(768, 3)
    dense2_w = nrm((H, N_CLASSES))       # self.dense2 : Linear(768, 3)
    # both heads packed into one lane-dense [H, 2*PAD] weight (zero-padded)
    w_head = jnp.zeros((H, 2 * PAD), jnp.float32)
    w_head = w_head.at[:, :N_CLASSES].set(dense_w)
    w_head = w_head.at[:, PAD:PAD + N_CLASSES].set(dense2_w)

    return dict(
        word_emb=nrm((VOCAB, H)),
        pos_emb=nrm((MAX_POS, H)),
        type_emb=nrm((2, H)),
        emb_ln_g=jnp.ones((1, H), jnp.float32),
        emb_ln_b=jnp.zeros((1, H), jnp.float32),
        # per-layer weights stacked along a leading layer axis; matmul
        # weights in bf16 (MXU operands), biases / LN params in f32.
        wqkv=jnp.stack(wqkv).astype(jnp.bfloat16),
        bqkv=jnp.zeros((N_LAYERS, 1, 3 * H), jnp.float32),
        wo=jnp.stack(wo).astype(jnp.bfloat16),
        bo=jnp.zeros((N_LAYERS, 1, H), jnp.float32),
        ln1_g=jnp.ones((N_LAYERS, 1, H), jnp.float32),
        ln1_b=jnp.zeros((N_LAYERS, 1, H), jnp.float32),
        w1=jnp.stack(w1).astype(jnp.bfloat16),
        b1=jnp.zeros((N_LAYERS, 1, FFN), jnp.float32),
        w2=jnp.stack(w2).astype(jnp.bfloat16),
        b2=jnp.zeros((N_LAYERS, 1, H), jnp.float32),
        ln2_g=jnp.ones((N_LAYERS, 1, H), jnp.float32),
        ln2_b=jnp.zeros((N_LAYERS, 1, H), jnp.float32),
        w_head=w_head.astype(jnp.bfloat16),
        b_head=jnp.zeros((1, 2 * PAD), jnp.float32),
    )
    # TODO(synk): loading real pretrained bert-base-uncased weights (and the
    # exact erf-form GELU) is out of scope for this self-contained stand-in.


# ---------------------------------- main -----------------------------------

if __name__ == "__main__":
    B, S = 2, 8
    key = jax.random.PRNGKey(0)
    k_p, k_i0, k_i1 = jax.random.split(key, 3)

    params = init_params(k_p)

    input_ids = jax.random.randint(k_i0, (B, S), 0, VOCAB, dtype=jnp.int32)
    input_ids1 = jax.random.randint(k_i1, (B, S), 0, VOCAB, dtype=jnp.int32)
    attention_mask = jnp.ones((B, S), jnp.int32).at[1, S - 1].set(0)
    attention_mask1 = jnp.ones((B, S), jnp.int32)
    # one-hot [MASK]-token position per example
    index_mask = jax.nn.one_hot(jnp.array([3, 5]), S, dtype=jnp.float32)
    index_mask1 = jax.nn.one_hot(jnp.array([2, 4]), S, dtype=jnp.float32)

    fwd = jax.jit(bertcom2_forward)
    out = fwd(params, input_ids, attention_mask,
              input_ids1, attention_mask1, index_mask, index_mask1)
    out = jax.block_until_ready(out)

    lo, lo1, lo3, lo4 = out
    assert lo.shape == (B, N_CLASSES)
    assert lo1.shape == (B, N_CLASSES)
    assert lo3.shape == (B, N_CLASSES)
    assert lo4.shape == (B, N_CLASSES)
    assert all(bool(jnp.isfinite(t).all()) for t in out)
    print("KERNEL_OK")
</pallas_src>

<mosaic_0001>
module attributes {stable_mosaic.version = 11 : i64} {
  func.func @_encoder_kernel(%arg0: i32, %arg1: memref<2x8x128xf32, #tpu.memory_space<vmem>>, %arg2: memref<2x1x8xf32, #tpu.memory_space<vmem>>, %arg3: memref<2x1x8xf32, #tpu.memory_space<vmem>>, %arg4: memref<1x128xf32, #tpu.memory_space<vmem>>, %arg5: memref<1x128xf32, #tpu.memory_space<vmem>>, %arg6: memref<2x128x384xbf16, #tpu.memory_space<vmem>>, %arg7: memref<2x1x384xf32, #tpu.memory_space<vmem>>, %arg8: memref<2x128x128xbf16, #tpu.memory_space<vmem>>, %arg9: memref<2x1x128xf32, #tpu.memory_space<vmem>>, %arg10: memref<2x1x128xf32, #tpu.memory_space<vmem>>, %arg11: memref<2x1x128xf32, #tpu.memory_space<vmem>>, %arg12: memref<2x128x512xbf16, #tpu.memory_space<vmem>>, %arg13: memref<2x1x512xf32, #tpu.memory_space<vmem>>, %arg14: memref<2x512x128xbf16, #tpu.memory_space<vmem>>, %arg15: memref<2x1x128xf32, #tpu.memory_space<vmem>>, %arg16: memref<2x1x128xf32, #tpu.memory_space<vmem>>, %arg17: memref<2x1x128xf32, #tpu.memory_space<vmem>>, %arg18: memref<128x256xbf16, #tpu.memory_space<vmem>>, %arg19: memref<1x256xf32, #tpu.memory_space<vmem>>, %arg20: memref<1x2x256xf32, #tpu.memory_space<vmem>>) attributes {dimension_semantics = [#tpu.dimension_semantics<parallel>], iteration_bounds = array<i64: 2>, scalar_prefetch = 0 : i64, scratch_operands = 0 : i64, tpu.core_type = #tpu.core_type<tc>, window_params = [{transform_indices = @transform_0, window_bounds = array<i64: 2, 8, 128>}, {transform_indices = @transform_1, window_bounds = array<i64: 2, 1, 8>}, {transform_indices = @transform_2, window_bounds = array<i64: 2, 1, 8>}, {pipeline_mode = #tpu.pipeline_mode<synchronous>, transform_indices = @transform_3, window_bounds = array<i64: 1, 128>}, {pipeline_mode = #tpu.pipeline_mode<synchronous>, transform_indices = @transform_4, window_bounds = array<i64: 1, 128>}, {pipeline_mode = #tpu.pipeline_mode<synchronous>, transform_indices = @transform_5, window_bounds = array<i64: 2, 128, 384>}, {pipeline_mode = #tpu.pipeline_mode<synchronous>, transform_indices = @transform_6, window_bounds = array<i64: 2, 1, 384>}, {pipeline_mode = #tpu.pipeline_mode<synchronous>, transform_indices = @transform_7, window_bounds = array<i64: 2, 128, 128>}, {pipeline_mode = #tpu.pipeline_mode<synchronous>, transform_indices = @transform_8, window_bounds = array<i64: 2, 1, 128>}, {pipeline_mode = #tpu.pipeline_mode<synchronous>, transform_indices = @transform_9, window_bounds = array<i64: 2, 1, 128>}, {pipeline_mode = #tpu.pipeline_mode<synchronous>, transform_indices = @transform_10, window_bounds = array<i64: 2, 1, 128>}, {pipeline_mode = #tpu.pipeline_mode<synchronous>, transform_indices = @transform_11, window_bounds = array<i64: 2, 128, 512>}, {pipeline_mode = #tpu.pipeline_mode<synchronous>, transform_indices = @transform_12, window_bounds = array<i64: 2, 1, 512>}, {pipeline_mode = #tpu.pipeline_mode<synchronous>, transform_indices = @transform_13, window_bounds = array<i64: 2, 512, 128>}, {pipeline_mode = #tpu.pipeline_mode<synchronous>, transform_indices = @transform_14, window_bounds = array<i64: 2, 1, 128>}, {pipeline_mode = #tpu.pipeline_mode<synchronous>, transform_indices = @transform_15, window_bounds = array<i64: 2, 1, 128>}, {pipeline_mode = #tpu.pipeline_mode<synchronous>, transform_indices = @transform_16, window_bounds = array<i64: 2, 1, 128>}, {pipeline_mode = #tpu.pipeline_mode<synchronous>, transform_indices = @transform_17, window_bounds = array<i64: 128, 256>}, {pipeline_mode = #tpu.pipeline_mode<synchronous>, transform_indices = @transform_18, window_bounds = array<i64: 1, 256>}, {transform_indices = @transform_19, window_bounds = array<i64: 1, 2, 256>}]} {
    %c0 = arith.constant 0 : index
    %c0_0 = arith.constant 0 : index
    %c0_1 = arith.constant 0 : index
    %0 = vector.load %arg1[%c0, %c0_0, %c0_1] : memref<2x8x128xf32, #tpu.memory_space<vmem>>, vector<2x8x128xf32>
    %1 = vector.shape_cast %0 : vector<2x8x128xf32> to vector<16x128xf32>
    %c0_2 = arith.constant 0 : index
    %c0_3 = arith.constant 0 : index
    %2 = vector.load %arg4[%c0_2, %c0_3] : memref<1x128xf32, #tpu.memory_space<vmem>>, vector<1x128xf32>
    %c0_4 = arith.constant 0 : index
    %c0_5 = arith.constant 0 : index
    %3 = vector.load %arg5[%c0_4, %c0_5] : memref<1x128xf32, #tpu.memory_space<vmem>>, vector<1x128xf32>
    %cst = arith.constant dense<0.000000e+00> : vector<16xf32>
    %4 = vector.multi_reduction <add>, %1, %cst [1] : vector<16x128xf32> to vector<16xf32>
    %5 = vector.shape_cast %4 : vector<16xf32> to vector<16x1xf32>
    %cst_6 = arith.constant 1.280000e+02 : f32
    %6 = vector.broadcast %cst_6 : f32 to vector<16x1xf32>
    %7 = arith.divf %5, %6 : vector<16x1xf32>
    %8 = vector.broadcast %7 : vector<16x1xf32> to vector<16x128xf32>
    %9 = arith.subf %1, %8 : vector<16x128xf32>
    %10 = arith.mulf %9, %9 : vector<16x128xf32>
    %cst_7 = arith.constant dense<0.000000e+00> : vector<16xf32>
    %11 = vector.multi_reduction <add>, %10, %cst_7 [1] : vector<16x128xf32> to vector<16xf32>
    %12 = vector.shape_cast %11 : vector<16xf32> to vector<16x1xf32>
    %cst_8 = arith.constant 1.280000e+02 : f32
    %13 = vector.broadcast %cst_8 : f32 to vector<16x1xf32>
    %14 = arith.divf %12, %13 : vector<16x1xf32>
    %15 = vector.broadcast %7 : vector<16x1xf32> to vector<16x128xf32>
    %16 = arith.subf %1, %15 : vector<16x128xf32>
    %cst_9 = arith.constant 9.99999996E-13 : f32
    %17 = vector.broadcast %cst_9 : f32 to vector<16x1xf32>
    %18 = arith.addf %14, %17 : vector<16x1xf32>
    %19 = math.rsqrt %18 : vector<16x1xf32>
    %20 = vector.broadcast %19 : vector<16x1xf32> to vector<16x128xf32>
    %21 = arith.mulf %16, %20 : vector<16x128xf32>
    %22 = vector.broadcast %2 : vector<1x128xf32> to vector<16x128xf32>
    %23 = arith.mulf %21, %22 : vector<16x128xf32>
    %24 = vector.broadcast %3 : vector<1x128xf32> to vector<16x128xf32>
    %25 = arith.addf %23, %24 : vector<16x128xf32>
    %c0_10 = arith.constant 0 : index
    %c0_11 = arith.constant 0 : index
    %c0_12 = arith.constant 0 : index
    %26 = vector.load %arg2[%c0_10, %c0_11, %c0_12] : memref<2x1x8xf32, #tpu.memory_space<vmem>>, vector<2x1x8xf32>
    %27 = arith.truncf %25 : vector<16x128xf32> to vector<16x128xbf16>
    %c0_13 = arith.constant 0 : index
    %c0_14 = arith.constant 0 : index
    %c0_15 = arith.constant 0 : index
    %28 = vector.load %arg6[%c0_13, %c0_14, %c0_15] : memref<2x128x384xbf16, #tpu.memory_space<vmem>>, vector<1x128x384xbf16>
    %29 = vector.shape_cast %28 : vector<1x128x384xbf16> to vector<128x384xbf16>
    %cst_16 = arith.constant dense<0.000000e+00> : vector<16x384xf32>
    %30 = tpu.matmul %27, %29, %cst_16 {dimension_numbers = #tpu.dot_dimension_numbers<[1], [0], [0], [1], [0, 0, 1, 1], [], []>} : vector<16x128xbf16>, vector<128x384xbf16>, vector<16x384xf32> -> vector<16x384xf32>
    %c0_17 = arith.constant 0 : index
    %c0_18 = arith.constant 0 : index
    %c0_19 = arith.constant 0 : index
    %31 = vector.load %arg7[%c0_17, %c0_18, %c0_19] : memref<2x1x384xf32, #tpu.memory_space<vmem>>, vector<1x1x384xf32>
    %32 = vector.shape_cast %31 : vector<1x1x384xf32> to vector<1x384xf32>
    %33 = vector.broadcast %32 : vector<1x384xf32> to vector<16x384xf32>
    %34 = arith.addf %30, %33 : vector<16x384xf32>
    %35 = vector.extract_strided_slice %34 {offsets = [0, 0], sizes = [16, 128], strides = [1, 1]} : vector<16x384xf32> to vector<16x128xf32>
    %36 = vector.shape_cast %35 : vector<16x128xf32> to vector<2x8x128xf32>
    %37 = vector.extract_strided_slice %34 {offsets = [0, 128], sizes = [16, 128], strides = [1, 1]} : vector<16x384xf32> to vector<16x128xf32>
    %38 = vector.shape_cast %37 : vector<16x128xf32> to vector<2x8x128xf32>
    %39 = vector.extract_strided_slice %34 {offsets = [0, 256], sizes = [16, 128], strides = [1, 1]} : vector<16x384xf32> to vector<16x128xf32>
    %40 = vector.shape_cast %39 : vector<16x128xf32> to vector<2x8x128xf32>
    %c0_20 = arith.constant 0 : index
    %c0_21 = arith.constant 0 : index
    %c0_22 = arith.constant 0 : index
    %41 = vector.load %arg8[%c0_20, %c0_21, %c0_22] : memref<2x128x128xbf16, #tpu.memory_space<vmem>>, vector<1x128x128xbf16>
    %42 = vector.shape_cast %41 : vector<1x128x128xbf16> to vector<128x128xbf16>
    %cst_23 = arith.constant 0.000000e+00 : f32
    %43 = vector.broadcast %cst_23 : f32 to vector<16x128xf32>
    %44 = vector.extract_strided_slice %36 {offsets = [0, 0, 0], sizes = [2, 8, 32], strides = [1, 1, 1]} : vector<2x8x128xf32> to vector<2x8x32xf32>
    %45 = arith.truncf %44 : vector<2x8x32xf32> to vector<2x8x32xbf16>
    %46 = vector.extract_strided_slice %38 {offsets = [0, 0, 0], sizes = [2, 8, 32], strides = [1, 1, 1]} : vector<2x8x128xf32> to vector<2x8x32xf32>
    %47 = arith.truncf %46 : vector<2x8x32xf32> to vector<2x8x32xbf16>
    %48 = vector.extract_strided_slice %40 {offsets = [0, 0, 0], sizes = [2, 8, 32], strides = [1, 1, 1]} : vector<2x8x128xf32> to vector<2x8x32xf32>
    %49 = arith.truncf %48 : vector<2x8x32xf32> to vector<2x8x32xbf16>
    "tpu.trace_start"() <{level = 10 : i32, message = "bqd,bkd->bqk"}> : () -> ()
    %cst_24 = arith.constant dense<0.000000e+00> : vector<2x8x8xf32>
    %50 = tpu.matmul %45, %47, %cst_24 {dimension_numbers = #tpu.dot_dimension_numbers<[2], [2], [1], [1], [0, 0, 0, 1, 1, 1], [0], [0]>} : vector<2x8x32xbf16>, vector<2x8x32xbf16>, vector<2x8x8xf32> -> vector<2x8x8xf32>
    "tpu.trace_stop"() : () -> ()
    %cst_25 = arith.constant 0.176776692 : f32
    %51 = vector.broadcast %cst_25 : f32 to vector<2x8x8xf32>
    %52 = arith.mulf %50, %51 : vector<2x8x8xf32>
    %53 = vector.broadcast %26 : vector<2x1x8xf32> to vector<2x8x8xf32>
    %54 = arith.addf %52, %53 : vector<2x8x8xf32>
    %cst_26 = arith.constant dense<0xFF800000> : vector<2x8xf32>
    %55 = vector.multi_reduction <maximumf>, %54, %cst_26 [2] : vector<2x8x8xf32> to vector<2x8xf32>
    %56 = vector.shape_cast %55 : vector<2x8xf32> to vector<2x8x1xf32>
    %57 = vector.broadcast %56 : vector<2x8x1xf32> to vector<2x8x8xf32>
    %58 = arith.subf %54, %57 : vector<2x8x8xf32>
    %59 = math.exp %58 : vector<2x8x8xf32>
    %cst_27 = arith.constant dense<0.000000e+00> : vector<2x8xf32>
    %60 = vector.multi_reduction <add>, %59, %cst_27 [2] : vector<2x8x8xf32> to vector<2x8xf32>
    %61 = vector.shape_cast %60 : vector<2x8xf32> to vector<2x8x1xf32>
    %62 = tpu.reciprocal %61 {approx = true} : vector<2x8x1xf32> -> vector<2x8x1xf32>
    %63 = vector.broadcast %62 : vector<2x8x1xf32> to vector<2x8x8xf32>
    %64 = arith.mulf %59, %63 : vector<2x8x8xf32>
    %65 = arith.truncf %64 : vector<2x8x8xf32> to vector<2x8x8xbf16>
    "tpu.trace_start"() <{level = 10 : i32, message = "bqk,bkd->bqd"}> : () -> ()
    %cst_28 = arith.constant dense<0.000000e+00> : vector<2x8x32xf32>
    %66 = tpu.matmul %65, %49, %cst_28 {dimension_numbers = #tpu.dot_dimension_numbers<[2], [1], [1], [2], [0, 0, 0, 1, 1, 2], [0], [0]>} : vector<2x8x8xbf16>, vector<2x8x32xbf16>, vector<2x8x32xf32> -> vector<2x8x32xf32>
    "tpu.trace_stop"() : () -> ()
    %67 = vector.shape_cast %66 : vector<2x8x32xf32> to vector<16x32xf32>
    %68 = arith.truncf %67 : vector<16x32xf32> to vector<16x32xbf16>
    %69 = vector.extract_strided_slice %42 {offsets = [0, 0], sizes = [32, 128], strides = [1, 1]} : vector<128x128xbf16> to vector<32x128xbf16>
    %cst_29 = arith.constant dense<0.000000e+00> : vector<16x128xf32>
    %70 = tpu.matmul %68, %69, %cst_29 {dimension_numbers = #tpu.dot_dimension_numbers<[1], [0], [0], [1], [0, 0, 1, 1], [], []>} : vector<16x32xbf16>, vector<32x128xbf16>, vector<16x128xf32> -> vector<16x128xf32>
    %71 = arith.addf %43, %70 : vector<16x128xf32>
    %72 = vector.extract_strided_slice %36 {offsets = [0, 0, 32], sizes = [2, 8, 32], strides = [1, 1, 1]} : vector<2x8x128xf32> to vector<2x8x32xf32>
    %73 = arith.truncf %72 : vector<2x8x32xf32> to vector<2x8x32xbf16>
    %74 = vector.extract_strided_slice %38 {offsets = [0, 0, 32], sizes = [2, 8, 32], strides = [1, 1, 1]} : vector<2x8x128xf32> to vector<2x8x32xf32>
    %75 = arith.truncf %74 : vector<2x8x32xf32> to vector<2x8x32xbf16>
    %76 = vector.extract_strided_slice %40 {offsets = [0, 0, 32], sizes = [2, 8, 32], strides = [1, 1, 1]} : vector<2x8x128xf32> to vector<2x8x32xf32>
    %77 = arith.truncf %76 : vector<2x8x32xf32> to vector<2x8x32xbf16>
    "tpu.trace_start"() <{level = 10 : i32, message = "bqd,bkd->bqk"}> : () -> ()
    %cst_30 = arith.constant dense<0.000000e+00> : vector<2x8x8xf32>
    %78 = tpu.matmul %73, %75, %cst_30 {dimension_numbers = #tpu.dot_dimension_numbers<[2], [2], [1], [1], [0, 0, 0, 1, 1, 1], [0], [0]>} : vector<2x8x32xbf16>, vector<2x8x32xbf16>, vector<2x8x8xf32> -> vector<2x8x8xf32>
    "tpu.trace_stop"() : () -> ()
    %cst_31 = arith.constant 0.176776692 : f32
    %79 = vector.broadcast %cst_31 : f32 to vector<2x8x8xf32>
    %80 = arith.mulf %78, %79 : vector<2x8x8xf32>
    %81 = vector.broadcast %26 : vector<2x1x8xf32> to vector<2x8x8xf32>
    %82 = arith.addf %80, %81 : vector<2x8x8xf32>
    %cst_32 = arith.constant dense<0xFF800000> : vector<2x8xf32>
    %83 = vector.multi_reduction <maximumf>, %82, %cst_32 [2] : vector<2x8x8xf32> to vector<2x8xf32>
    %84 = vector.shape_cast %83 : vector<2x8xf32> to vector<2x8x1xf32>
    %85 = vector.broadcast %84 : vector<2x8x1xf32> to vector<2x8x8xf32>
    %86 = arith.subf %82, %85 : vector<2x8x8xf32>
    %87 = math.exp %86 : vector<2x8x8xf32>
    %cst_33 = arith.constant dense<0.000000e+00> : vector<2x8xf32>
    %88 = vector.multi_reduction <add>, %87, %cst_33 [2] : vector<2x8x8xf32> to vector<2x8xf32>
    %89 = vector.shape_cast %88 : vector<2x8xf32> to vector<2x8x1xf32>
    %90 = tpu.reciprocal %89 {approx = true} : vector<2x8x1xf32> -> vector<2x8x1xf32>
    %91 = vector.broadcast %90 : vector<2x8x1xf32> to vector<2x8x8xf32>
    %92 = arith.mulf %87, %91 : vector<2x8x8xf32>
    %93 = arith.truncf %92 : vector<2x8x8xf32> to vector<2x8x8xbf16>
    "tpu.trace_start"() <{level = 10 : i32, message = "bqk,bkd->bqd"}> : () -> ()
    %cst_34 = arith.constant dense<0.000000e+00> : vector<2x8x32xf32>
    %94 = tpu.matmul %93, %77, %cst_34 {dimension_numbers = #tpu.dot_dimension_numbers<[2], [1], [1], [2], [0, 0, 0, 1, 1, 2], [0], [0]>} : vector<2x8x8xbf16>, vector<2x8x32xbf16>, vector<2x8x32xf32> -> vector<2x8x32xf32>
    "tpu.trace_stop"() : () -> ()
    %95 = vector.shape_cast %94 : vector<2x8x32xf32> to vector<16x32xf32>
    %96 = arith.truncf %95 : vector<16x32xf32> to vector<16x32xbf16>
    %97 = vector.extract_strided_slice %42 {offsets = [32, 0], sizes = [32, 128], strides = [1, 1]} : vector<128x128xbf16> to vector<32x128xbf16>
    %cst_35 = arith.constant dense<0.000000e+00> : vector<16x128xf32>
    %98 = tpu.matmul %96, %97, %cst_35 {dimension_numbers = #tpu.dot_dimension_numbers<[1], [0], [0], [1], [0, 0, 1, 1], [], []>} : vector<16x32xbf16>, vector<32x128xbf16>, vector<16x128xf32> -> vector<16x128xf32>
    %99 = arith.addf %71, %98 : vector<16x128xf32>
    %100 = vector.extract_strided_slice %36 {offsets = [0, 0, 64], sizes = [2, 8, 32], strides = [1, 1, 1]} : vector<2x8x128xf32> to vector<2x8x32xf32>
    %101 = arith.truncf %100 : vector<2x8x32xf32> to vector<2x8x32xbf16>
    %102 = vector.extract_strided_slice %38 {offsets = [0, 0, 64], sizes = [2, 8, 32], strides = [1, 1, 1]} : vector<2x8x128xf32> to vector<2x8x32xf32>
    %103 = arith.truncf %102 : vector<2x8x32xf32> to vector<2x8x32xbf16>
    %104 = vector.extract_strided_slice %40 {offsets = [0, 0, 64], sizes = [2, 8, 32], strides = [1, 1, 1]} : vector<2x8x128xf32> to vector<2x8x32xf32>
    %105 = arith.truncf %104 : vector<2x8x32xf32> to vector<2x8x32xbf16>
    "tpu.trace_start"() <{level = 10 : i32, message = "bqd,bkd->bqk"}> : () -> ()
    %cst_36 = arith.constant dense<0.000000e+00> : vector<2x8x8xf32>
    %106 = tpu.matmul %101, %103, %cst_36 {dimension_numbers = #tpu.dot_dimension_numbers<[2], [2], [1], [1], [0, 0, 0, 1, 1, 1], [0], [0]>} : vector<2x8x32xbf16>, vector<2x8x32xbf16>, vector<2x8x8xf32> -> vector<2x8x8xf32>
    "tpu.trace_stop"() : () -> ()
    %cst_37 = arith.constant 0.176776692 : f32
    %107 = vector.broadcast %cst_37 : f32 to vector<2x8x8xf32>
    %108 = arith.mulf %106, %107 : vector<2x8x8xf32>
    %109 = vector.broadcast %26 : vector<2x1x8xf32> to vector<2x8x8xf32>
    %110 = arith.addf %108, %109 : vector<2x8x8xf32>
    %cst_38 = arith.constant dense<0xFF800000> : vector<2x8xf32>
    %111 = vector.multi_reduction <maximumf>, %110, %cst_38 [2] : vector<2x8x8xf32> to vector<2x8xf32>
    %112 = vector.shape_cast %111 : vector<2x8xf32> to vector<2x8x1xf32>
    %113 = vector.broadcast %112 : vector<2x8x1xf32> to vector<2x8x8xf32>
    %114 = arith.subf %110, %113 : vector<2x8x8xf32>
    %115 = math.exp %114 : vector<2x8x8xf32>
    %cst_39 = arith.constant dense<0.000000e+00> : vector<2x8xf32>
    %116 = vector.multi_reduction <add>, %115, %cst_39 [2] : vector<2x8x8xf32> to vector<2x8xf32>
    %117 = vector.shape_cast %116 : vector<2x8xf32> to vector<2x8x1xf32>
    %118 = tpu.reciprocal %117 {approx = true} : vector<2x8x1xf32> -> vector<2x8x1xf32>
    %119 = vector.broadcast %118 : vector<2x8x1xf32> to vector<2x8x8xf32>
    %120 = arith.mulf %115, %119 : vector<2x8x8xf32>
    %121 = arith.truncf %120 : vector<2x8x8xf32> to vector<2x8x8xbf16>
    "tpu.trace_start"() <{level = 10 : i32, message = "bqk,bkd->bqd"}> : () -> ()
    %cst_40 = arith.constant dense<0.000000e+00> : vector<2x8x32xf32>
    %122 = tpu.matmul %121, %105, %cst_40 {dimension_numbers = #tpu.dot_dimension_numbers<[2], [1], [1], [2], [0, 0, 0, 1, 1, 2], [0], [0]>} : vector<2x8x8xbf16>, vector<2x8x32xbf16>, vector<2x8x32xf32> -> vector<2x8x32xf32>
    "tpu.trace_stop"() : () -> ()
    %123 = vector.shape_cast %122 : vector<2x8x32xf32> to vector<16x32xf32>
    %124 = arith.truncf %123 : vector<16x32xf32> to vector<16x32xbf16>
    %125 = vector.extract_strided_slice %42 {offsets = [64, 0], sizes = [32, 128], strides = [1, 1]} : vector<128x128xbf16> to vector<32x128xbf16>
    %cst_41 = arith.constant dense<0.000000e+00> : vector<16x128xf32>
    %126 = tpu.matmul %124, %125, %cst_41 {dimension_numbers = #tpu.dot_dimension_numbers<[1], [0], [0], [1], [0, 0, 1, 1], [], []>} : vector<16x32xbf16>, vector<32x128xbf16>, vector<16x128xf32> -> vector<16x128xf32>
    %127 = arith.addf %99, %126 : vector<16x128xf32>
    %128 = vector.extract_strided_slice %36 {offsets = [0, 0, 96], sizes = [2, 8, 32], strides = [1, 1, 1]} : vector<2x8x128xf32> to vector<2x8x32xf32>
    %129 = arith.truncf %128 : vector<2x8x32xf32> to vector<2x8x32xbf16>
    %130 = vector.extract_strided_slice %38 {offsets = [0, 0, 96], sizes = [2, 8, 32], strides = [1, 1, 1]} : vector<2x8x128xf32> to vector<2x8x32xf32>
    %131 = arith.truncf %130 : vector<2x8x32xf32> to vector<2x8x32xbf16>
    %132 = vector.extract_strided_slice %40 {offsets = [0, 0, 96], sizes = [2, 8, 32], strides = [1, 1, 1]} : vector<2x8x128xf32> to vector<2x8x32xf32>
    %133 = arith.truncf %132 : vector<2x8x32xf32> to vector<2x8x32xbf16>
    "tpu.trace_start"() <{level = 10 : i32, message = "bqd,bkd->bqk"}> : () -> ()
    %cst_42 = arith.constant dense<0.000000e+00> : vector<2x8x8xf32>
    %134 = tpu.matmul %129, %131, %cst_42 {dimension_numbers = #tpu.dot_dimension_numbers<[2], [2], [1], [1], [0, 0, 0, 1, 1, 1], [0], [0]>} : vector<2x8x32xbf16>, vector<2x8x32xbf16>, vector<2x8x8xf32> -> vector<2x8x8xf32>
    "tpu.trace_stop"() : () -> ()
    %cst_43 = arith.constant 0.176776692 : f32
    %135 = vector.broadcast %cst_43 : f32 to vector<2x8x8xf32>
    %136 = arith.mulf %134, %135 : vector<2x8x8xf32>
    %137 = vector.broadcast %26 : vector<2x1x8xf32> to vector<2x8x8xf32>
    %138 = arith.addf %136, %137 : vector<2x8x8xf32>
    %cst_44 = arith.constant dense<0xFF800000> : vector<2x8xf32>
    %139 = vector.multi_reduction <maximumf>, %138, %cst_44 [2] : vector<2x8x8xf32> to vector<2x8xf32>
    %140 = vector.shape_cast %139 : vector<2x8xf32> to vector<2x8x1xf32>
    %141 = vector.broadcast %140 : vector<2x8x1xf32> to vector<2x8x8xf32>
    %142 = arith.subf %138, %141 : vector<2x8x8xf32>
    %143 = math.exp %142 : vector<2x8x8xf32>
    %cst_45 = arith.constant dense<0.000000e+00> : vector<2x8xf32>
    %144 = vector.multi_reduction <add>, %143, %cst_45 [2] : vector<2x8x8xf32> to vector<2x8xf32>
    %145 = vector.shape_cast %144 : vector<2x8xf32> to vector<2x8x1xf32>
    %146 = tpu.reciprocal %145 {approx = true} : vector<2x8x1xf32> -> vector<2x8x1xf32>
    %147 = vector.broadcast %146 : vector<2x8x1xf32> to vector<2x8x8xf32>
    %148 = arith.mulf %143, %147 : vector<2x8x8xf32>
    %149 = arith.truncf %148 : vector<2x8x8xf32> to vector<2x8x8xbf16>
    "tpu.trace_start"() <{level = 10 : i32, message = "bqk,bkd->bqd"}> : () -> ()
    %cst_46 = arith.constant dense<0.000000e+00> : vector<2x8x32xf32>
    %150 = tpu.matmul %149, %133, %cst_46 {dimension_numbers = #tpu.dot_dimension_numbers<[2], [1], [1], [2], [0, 0, 0, 1, 1, 2], [0], [0]>} : vector<2x8x8xbf16>, vector<2x8x32xbf16>, vector<2x8x32xf32> -> vector<2x8x32xf32>
    "tpu.trace_stop"() : () -> ()
    %151 = vector.shape_cast %150 : vector<2x8x32xf32> to vector<16x32xf32>
    %152 = arith.truncf %151 : vector<16x32xf32> to vector<16x32xbf16>
    %153 = vector.extract_strided_slice %42 {offsets = [96, 0], sizes = [32, 128], strides = [1, 1]} : vector<128x128xbf16> to vector<32x128xbf16>
    %cst_47 = arith.constant dense<0.000000e+00> : vector<16x128xf32>
    %154 = tpu.matmul %152, %153, %cst_47 {dimension_numbers = #tpu.dot_dimension_numbers<[1], [0], [0], [1], [0, 0, 1, 1], [], []>} : vector<16x32xbf16>, vector<32x128xbf16>, vector<16x128xf32> -> vector<16x128xf32>
    %155 = arith.addf %127, %154 : vector<16x128xf32>
    %c0_48 = arith.constant 0 : index
    %c0_49 = arith.constant 0 : index
    %c0_50 = arith.constant 0 : index
    %156 = vector.load %arg9[%c0_48, %c0_49, %c0_50] : memref<2x1x128xf32, #tpu.memory_space<vmem>>, vector<1x1x128xf32>
    %157 = vector.shape_cast %156 : vector<1x1x128xf32> to vector<1x128xf32>
    %158 = vector.broadcast %157 : vector<1x128xf32> to vector<16x128xf32>
    %159 = arith.addf %155, %158 : vector<16x128xf32>
    %160 = arith.addf %25, %159 : vector<16x128xf32>
    %c0_51 = arith.constant 0 : index
    %c0_52 = arith.constant 0 : index
    %c0_53 = arith.constant 0 : index
    %161 = vector.load %arg10[%c0_51, %c0_52, %c0_53] : memref<2x1x128xf32, #tpu.memory_space<vmem>>, vector<1x1x128xf32>
    %162 = vector.shape_cast %161 : vector<1x1x128xf32> to vector<1x128xf32>
    %c0_54 = arith.constant 0 : index
    %c0_55 = arith.constant 0 : index
    %c0_56 = arith.constant 0 : index
    %163 = vector.load %arg11[%c0_54, %c0_55, %c0_56] : memref<2x1x128xf32, #tpu.memory_space<vmem>>, vector<1x1x128xf32>
    %164 = vector.shape_cast %163 : vector<1x1x128xf32> to vector<1x128xf32>
    %cst_57 = arith.constant dense<0.000000e+00> : vector<16xf32>
    %165 = vector.multi_reduction <add>, %160, %cst_57 [1] : vector<16x128xf32> to vector<16xf32>
    %166 = vector.shape_cast %165 : vector<16xf32> to vector<16x1xf32>
    %cst_58 = arith.constant 1.280000e+02 : f32
    %167 = vector.broadcast %cst_58 : f32 to vector<16x1xf32>
    %168 = arith.divf %166, %167 : vector<16x1xf32>
    %169 = vector.broadcast %168 : vector<16x1xf32> to vector<16x128xf32>
    %170 = arith.subf %160, %169 : vector<16x128xf32>
    %171 = arith.mulf %170, %170 : vector<16x128xf32>
    %cst_59 = arith.constant dense<0.000000e+00> : vector<16xf32>
    %172 = vector.multi_reduction <add>, %171, %cst_59 [1] : vector<16x128xf32> to vector<16xf32>
    %173 = vector.shape_cast %172 : vector<16xf32> to vector<16x1xf32>
    %cst_60 = arith.constant 1.280000e+02 : f32
    %174 = vector.broadcast %cst_60 : f32 to vector<16x1xf32>
    %175 = arith.divf %173, %174 : vector<16x1xf32>
    %176 = vector.broadcast %168 : vector<16x1xf32> to vector<16x128xf32>
    %177 = arith.subf %160, %176 : vector<16x128xf32>
    %cst_61 = arith.constant 9.99999996E-13 : f32
    %178 = vector.broadcast %cst_61 : f32 to vector<16x1xf32>
    %179 = arith.addf %175, %178 : vector<16x1xf32>
    %180 = math.rsqrt %179 : vector<16x1xf32>
    %181 = vector.broadcast %180 : vector<16x1xf32> to vector<16x128xf32>
    %182 = arith.mulf %177, %181 : vector<16x128xf32>
    %183 = vector.broadcast %162 : vector<1x128xf32> to vector<16x128xf32>
    %184 = arith.mulf %182, %183 : vector<16x128xf32>
    %185 = vector.broadcast %164 : vector<1x128xf32> to vector<16x128xf32>
    %186 = arith.addf %184, %185 : vector<16x128xf32>
    %187 = arith.truncf %186 : vector<16x128xf32> to vector<16x128xbf16>
    %c0_62 = arith.constant 0 : index
    %c0_63 = arith.constant 0 : index
    %c0_64 = arith.constant 0 : index
    %188 = vector.load %arg12[%c0_62, %c0_63, %c0_64] : memref<2x128x512xbf16, #tpu.memory_space<vmem>>, vector<1x128x512xbf16>
    %189 = vector.shape_cast %188 : vector<1x128x512xbf16> to vector<128x512xbf16>
    %cst_65 = arith.constant dense<0.000000e+00> : vector<16x512xf32>
    %190 = tpu.matmul %187, %189, %cst_65 {dimension_numbers = #tpu.dot_dimension_numbers<[1], [0], [0], [1], [0, 0, 1, 1], [], []>} : vector<16x128xbf16>, vector<128x512xbf16>, vector<16x512xf32> -> vector<16x512xf32>
    %c0_66 = arith.constant 0 : index
    %c0_67 = arith.constant 0 : index
    %c0_68 = arith.constant 0 : index
    %191 = vector.load %arg13[%c0_66, %c0_67, %c0_68] : memref<2x1x512xf32, #tpu.memory_space<vmem>>, vector<1x1x512xf32>
    %192 = vector.shape_cast %191 : vector<1x1x512xf32> to vector<1x512xf32>
    %193 = vector.broadcast %192 : vector<1x512xf32> to vector<16x512xf32>
    %194 = arith.addf %190, %193 : vector<16x512xf32>
    %cst_69 = arith.constant 5.000000e-01 : f32
    %195 = vector.broadcast %cst_69 : f32 to vector<16x512xf32>
    %196 = arith.mulf %195, %194 : vector<16x512xf32>
    %cst_70 = arith.constant 4.471500e-02 : f32
    %197 = vector.broadcast %cst_70 : f32 to vector<16x512xf32>
    %198 = arith.mulf %197, %194 : vector<16x512xf32>
    %199 = arith.mulf %198, %194 : vector<16x512xf32>
    %200 = arith.mulf %199, %194 : vector<16x512xf32>
    %201 = arith.addf %194, %200 : vector<16x512xf32>
    %cst_71 = arith.constant 0.797884583 : f32
    %202 = vector.broadcast %cst_71 : f32 to vector<16x512xf32>
    %203 = arith.mulf %202, %201 : vector<16x512xf32>
    %204 = math.tanh %203 : vector<16x512xf32>
    %cst_72 = arith.constant 1.000000e+00 : f32
    %205 = vector.broadcast %cst_72 : f32 to vector<16x512xf32>
    %206 = arith.addf %205, %204 : vector<16x512xf32>
    %207 = arith.mulf %196, %206 : vector<16x512xf32>
    %208 = arith.truncf %207 : vector<16x512xf32> to vector<16x512xbf16>
    %c0_73 = arith.constant 0 : index
    %c0_74 = arith.constant 0 : index
    %c0_75 = arith.constant 0 : index
    %209 = vector.load %arg14[%c0_73, %c0_74, %c0_75] : memref<2x512x128xbf16, #tpu.memory_space<vmem>>, vector<1x512x128xbf16>
    %210 = vector.shape_cast %209 : vector<1x512x128xbf16> to vector<512x128xbf16>
    %cst_76 = arith.constant dense<0.000000e+00> : vector<16x128xf32>
    %211 = tpu.matmul %208, %210, %cst_76 {dimension_numbers = #tpu.dot_dimension_numbers<[1], [0], [0], [1], [0, 0, 1, 1], [], []>} : vector<16x512xbf16>, vector<512x128xbf16>, vector<16x128xf32> -> vector<16x128xf32>
    %c0_77 = arith.constant 0 : index
    %c0_78 = arith.constant 0 : index
    %c0_79 = arith.constant 0 : index
    %212 = vector.load %arg15[%c0_77, %c0_78, %c0_79] : memref<2x1x128xf32, #tpu.memory_space<vmem>>, vector<1x1x128xf32>
    %213 = vector.shape_cast %212 : vector<1x1x128xf32> to vector<1x128xf32>
    %214 = vector.broadcast %213 : vector<1x128xf32> to vector<16x128xf32>
    %215 = arith.addf %211, %214 : vector<16x128xf32>
    %216 = arith.addf %186, %215 : vector<16x128xf32>
    %c0_80 = arith.constant 0 : index
    %c0_81 = arith.constant 0 : index
    %c0_82 = arith.constant 0 : index
    %217 = vector.load %arg16[%c0_80, %c0_81, %c0_82] : memref<2x1x128xf32, #tpu.memory_space<vmem>>, vector<1x1x128xf32>
    %218 = vector.shape_cast %217 : vector<1x1x128xf32> to vector<1x128xf32>
    %c0_83 = arith.constant 0 : index
    %c0_84 = arith.constant 0 : index
    %c0_85 = arith.constant 0 : index
    %219 = vector.load %arg17[%c0_83, %c0_84, %c0_85] : memref<2x1x128xf32, #tpu.memory_space<vmem>>, vector<1x1x128xf32>
    %220 = vector.shape_cast %219 : vector<1x1x128xf32> to vector<1x128xf32>
    %cst_86 = arith.constant dense<0.000000e+00> : vector<16xf32>
    %221 = vector.multi_reduction <add>, %216, %cst_86 [1] : vector<16x128xf32> to vector<16xf32>
    %222 = vector.shape_cast %221 : vector<16xf32> to vector<16x1xf32>
    %cst_87 = arith.constant 1.280000e+02 : f32
    %223 = vector.broadcast %cst_87 : f32 to vector<16x1xf32>
    %224 = arith.divf %222, %223 : vector<16x1xf32>
    %225 = vector.broadcast %224 : vector<16x1xf32> to vector<16x128xf32>
    %226 = arith.subf %216, %225 : vector<16x128xf32>
    %227 = arith.mulf %226, %226 : vector<16x128xf32>
    %cst_88 = arith.constant dense<0.000000e+00> : vector<16xf32>
    %228 = vector.multi_reduction <add>, %227, %cst_88 [1] : vector<16x128xf32> to vector<16xf32>
    %229 = vector.shape_cast %228 : vector<16xf32> to vector<16x1xf32>
    %cst_89 = arith.constant 1.280000e+02 : f32
    %230 = vector.broadcast %cst_89 : f32 to vector<16x1xf32>
    %231 = arith.divf %229, %230 : vector<16x1xf32>
    %232 = vector.broadcast %224 : vector<16x1xf32> to vector<16x128xf32>
    %233 = arith.subf %216, %232 : vector<16x128xf32>
    %cst_90 = arith.constant 9.99999996E-13 : f32
    %234 = vector.broadcast %cst_90 : f32 to vector<16x1xf32>
    %235 = arith.addf %231, %234 : vector<16x1xf32>
    %236 = math.rsqrt %235 : vector<16x1xf32>
    %237 = vector.broadcast %236 : vector<16x1xf32> to vector<16x128xf32>
    %238 = arith.mulf %233, %237 : vector<16x128xf32>
    %239 = vector.broadcast %218 : vector<1x128xf32> to vector<16x128xf32>
    %240 = arith.mulf %238, %239 : vector<16x128xf32>
    %241 = vector.broadcast %220 : vector<1x128xf32> to vector<16x128xf32>
    %242 = arith.addf %240, %241 : vector<16x128xf32>
    %243 = arith.truncf %242 : vector<16x128xf32> to vector<16x128xbf16>
    %c1 = arith.constant 1 : index
    %c0_91 = arith.constant 0 : index
    %c0_92 = arith.constant 0 : index
    %244 = vector.load %arg6[%c1, %c0_91, %c0_92] : memref<2x128x384xbf16, #tpu.memory_space<vmem>>, vector<1x128x384xbf16>
    %245 = vector.shape_cast %244 : vector<1x128x384xbf16> to vector<128x384xbf16>
    %cst_93 = arith.constant dense<0.000000e+00> : vector<16x384xf32>
    %246 = tpu.matmul %243, %245, %cst_93 {dimension_numbers = #tpu.dot_dimension_numbers<[1], [0], [0], [1], [0, 0, 1, 1], [], []>} : vector<16x128xbf16>, vector<128x384xbf16>, vector<16x384xf32> -> vector<16x384xf32>
    %c1_94 = arith.constant 1 : index
    %c0_95 = arith.constant 0 : index
    %c0_96 = arith.constant 0 : index
    %247 = vector.load %arg7[%c1_94, %c0_95, %c0_96] : memref<2x1x384xf32, #tpu.memory_space<vmem>>, vector<1x1x384xf32>
    %248 = vector.shape_cast %247 : vector<1x1x384xf32> to vector<1x384xf32>
    %249 = vector.broadcast %248 : vector<1x384xf32> to vector<16x384xf32>
    %250 = arith.addf %246, %249 : vector<16x384xf32>
    %251 = vector.extract_strided_slice %250 {offsets = [0, 0], sizes = [16, 128], strides = [1, 1]} : vector<16x384xf32> to vector<16x128xf32>
    %252 = vector.shape_cast %251 : vector<16x128xf32> to vector<2x8x128xf32>
    %253 = vector.extract_strided_slice %250 {offsets = [0, 128], sizes = [16, 128], strides = [1, 1]} : vector<16x384xf32> to vector<16x128xf32>
    %254 = vector.shape_cast %253 : vector<16x128xf32> to vector<2x8x128xf32>
    %255 = vector.extract_strided_slice %250 {offsets = [0, 256], sizes = [16, 128], strides = [1, 1]} : vector<16x384xf32> to vector<16x128xf32>
    %256 = vector.shape_cast %255 : vector<16x128xf32> to vector<2x8x128xf32>
    %c1_97 = arith.constant 1 : index
    %c0_98 = arith.constant 0 : index
    %c0_99 = arith.constant 0 : index
    %257 = vector.load %arg8[%c1_97, %c0_98, %c0_99] : memref<2x128x128xbf16, #tpu.memory_space<vmem>>, vector<1x128x128xbf16>
    %258 = vector.shape_cast %257 : vector<1x128x128xbf16> to vector<128x128xbf16>
    %cst_100 = arith.constant 0.000000e+00 : f32
    %259 = vector.broadcast %cst_100 : f32 to vector<16x128xf32>
    %260 = vector.extract_strided_slice %252 {offsets = [0, 0, 0], sizes = [2, 8, 32], strides = [1, 1, 1]} : vector<2x8x128xf32> to vector<2x8x32xf32>
    %261 = arith.truncf %260 : vector<2x8x32xf32> to vector<2x8x32xbf16>
    %262 = vector.extract_strided_slice %254 {offsets = [0, 0, 0], sizes = [2, 8, 32], strides = [1, 1, 1]} : vector<2x8x128xf32> to vector<2x8x32xf32>
    %263 = arith.truncf %262 : vector<2x8x32xf32> to vector<2x8x32xbf16>
    %264 = vector.extract_strided_slice %256 {offsets = [0, 0, 0], sizes = [2, 8, 32], strides = [1, 1, 1]} : vector<2x8x128xf32> to vector<2x8x32xf32>
    %265 = arith.truncf %264 : vector<2x8x32xf32> to vector<2x8x32xbf16>
    "tpu.trace_start"() <{level = 10 : i32, message = "bqd,bkd->bqk"}> : () -> ()
    %cst_101 = arith.constant dense<0.000000e+00> : vector<2x8x8xf32>
    %266 = tpu.matmul %261, %263, %cst_101 {dimension_numbers = #tpu.dot_dimension_numbers<[2], [2], [1], [1], [0, 0, 0, 1, 1, 1], [0], [0]>} : vector<2x8x32xbf16>, vector<2x8x32xbf16>, vector<2x8x8xf32> -> vector<2x8x8xf32>
    "tpu.trace_stop"() : () -> ()
    %cst_102 = arith.constant 0.176776692 : f32
    %267 = vector.broadcast %cst_102 : f32 to vector<2x8x8xf32>
    %268 = arith.mulf %266, %267 : vector<2x8x8xf32>
    %269 = vector.broadcast %26 : vector<2x1x8xf32> to vector<2x8x8xf32>
    %270 = arith.addf %268, %269 : vector<2x8x8xf32>
    %cst_103 = arith.constant dense<0xFF800000> : vector<2x8xf32>
    %271 = vector.multi_reduction <maximumf>, %270, %cst_103 [2] : vector<2x8x8xf32> to vector<2x8xf32>
    %272 = vector.shape_cast %271 : vector<2x8xf32> to vector<2x8x1xf32>
    %273 = vector.broadcast %272 : vector<2x8x1xf32> to vector<2x8x8xf32>
    %274 = arith.subf %270, %273 : vector<2x8x8xf32>
    %275 = math.exp %274 : vector<2x8x8xf32>
    %cst_104 = arith.constant dense<0.000000e+00> : vector<2x8xf32>
    %276 = vector.multi_reduction <add>, %275, %cst_104 [2] : vector<2x8x8xf32> to vector<2x8xf32>
    %277 = vector.shape_cast %276 : vector<2x8xf32> to vector<2x8x1xf32>
    %278 = tpu.reciprocal %277 {approx = true} : vector<2x8x1xf32> -> vector<2x8x1xf32>
    %279 = vector.broadcast %278 : vector<2x8x1xf32> to vector<2x8x8xf32>
    %280 = arith.mulf %275, %279 : vector<2x8x8xf32>
    %281 = arith.truncf %280 : vector<2x8x8xf32> to vector<2x8x8xbf16>
    "tpu.trace_start"() <{level = 10 : i32, message = "bqk,bkd->bqd"}> : () -> ()
    %cst_105 = arith.constant dense<0.000000e+00> : vector<2x8x32xf32>
    %282 = tpu.matmul %281, %265, %cst_105 {dimension_numbers = #tpu.dot_dimension_numbers<[2], [1], [1], [2], [0, 0, 0, 1, 1, 2], [0], [0]>} : vector<2x8x8xbf16>, vector<2x8x32xbf16>, vector<2x8x32xf32> -> vector<2x8x32xf32>
    "tpu.trace_stop"() : () -> ()
    %283 = vector.shape_cast %282 : vector<2x8x32xf32> to vector<16x32xf32>
    %284 = arith.truncf %283 : vector<16x32xf32> to vector<16x32xbf16>
    %285 = vector.extract_strided_slice %258 {offsets = [0, 0], sizes = [32, 128], strides = [1, 1]} : vector<128x128xbf16> to vector<32x128xbf16>
    %cst_106 = arith.constant dense<0.000000e+00> : vector<16x128xf32>
    %286 = tpu.matmul %284, %285, %cst_106 {dimension_numbers = #tpu.dot_dimension_numbers<[1], [0], [0], [1], [0, 0, 1, 1], [], []>} : vector<16x32xbf16>, vector<32x128xbf16>, vector<16x128xf32> -> vector<16x128xf32>
    %287 = arith.addf %259, %286 : vector<16x128xf32>
    %288 = vector.extract_strided_slice %252 {offsets = [0, 0, 32], sizes = [2, 8, 32], strides = [1, 1, 1]} : vector<2x8x128xf32> to vector<2x8x32xf32>
    %289 = arith.truncf %288 : vector<2x8x32xf32> to vector<2x8x32xbf16>
    %290 = vector.extract_strided_slice %254 {offsets = [0, 0, 32], sizes = [2, 8, 32], strides = [1, 1, 1]} : vector<2x8x128xf32> to vector<2x8x32xf32>
    %291 = arith.truncf %290 : vector<2x8x32xf32> to vector<2x8x32xbf16>
    %292 = vector.extract_strided_slice %256 {offsets = [0, 0, 32], sizes = [2, 8, 32], strides = [1, 1, 1]} : vector<2x8x128xf32> to vector<2x8x32xf32>
    %293 = arith.truncf %292 : vector<2x8x32xf32> to vector<2x8x32xbf16>
    "tpu.trace_start"() <{level = 10 : i32, message = "bqd,bkd->bqk"}> : () -> ()
    %cst_107 = arith.constant dense<0.000000e+00> : vector<2x8x8xf32>
    %294 = tpu.matmul %289, %291, %cst_107 {dimension_numbers = #tpu.dot_dimension_numbers<[2], [2], [1], [1], [0, 0, 0, 1, 1, 1], [0], [0]>} : vector<2x8x32xbf16>, vector<2x8x32xbf16>, vector<2x8x8xf32> -> vector<2x8x8xf32>
    "tpu.trace_stop"() : () -> ()
    %cst_108 = arith.constant 0.176776692 : f32
    %295 = vector.broadcast %cst_108 : f32 to vector<2x8x8xf32>
    %296 = arith.mulf %294, %295 : vector<2x8x8xf32>
    %297 = vector.broadcast %26 : vector<2x1x8xf32> to vector<2x8x8xf32>
    %298 = arith.addf %296, %297 : vector<2x8x8xf32>
    %cst_109 = arith.constant dense<0xFF800000> : vector<2x8xf32>
    %299 = vector.multi_reduction <maximumf>, %298, %cst_109 [2] : vector<2x8x8xf32> to vector<2x8xf32>
    %300 = vector.shape_cast %299 : vector<2x8xf32> to vector<2x8x1xf32>
    %301 = vector.broadcast %300 : vector<2x8x1xf32> to vector<2x8x8xf32>
    %302 = arith.subf %298, %301 : vector<2x8x8xf32>
    %303 = math.exp %302 : vector<2x8x8xf32>
    %cst_110 = arith.constant dense<0.000000e+00> : vector<2x8xf32>
    %304 = vector.multi_reduction <add>, %303, %cst_110 [2] : vector<2x8x8xf32> to vector<2x8xf32>
    %305 = vector.shape_cast %304 : vector<2x8xf32> to vector<2x8x1xf32>
    %306 = tpu.reciprocal %305 {approx = true} : vector<2x8x1xf32> -> vector<2x8x1xf32>
    %307 = vector.broadcast %306 : vector<2x8x1xf32> to vector<2x8x8xf32>
    %308 = arith.mulf %303, %307 : vector<2x8x8xf32>
    %309 = arith.truncf %308 : vector<2x8x8xf32> to vector<2x8x8xbf16>
    "tpu.trace_start"() <{level = 10 : i32, message = "bqk,bkd->bqd"}> : () -> ()
    %cst_111 = arith.constant dense<0.000000e+00> : vector<2x8x32xf32>
    %310 = tpu.matmul %309, %293, %cst_111 {dimension_numbers = #tpu.dot_dimension_numbers<[2], [1], [1], [2], [0, 0, 0, 1, 1, 2], [0], [0]>} : vector<2x8x8xbf16>, vector<2x8x32xbf16>, vector<2x8x32xf32> -> vector<2x8x32xf32>
    "tpu.trace_stop"() : () -> ()
    %311 = vector.shape_cast %310 : vector<2x8x32xf32> to vector<16x32xf32>
    %312 = arith.truncf %311 : vector<16x32xf32> to vector<16x32xbf16>
    %313 = vector.extract_strided_slice %258 {offsets = [32, 0], sizes = [32, 128], strides = [1, 1]} : vector<128x128xbf16> to vector<32x128xbf16>
    %cst_112 = arith.constant dense<0.000000e+00> : vector<16x128xf32>
    %314 = tpu.matmul %312, %313, %cst_112 {dimension_numbers = #tpu.dot_dimension_numbers<[1], [0], [0], [1], [0, 0, 1, 1], [], []>} : vector<16x32xbf16>, vector<32x128xbf16>, vector<16x128xf32> -> vector<16x128xf32>
    %315 = arith.addf %287, %314 : vector<16x128xf32>
    %316 = vector.extract_strided_slice %252 {offsets = [0, 0, 64], sizes = [2, 8, 32], strides = [1, 1, 1]} : vector<2x8x128xf32> to vector<2x8x32xf32>
    %317 = arith.truncf %316 : vector<2x8x32xf32> to vector<2x8x32xbf16>
    %318 = vector.extract_strided_slice %254 {offsets = [0, 0, 64], sizes = [2, 8, 32], strides = [1, 1, 1]} : vector<2x8x128xf32> to vector<2x8x32xf32>
    %319 = arith.truncf %318 : vector<2x8x32xf32> to vector<2x8x32xbf16>
    %320 = vector.extract_strided_slice %256 {offsets = [0, 0, 64], sizes = [2, 8, 32], strides = [1, 1, 1]} : vector<2x8x128xf32> to vector<2x8x32xf32>
    %321 = arith.truncf %320 : vector<2x8x32xf32> to vector<2x8x32xbf16>
    "tpu.trace_start"() <{level = 10 : i32, message = "bqd,bkd->bqk"}> : () -> ()
    %cst_113 = arith.constant dense<0.000000e+00> : vector<2x8x8xf32>
    %322 = tpu.matmul %317, %319, %cst_113 {dimension_numbers = #tpu.dot_dimension_numbers<[2], [2], [1], [1], [0, 0, 0, 1, 1, 1], [0], [0]>} : vector<2x8x32xbf16>, vector<2x8x32xbf16>, vector<2x8x8xf32> -> vector<2x8x8xf32>
    "tpu.trace_stop"() : () -> ()
    %cst_114 = arith.constant 0.176776692 : f32
    %323 = vector.broadcast %cst_114 : f32 to vector<2x8x8xf32>
    %324 = arith.mulf %322, %323 : vector<2x8x8xf32>
    %325 = vector.broadcast %26 : vector<2x1x8xf32> to vector<2x8x8xf32>
    %326 = arith.addf %324, %325 : vector<2x8x8xf32>
    %cst_115 = arith.constant dense<0xFF800000> : vector<2x8xf32>
    %327 = vector.multi_reduction <maximumf>, %326, %cst_115 [2] : vector<2x8x8xf32> to vector<2x8xf32>
    %328 = vector.shape_cast %327 : vector<2x8xf32> to vector<2x8x1xf32>
    %329 = vector.broadcast %328 : vector<2x8x1xf32> to vector<2x8x8xf32>
    %330 = arith.subf %326, %329 : vector<2x8x8xf32>
    %331 = math.exp %330 : vector<2x8x8xf32>
    %cst_116 = arith.constant dense<0.000000e+00> : vector<2x8xf32>
    %332 = vector.multi_reduction <add>, %331, %cst_116 [2] : vector<2x8x8xf32> to vector<2x8xf32>
    %333 = vector.shape_cast %332 : vector<2x8xf32> to vector<2x8x1xf32>
    %334 = tpu.reciprocal %333 {approx = true} : vector<2x8x1xf32> -> vector<2x8x1xf32>
    %335 = vector.broadcast %334 : vector<2x8x1xf32> to vector<2x8x8xf32>
    %336 = arith.mulf %331, %335 : vector<2x8x8xf32>
    %337 = arith.truncf %336 : vector<2x8x8xf32> to vector<2x8x8xbf16>
    "tpu.trace_start"() <{level = 10 : i32, message = "bqk,bkd->bqd"}> : () -> ()
    %cst_117 = arith.constant dense<0.000000e+00> : vector<2x8x32xf32>
    %338 = tpu.matmul %337, %321, %cst_117 {dimension_numbers = #tpu.dot_dimension_numbers<[2], [1], [1], [2], [0, 0, 0, 1, 1, 2], [0], [0]>} : vector<2x8x8xbf16>, vector<2x8x32xbf16>, vector<2x8x32xf32> -> vector<2x8x32xf32>
    "tpu.trace_stop"() : () -> ()
    %339 = vector.shape_cast %338 : vector<2x8x32xf32> to vector<16x32xf32>
    %340 = arith.truncf %339 : vector<16x32xf32> to vector<16x32xbf16>
    %341 = vector.extract_strided_slice %258 {offsets = [64, 0], sizes = [32, 128], strides = [1, 1]} : vector<128x128xbf16> to vector<32x128xbf16>
    %cst_118 = arith.constant dense<0.000000e+00> : vector<16x128xf32>
    %342 = tpu.matmul %340, %341, %cst_118 {dimension_numbers = #tpu.dot_dimension_numbers<[1], [0], [0], [1], [0, 0, 1, 1], [], []>} : vector<16x32xbf16>, vector<32x128xbf16>, vector<16x128xf32> -> vector<16x128xf32>
    %343 = arith.addf %315, %342 : vector<16x128xf32>
    %344 = vector.extract_strided_slice %252 {offsets = [0, 0, 96], sizes = [2, 8, 32], strides = [1, 1, 1]} : vector<2x8x128xf32> to vector<2x8x32xf32>
    %345 = arith.truncf %344 : vector<2x8x32xf32> to vector<2x8x32xbf16>
    %346 = vector.extract_strided_slice %254 {offsets = [0, 0, 96], sizes = [2, 8, 32], strides = [1, 1, 1]} : vector<2x8x128xf32> to vector<2x8x32xf32>
    %347 = arith.truncf %346 : vector<2x8x32xf32> to vector<2x8x32xbf16>
    %348 = vector.extract_strided_slice %256 {offsets = [0, 0, 96], sizes = [2, 8, 32], strides = [1, 1, 1]} : vector<2x8x128xf32> to vector<2x8x32xf32>
    %349 = arith.truncf %348 : vector<2x8x32xf32> to vector<2x8x32xbf16>
    "tpu.trace_start"() <{level = 10 : i32, message = "bqd,bkd->bqk"}> : () -> ()
    %cst_119 = arith.constant dense<0.000000e+00> : vector<2x8x8xf32>
    %350 = tpu.matmul %345, %347, %cst_119 {dimension_numbers = #tpu.dot_dimension_numbers<[2], [2], [1], [1], [0, 0, 0, 1, 1, 1], [0], [0]>} : vector<2x8x32xbf16>, vector<2x8x32xbf16>, vector<2x8x8xf32> -> vector<2x8x8xf32>
    "tpu.trace_stop"() : () -> ()
    %cst_120 = arith.constant 0.176776692 : f32
    %351 = vector.broadcast %cst_120 : f32 to vector<2x8x8xf32>
    %352 = arith.mulf %350, %351 : vector<2x8x8xf32>
    %353 = vector.broadcast %26 : vector<2x1x8xf32> to vector<2x8x8xf32>
    %354 = arith.addf %352, %353 : vector<2x8x8xf32>
    %cst_121 = arith.constant dense<0xFF800000> : vector<2x8xf32>
    %355 = vector.multi_reduction <maximumf>, %354, %cst_121 [2] : vector<2x8x8xf32> to vector<2x8xf32>
    %356 = vector.shape_cast %355 : vector<2x8xf32> to vector<2x8x1xf32>
    %357 = vector.broadcast %356 : vector<2x8x1xf32> to vector<2x8x8xf32>
    %358 = arith.subf %354, %357 : vector<2x8x8xf32>
    %359 = math.exp %358 : vector<2x8x8xf32>
    %cst_122 = arith.constant dense<0.000000e+00> : vector<2x8xf32>
    %360 = vector.multi_reduction <add>, %359, %cst_122 [2] : vector<2x8x8xf32> to vector<2x8xf32>
    %361 = vector.shape_cast %360 : vector<2x8xf32> to vector<2x8x1xf32>
    %362 = tpu.reciprocal %361 {approx = true} : vector<2x8x1xf32> -> vector<2x8x1xf32>
    %363 = vector.broadcast %362 : vector<2x8x1xf32> to vector<2x8x8xf32>
    %364 = arith.mulf %359, %363 : vector<2x8x8xf32>
    %365 = arith.truncf %364 : vector<2x8x8xf32> to vector<2x8x8xbf16>
    "tpu.trace_start"() <{level = 10 : i32, message = "bqk,bkd->bqd"}> : () -> ()
    %cst_123 = arith.constant dense<0.000000e+00> : vector<2x8x32xf32>
    %366 = tpu.matmul %365, %349, %cst_123 {dimension_numbers = #tpu.dot_dimension_numbers<[2], [1], [1], [2], [0, 0, 0, 1, 1, 2], [0], [0]>} : vector<2x8x8xbf16>, vector<2x8x32xbf16>, vector<2x8x32xf32> -> vector<2x8x32xf32>
    "tpu.trace_stop"() : () -> ()
    %367 = vector.shape_cast %366 : vector<2x8x32xf32> to vector<16x32xf32>
    %368 = arith.truncf %367 : vector<16x32xf32> to vector<16x32xbf16>
    %369 = vector.extract_strided_slice %258 {offsets = [96, 0], sizes = [32, 128], strides = [1, 1]} : vector<128x128xbf16> to vector<32x128xbf16>
    %cst_124 = arith.constant dense<0.000000e+00> : vector<16x128xf32>
    %370 = tpu.matmul %368, %369, %cst_124 {dimension_numbers = #tpu.dot_dimension_numbers<[1], [0], [0], [1], [0, 0, 1, 1], [], []>} : vector<16x32xbf16>, vector<32x128xbf16>, vector<16x128xf32> -> vector<16x128xf32>
    %371 = arith.addf %343, %370 : vector<16x128xf32>
    %c1_125 = arith.constant 1 : index
    %c0_126 = arith.constant 0 : index
    %c0_127 = arith.constant 0 : index
    %372 = vector.load %arg9[%c1_125, %c0_126, %c0_127] : memref<2x1x128xf32, #tpu.memory_space<vmem>>, vector<1x1x128xf32>
    %373 = vector.shape_cast %372 : vector<1x1x128xf32> to vector<1x128xf32>
    %374 = vector.broadcast %373 : vector<1x128xf32> to vector<16x128xf32>
    %375 = arith.addf %371, %374 : vector<16x128xf32>
    %376 = arith.addf %242, %375 : vector<16x128xf32>
    %c1_128 = arith.constant 1 : index
    %c0_129 = arith.constant 0 : index
    %c0_130 = arith.constant 0 : index
    %377 = vector.load %arg10[%c1_128, %c0_129, %c0_130] : memref<2x1x128xf32, #tpu.memory_space<vmem>>, vector<1x1x128xf32>
    %378 = vector.shape_cast %377 : vector<1x1x128xf32> to vector<1x128xf32>
    %c1_131 = arith.constant 1 : index
    %c0_132 = arith.constant 0 : index
    %c0_133 = arith.constant 0 : index
    %379 = vector.load %arg11[%c1_131, %c0_132, %c0_133] : memref<2x1x128xf32, #tpu.memory_space<vmem>>, vector<1x1x128xf32>
    %380 = vector.shape_cast %379 : vector<1x1x128xf32> to vector<1x128xf32>
    %cst_134 = arith.constant dense<0.000000e+00> : vector<16xf32>
    %381 = vector.multi_reduction <add>, %376, %cst_134 [1] : vector<16x128xf32> to vector<16xf32>
    %382 = vector.shape_cast %381 : vector<16xf32> to vector<16x1xf32>
    %cst_135 = arith.constant 1.280000e+02 : f32
    %383 = vector.broadcast %cst_135 : f32 to vector<16x1xf32>
    %384 = arith.divf %382, %383 : vector<16x1xf32>
    %385 = vector.broadcast %384 : vector<16x1xf32> to vector<16x128xf32>
    %386 = arith.subf %376, %385 : vector<16x128xf32>
    %387 = arith.mulf %386, %386 : vector<16x128xf32>
    %cst_136 = arith.constant dense<0.000000e+00> : vector<16xf32>
    %388 = vector.multi_reduction <add>, %387, %cst_136 [1] : vector<16x128xf32> to vector<16xf32>
    %389 = vector.shape_cast %388 : vector<16xf32> to vector<16x1xf32>
    %cst_137 = arith.constant 1.280000e+02 : f32
    %390 = vector.broadcast %cst_137 : f32 to vector<16x1xf32>
    %391 = arith.divf %389, %390 : vector<16x1xf32>
    %392 = vector.broadcast %384 : vector<16x1xf32> to vector<16x128xf32>
    %393 = arith.subf %376, %392 : vector<16x128xf32>
    %cst_138 = arith.constant 9.99999996E-13 : f32
    %394 = vector.broadcast %cst_138 : f32 to vector<16x1xf32>
    %395 = arith.addf %391, %394 : vector<16x1xf32>
    %396 = math.rsqrt %395 : vector<16x1xf32>
    %397 = vector.broadcast %396 : vector<16x1xf32> to vector<16x128xf32>
    %398 = arith.mulf %393, %397 : vector<16x128xf32>
    %399 = vector.broadcast %378 : vector<1x128xf32> to vector<16x128xf32>
    %400 = arith.mulf %398, %399 : vector<16x128xf32>
    %401 = vector.broadcast %380 : vector<1x128xf32> to vector<16x128xf32>
    %402 = arith.addf %400, %401 : vector<16x128xf32>
    %403 = arith.truncf %402 : vector<16x128xf32> to vector<16x128xbf16>
    %c1_139 = arith.constant 1 : index
    %c0_140 = arith.constant 0 : index
    %c0_141 = arith.constant 0 : index
    %404 = vector.load %arg12[%c1_139, %c0_140, %c0_141] : memref<2x128x512xbf16, #tpu.memory_space<vmem>>, vector<1x128x512xbf16>
    %405 = vector.shape_cast %404 : vector<1x128x512xbf16> to vector<128x512xbf16>
    %cst_142 = arith.constant dense<0.000000e+00> : vector<16x512xf32>
    %406 = tpu.matmul %403, %405, %cst_142 {dimension_numbers = #tpu.dot_dimension_numbers<[1], [0], [0], [1], [0, 0, 1, 1], [], []>} : vector<16x128xbf16>, vector<128x512xbf16>, vector<16x512xf32> -> vector<16x512xf32>
    %c1_143 = arith.constant 1 : index
    %c0_144 = arith.constant 0 : index
    %c0_145 = arith.constant 0 : index
    %407 = vector.load %arg13[%c1_143, %c0_144, %c0_145] : memref<2x1x512xf32, #tpu.memory_space<vmem>>, vector<1x1x512xf32>
    %408 = vector.shape_cast %407 : vector<1x1x512xf32> to vector<1x512xf32>
    %409 = vector.broadcast %408 : vector<1x512xf32> to vector<16x512xf32>
    %410 = arith.addf %406, %409 : vector<16x512xf32>
    %cst_146 = arith.constant 5.000000e-01 : f32
    %411 = vector.broadcast %cst_146 : f32 to vector<16x512xf32>
    %412 = arith.mulf %411, %410 : vector<16x512xf32>
    %cst_147 = arith.constant 4.471500e-02 : f32
    %413 = vector.broadcast %cst_147 : f32 to vector<16x512xf32>
    %414 = arith.mulf %413, %410 : vector<16x512xf32>
    %415 = arith.mulf %414, %410 : vector<16x512xf32>
    %416 = arith.mulf %415, %410 : vector<16x512xf32>
    %417 = arith.addf %410, %416 : vector<16x512xf32>
    %cst_148 = arith.constant 0.797884583 : f32
    %418 = vector.broadcast %cst_148 : f32 to vector<16x512xf32>
    %419 = arith.mulf %418, %417 : vector<16x512xf32>
    %420 = math.tanh %419 : vector<16x512xf32>
    %cst_149 = arith.constant 1.000000e+00 : f32
    %421 = vector.broadcast %cst_149 : f32 to vector<16x512xf32>
    %422 = arith.addf %421, %420 : vector<16x512xf32>
    %423 = arith.mulf %412, %422 : vector<16x512xf32>
    %424 = arith.truncf %423 : vector<16x512xf32> to vector<16x512xbf16>
    %c1_150 = arith.constant 1 : index
    %c0_151 = arith.constant 0 : index
    %c0_152 = arith.constant 0 : index
    %425 = vector.load %arg14[%c1_150, %c0_151, %c0_152] : memref<2x512x128xbf16, #tpu.memory_space<vmem>>, vector<1x512x128xbf16>
    %426 = vector.shape_cast %425 : vector<1x512x128xbf16> to vector<512x128xbf16>
    %cst_153 = arith.constant dense<0.000000e+00> : vector<16x128xf32>
    %427 = tpu.matmul %424, %426, %cst_153 {dimension_numbers = #tpu.dot_dimension_numbers<[1], [0], [0], [1], [0, 0, 1, 1], [], []>} : vector<16x512xbf16>, vector<512x128xbf16>, vector<16x128xf32> -> vector<16x128xf32>
    %c1_154 = arith.constant 1 : index
    %c0_155 = arith.constant 0 : index
    %c0_156 = arith.constant 0 : index
    %428 = vector.load %arg15[%c1_154, %c0_155, %c0_156] : memref<2x1x128xf32, #tpu.memory_space<vmem>>, vector<1x1x128xf32>
    %429 = vector.shape_cast %428 : vector<1x1x128xf32> to vector<1x128xf32>
    %430 = vector.broadcast %429 : vector<1x128xf32> to vector<16x128xf32>
    %431 = arith.addf %427, %430 : vector<16x128xf32>
    %432 = arith.addf %402, %431 : vector<16x128xf32>
    %c1_157 = arith.constant 1 : index
    %c0_158 = arith.constant 0 : index
    %c0_159 = arith.constant 0 : index
    %433 = vector.load %arg16[%c1_157, %c0_158, %c0_159] : memref<2x1x128xf32, #tpu.memory_space<vmem>>, vector<1x1x128xf32>
    %434 = vector.shape_cast %433 : vector<1x1x128xf32> to vector<1x128xf32>
    %c1_160 = arith.constant 1 : index
    %c0_161 = arith.constant 0 : index
    %c0_162 = arith.constant 0 : index
    %435 = vector.load %arg17[%c1_160, %c0_161, %c0_162] : memref<2x1x128xf32, #tpu.memory_space<vmem>>, vector<1x1x128xf32>
    %436 = vector.shape_cast %435 : vector<1x1x128xf32> to vector<1x128xf32>
    %cst_163 = arith.constant dense<0.000000e+00> : vector<16xf32>
    %437 = vector.multi_reduction <add>, %432, %cst_163 [1] : vector<16x128xf32> to vector<16xf32>
    %438 = vector.shape_cast %437 : vector<16xf32> to vector<16x1xf32>
    %cst_164 = arith.constant 1.280000e+02 : f32
    %439 = vector.broadcast %cst_164 : f32 to vector<16x1xf32>
    %440 = arith.divf %438, %439 : vector<16x1xf32>
    %441 = vector.broadcast %440 : vector<16x1xf32> to vector<16x128xf32>
    %442 = arith.subf %432, %441 : vector<16x128xf32>
    %443 = arith.mulf %442, %442 : vector<16x128xf32>
    %cst_165 = arith.constant dense<0.000000e+00> : vector<16xf32>
    %444 = vector.multi_reduction <add>, %443, %cst_165 [1] : vector<16x128xf32> to vector<16xf32>
    %445 = vector.shape_cast %444 : vector<16xf32> to vector<16x1xf32>
    %cst_166 = arith.constant 1.280000e+02 : f32
    %446 = vector.broadcast %cst_166 : f32 to vector<16x1xf32>
    %447 = arith.divf %445, %446 : vector<16x1xf32>
    %448 = vector.broadcast %440 : vector<16x1xf32> to vector<16x128xf32>
    %449 = arith.subf %432, %448 : vector<16x128xf32>
    %cst_167 = arith.constant 9.99999996E-13 : f32
    %450 = vector.broadcast %cst_167 : f32 to vector<16x1xf32>
    %451 = arith.addf %447, %450 : vector<16x1xf32>
    %452 = math.rsqrt %451 : vector<16x1xf32>
    %453 = vector.broadcast %452 : vector<16x1xf32> to vector<16x128xf32>
    %454 = arith.mulf %449, %453 : vector<16x128xf32>
    %455 = vector.broadcast %434 : vector<1x128xf32> to vector<16x128xf32>
    %456 = arith.mulf %454, %455 : vector<16x128xf32>
    %457 = vector.broadcast %436 : vector<1x128xf32> to vector<16x128xf32>
    %458 = arith.addf %456, %457 : vector<16x128xf32>
    %459 = vector.shape_cast %458 : vector<16x128xf32> to vector<2x8x128xf32>
    %c0_168 = arith.constant 0 : index
    %c0_169 = arith.constant 0 : index
    %c0_170 = arith.constant 0 : index
    %460 = vector.load %arg3[%c0_168, %c0_169, %c0_170] : memref<2x1x8xf32, #tpu.memory_space<vmem>>, vector<2x1x8xf32>
    %461 = vector.shape_cast %460 : vector<2x1x8xf32> to vector<2x8xf32>
    %462 = vector.shape_cast %461 : vector<2x8xf32> to vector<2x8x1xf32>
    %463 = vector.broadcast %462 : vector<2x8x1xf32> to vector<2x8x128xf32>
    %464 = arith.mulf %459, %463 : vector<2x8x128xf32>
    %cst_171 = arith.constant dense<0.000000e+00> : vector<2x128xf32>
    %465 = vector.multi_reduction <add>, %464, %cst_171 [1] : vector<2x8x128xf32> to vector<2x128xf32>
    %466 = arith.truncf %465 : vector<2x128xf32> to vector<2x128xbf16>
    %c0_172 = arith.constant 0 : index
    %c0_173 = arith.constant 0 : index
    %467 = vector.load %arg18[%c0_172, %c0_173] : memref<128x256xbf16, #tpu.memory_space<vmem>>, vector<128x256xbf16>
    %cst_174 = arith.constant dense<0.000000e+00> : vector<2x256xf32>
    %468 = tpu.matmul %466, %467, %cst_174 {dimension_numbers = #tpu.dot_dimension_numbers<[1], [0], [0], [1], [0, 0, 1, 1], [], []>} : vector<2x128xbf16>, vector<128x256xbf16>, vector<2x256xf32> -> vector<2x256xf32>
    %c0_175 = arith.constant 0 : index
    %c0_176 = arith.constant 0 : index
    %469 = vector.load %arg19[%c0_175, %c0_176] : memref<1x256xf32, #tpu.memory_space<vmem>>, vector<1x256xf32>
    %470 = vector.broadcast %469 : vector<1x256xf32> to vector<2x256xf32>
    %471 = arith.addf %468, %470 : vector<2x256xf32>
    %c0_177 = arith.constant 0 : index
    %c0_178 = arith.constant 0 : index
    %c0_179 = arith.constant 0 : index
    %472 = vector.load %arg20[%c0_177, %c0_178, %c0_179] : memref<1x2x256xf32, #tpu.memory_space<vmem>>, vector<1x2x256xf32>
    %473 = vector.shape_cast %472 : vector<1x2x256xf32> to vector<2x256xf32>
    %474 = vector.shape_cast %471 : vector<2x256xf32> to vector<1x2x256xf32>
    tpu.vector_store %arg20[%c0_177, %c0_178, %c0_179], %474 {strides = array<i32>} : memref<1x2x256xf32, #tpu.memory_space<vmem>>, vector<1x2x256xf32>,
    return
  }
  func.func @transform_0(%arg0: i32) -> (i32, i32, i32) {
    %c0_i32 = arith.constant 0 : i32
    %c0_i32_0 = arith.constant 0 : i32
    %c0_i32_1 = arith.constant 0 : i32
    return %arg0, %c0_i32, %c0_i32_0 : i32, i32, i32
  }
  func.func @transform_1(%arg0: i32) -> (i32, i32, i32) {
    %c0_i32 = arith.constant 0 : i32
    %c0_i32_0 = arith.constant 0 : i32
    %c0_i32_1 = arith.constant 0 : i32
    return %arg0, %c0_i32, %c0_i32_0 : i32, i32, i32
  }
  func.func @transform_2(%arg0: i32) -> (i32, i32, i32) {
    %c0_i32 = arith.constant 0 : i32
    %c0_i32_0 = arith.constant 0 : i32
    %c0_i32_1 = arith.constant 0 : i32
    return %arg0, %c0_i32, %c0_i32_0 : i32, i32, i32
  }
  func.func @transform_3(%arg0: i32) -> (i32, i32) {
    %c0_i32 = arith.constant 0 : i32
    %c0_i32_0 = arith.constant 0 : i32
    %c0_i32_1 = arith.constant 0 : i32
    return %c0_i32, %c0_i32_0 : i32, i32
  }
  func.func @transform_4(%arg0: i32) -> (i32, i32) {
    %c0_i32 = arith.constant 0 : i32
    %c0_i32_0 = arith.constant 0 : i32
    %c0_i32_1 = arith.constant 0 : i32
    return %c0_i32, %c0_i32_0 : i32, i32
  }
  func.func @transform_5(%arg0: i32) -> (i32, i32, i32) {
    %c0_i32 = arith.constant 0 : i32
    %c0_i32_0 = arith.constant 0 : i32
    %c0_i32_1 = arith.constant 0 : i32
    %c0_i32_2 = arith.constant 0 : i32
    return %c0_i32, %c0_i32_0, %c0_i32_1 : i32, i32, i32
  }
  func.func @transform_6(%arg0: i32) -> (i32, i32, i32) {
    %c0_i32 = arith.constant 0 : i32
    %c0_i32_0 = arith.constant 0 : i32
    %c0_i32_1 = arith.constant 0 : i32
    %c0_i32_2 = arith.constant 0 : i32
    return %c0_i32, %c0_i32_0, %c0_i32_1 : i32, i32, i32
  }
  func.func @transform_7(%arg0: i32) -> (i32, i32, i32) {
    %c0_i32 = arith.constant 0 : i32
    %c0_i32_0 = arith.constant 0 : i32
    %c0_i32_1 = arith.constant 0 : i32
    %c0_i32_2 = arith.constant 0 : i32
    return %c0_i32, %c0_i32_0, %c0_i32_1 : i32, i32, i32
  }
  func.func @transform_8(%arg0: i32) -> (i32, i32, i32) {
    %c0_i32 = arith.constant 0 : i32
    %c0_i32_0 = arith.constant 0 : i32
    %c0_i32_1 = arith.constant 0 : i32
    %c0_i32_2 = arith.constant 0 : i32
    return %c0_i32, %c0_i32_0, %c0_i32_1 : i32, i32, i32
  }
  func.func @transform_9(%arg0: i32) -> (i32, i32, i32) {
    %c0_i32 = arith.constant 0 : i32
    %c0_i32_0 = arith.constant 0 : i32
    %c0_i32_1 = arith.constant 0 : i32
    %c0_i32_2 = arith.constant 0 : i32
    return %c0_i32, %c0_i32_0, %c0_i32_1 : i32, i32, i32
  }
  func.func @transform_10(%arg0: i32) -> (i32, i32, i32) {
    %c0_i32 = arith.constant 0 : i32
    %c0_i32_0 = arith.constant 0 : i32
    %c0_i32_1 = arith.constant 0 : i32
    %c0_i32_2 = arith.constant 0 : i32
    return %c0_i32, %c0_i32_0, %c0_i32_1 : i32, i32, i32
  }
  func.func @transform_11(%arg0: i32) -> (i32, i32, i32) {
    %c0_i32 = arith.constant 0 : i32
    %c0_i32_0 = arith.constant 0 : i32
    %c0_i32_1 = arith.constant 0 : i32
    %c0_i32_2 = arith.constant 0 : i32
    return %c0_i32, %c0_i32_0, %c0_i32_1 : i32, i32, i32
  }
  func.func @transform_12(%arg0: i32) -> (i32, i32, i32) {
    %c0_i32 = arith.constant 0 : i32
    %c0_i32_0 = arith.constant 0 : i32
    %c0_i32_1 = arith.constant 0 : i32
    %c0_i32_2 = arith.constant 0 : i32
    return %c0_i32, %c0_i32_0, %c0_i32_1 : i32, i32, i32
  }
  func.func @transform_13(%arg0: i32) -> (i32, i32, i32) {
    %c0_i32 = arith.constant 0 : i32
    %c0_i32_0 = arith.constant 0 : i32
    %c0_i32_1 = arith.constant 0 : i32
    %c0_i32_2 = arith.constant 0 : i32
    return %c0_i32, %c0_i32_0, %c0_i32_1 : i32, i32, i32
  }
  func.func @transform_14(%arg0: i32) -> (i32, i32, i32) {
    %c0_i32 = arith.constant 0 : i32
    %c0_i32_0 = arith.constant 0 : i32
    %c0_i32_1 = arith.constant 0 : i32
    %c0_i32_2 = arith.constant 0 : i32
    return %c0_i32, %c0_i32_0, %c0_i32_1 : i32, i32, i32
  }
  func.func @transform_15(%arg0: i32) -> (i32, i32, i32) {
    %c0_i32 = arith.constant 0 : i32
    %c0_i32_0 = arith.constant 0 : i32
    %c0_i32_1 = arith.constant 0 : i32
    %c0_i32_2 = arith.constant 0 : i32
    return %c0_i32, %c0_i32_0, %c0_i32_1 : i32, i32, i32
  }
  func.func @transform_16(%arg0: i32) -> (i32, i32, i32) {
    %c0_i32 = arith.constant 0 : i32
    %c0_i32_0 = arith.constant 0 : i32
    %c0_i32_1 = arith.constant 0 : i32
    %c0_i32_2 = arith.constant 0 : i32
    return %c0_i32, %c0_i32_0, %c0_i32_1 : i32, i32, i32
  }
  func.func @transform_17(%arg0: i32) -> (i32, i32) {
    %c0_i32 = arith.constant 0 : i32
    %c0_i32_0 = arith.constant 0 : i32
    %c0_i32_1 = arith.constant 0 : i32
    return %c0_i32, %c0_i32_0 : i32, i32
  }
  func.func @transform_18(%arg0: i32) -> (i32, i32) {
    %c0_i32 = arith.constant 0 : i32
    %c0_i32_0 = arith.constant 0 : i32
    %c0_i32_1 = arith.constant 0 : i32
    return %c0_i32, %c0_i32_0 : i32, i32
  }
  func.func @transform_19(%arg0: i32) -> (i32, i32, i32) {
    %c0_i32 = arith.constant 0 : i32
    %c0_i32_0 = arith.constant 0 : i32
    %c0_i32_1 = arith.constant 0 : i32
    return %arg0, %c0_i32, %c0_i32_0 : i32, i32, i32
  }
}

</mosaic_0001>

<bundles_post_ra>
// kernel: bertcom2_forward.1
= control target key start
LH: loop header
LB: loop body
LE: loop exit
PB: predicated region body
PF: predicated region fallthrough
CT: control target
= control target key end

     0   :  { %s8005_s0 = inlined_call_operand.vmem [shape: f32[4,8,128], index: 0, kind: input, shape index: {}]   ;;  %s8006_s1 = inlined_call_operand.vmem [shape: f32[4,1,8], index: 1, kind: input, shape index: {}]   ;;  %s8007_s2 = inlined_call_operand.vmem [shape: f32[4,1,8], index: 2, kind: input, shape index: {}]   ;;  %s8008_s3 = inlined_call_operand.vmem [shape: f32[1,128], index: 3, kind: input, shape index: {}]   ;;  %s8009_s4 = inlined_call_operand.vmem [shape: f32[1,128], index: 4, kind: input, shape index: {}]   ;;  %s8010_s5 = inlined_call_operand.vmem [shape: bf16[2,128,384], index: 5, kind: input, shape index: {}]   ;;  %s8011_s6 = inlined_call_operand.vmem [shape: f32[2,1,384], index: 6, kind: input, shape index: {}]   ;;  %s8012_s7 = inlined_call_operand.hbm [shape: bf16[2,128,128], index: 7, kind: input, shape index: {}]   ;;  %s8013_s8 = inlined_call_operand.vmem [shape: f32[2,1,128], index: 8, kind: input, shape index: {}]   ;;  %s8014_s9 = inlined_call_operand.vmem [shape: f32[2,1,128], index: 9, kind: input, shape index: {}]   ;;  %s8015_s10 = inlined_call_operand.vmem [shape: f32[2,1,128], index: 10, kind: input, shape index: {}]   ;;  %s8016_s11 = inlined_call_operand.hbm [shape: bf16[2,128,512], index: 11, kind: input, shape index: {}]   ;;  %s8017_s12 = inlined_call_operand.vmem [shape: f32[2,1,512], index: 12, kind: input, shape index: {}]   ;;  %s8018_s13 = inlined_call_operand.hbm [shape: bf16[2,512,128], index: 13, kind: input, shape index: {}]   ;;  %s8019_s14 = inlined_call_operand.vmem [shape: f32[2,1,128], index: 14, kind: input, shape index: {}]   ;;  %s8020_s15 = inlined_call_operand.vmem [shape: f32[2,1,128], index: 15, kind: input, shape index: {}]   ;;  %s8021_s16 = inlined_call_operand.vmem [shape: f32[2,1,128], index: 16, kind: input, shape index: {}]   ;;  %s8022_s17 = inlined_call_operand.hbm [shape: bf16[128,256], index: 17, kind: input, shape index: {}]   ;;  %s8023_s18 = inlined_call_operand.vmem [shape: f32[1,256], index: 18, kind: input, shape index: {}]   ;;  %s8024_s19 = inlined_call_operand.vmem [shape: f32[2,2,256], index: 19, kind: output, shape index: {}]  }
   0x1   :  { %8029 = sst [smem:[#allocation13_spill]] %s8005_s0 }
   0x2   :  { %8030 = sst [smem:[#allocation14_spill]] %s8006_s1 }
   0x3   :  { %8031 = sst [smem:[#allocation15_spill]] %s8007_s2 }
   0x4   :  { %8032 = sst [smem:[#allocation16_spill]] %s8008_s3 }
   0x5   :  { %8033 = sst [smem:[#allocation17_spill]] %s8016_s11 }
   0x6   :  { %8034 = sst [smem:[#allocation18_spill]] %s8021_s16 }
   0x7   :  { %8035 = sst [smem:[#allocation19_spill]] %s8023_s18 }
   0x8   :  { %8036 = sst [smem:[#allocation20_spill]] %s8024_s19 }
   0x9   :  { %24 = vsyncpa [#allocation3], 0 }
   0xa   :  { %25 = vsyncpa [#allocation5], 0 }
   0xb   :  { %26 = vsyncpa [#allocation8], 0  ;;  %s7042_s0 = smov 0  }
   0xc LB: > { %8037 = sst [smem:[#allocation12_spill]] %s6924_s0  ;;  %s6926_s30 = smov [#allocation4]   ;;  %s6924_s0 = sphi %s7042_s0, %s32_s0  }
   0xd   : > { %s523_s20 = sshll.u32 %s6926_s30, 4  ;;  %s7048_s21 = sadd.s32 4294967295, %s6924_s0   ;;  %s7053_s20 = int_to_ptr.vmem [resolvable:$true] %s523_s20 }
   0xe   : > { %p5534_p0 = scmp.ge.s32.totalorder %s6924_s0, 1  ;;  %p477_p1 = scmp.lt.s32.totalorder %s6924_s0, 3 }
   0xf   : > { %p8027_p2 = scmp.eq.s32.totalorder %s7048_s21, 0  ;;  %s6927_s22 = smov [#allocation2]  }
  0x10   : > { %p7055_p3 = pnand %p5534_p0, %p477_p1  ;;  %s501_s2 = sshll.u32 %s6927_s22, 4  ;;  %s7061_s2 = int_to_ptr.vmem [resolvable:$true] %s501_s2 }
  0x11   : > { %s6928_s24 = smov [#allocation6]   ;;  %s8040_s11 = sld [smem:[#allocation17_spill]] }
  0x12   : > { %s8038_s1 = scalar_select %p7055_p3, 1, 0 }
  0x13   : > { %p6367_p4 = pneg %p7055_p3  ;;  %s7069_s25 = sshll.u32 %s6928_s24, 4  ;;  %s540_s25 = int_to_ptr.vmem [resolvable:$true] %s7069_s25 }
  0x15   : > { %p7065_p5 = pnand %p8027_p2, %p6367_p4 }
  0x17   : > { %s6794_s27 = scalar_lea.hbm %s8040_s11, 8192  ;;  %p7079_p7 = pneg %p7065_p5 }
  0x18   : > { %p6795_p6 = scmp.ne.s32.totalorder %s8040_s11, %s6794_s27  ;;  %p6801_p10 = scmp.lt.u32.totalorder %s6794_s27, %s8040_s11 }
  0x1a   : > { %p6797_p8 = pnand %p7079_p7, %p6795_p6 }
  0x1c   : > { %p6798_p9 = pneg %p6797_p8 }
  0x1e   : > { %p6803_p11 = pnand %p6801_p10, %p6798_p9 }
  0x20   : > { %6806 = shalt.err (!%p6803_p11)
}
  0x21   : > { %s6807_s3 = scalar_lea.vmem %s7053_s20, 8192  ;;  %p6815_p1 = scmp.lt.s32.totalorder %s7053_s20, %s7053_s20 }
  0x22   : > { %p6808_p12 = scmp.ne.s32.totalorder %s7053_s20, %s6807_s3  ;;  %p6816_p4 = scmp.lt.s32.totalorder %s6807_s3, %s6807_s3 }
  0x24   : > { %p6810_p13 = pnand %p6808_p12, %p7079_p7  ;;  %p6817_p6 = por %p6816_p4, %p6815_p1 }
  0x26   : > { %p6811_p0 = pneg %p6810_p13 }
  0x28   : > { %p6818_p8 = pnand %p6817_p6, %p6811_p0 }
  0x2a   : > { %6821 = shalt.err (!%p6818_p8)
}
  0x2b   : > { %s6929_s26 = smov 256   ;;  %s6930_s27 = smov 16  }
  0x2c   : > { %6373 = dma.hbm_to_vmem [thread:$0]  (!%p7065_p5), %s8040_s11, 8192, %s7053_s20, [#allocation5], %s6929_s26, %s6929_s26, %s6930_s27  }
  0x2d   : > { %s6822_s0 = scalar_lea.hbm %s8012_s7, 2048 }
  0x2e   : > { %p6823_p9 = scmp.ne.s32.totalorder %s8012_s7, %s6822_s0  ;;  %p6829_p12 = scmp.lt.u32.totalorder %s6822_s0, %s8012_s7 }
  0x30   : > { %p6825_p10 = pnand %p6823_p9, %p7079_p7 }
  0x32   : > { %p6826_p11 = pneg %p6825_p10 }
  0x34   : > { %p6831_p13 = pnand %p6829_p12, %p6826_p11 }
  0x36   : > { %6834 = shalt.err (!%p6831_p13)
}
  0x37   : > { %s6835_s20 = scalar_lea.vmem %s7061_s2, 2048  ;;  %p6843_p6 = scmp.lt.s32.totalorder %s7061_s2, %s7061_s2 }
  0x38   : > { %p6836_p0 = scmp.ne.s32.totalorder %s7061_s2, %s6835_s20  ;;  %p6844_p8 = scmp.lt.s32.totalorder %s6835_s20, %s6835_s20 }
  0x3a   : > { %p6838_p1 = pnand %p6836_p0, %p7079_p7  ;;  %p6845_p9 = por %p6844_p8, %p6843_p6 }
  0x3c   : > { %p6839_p4 = pneg %p6838_p1 }
  0x3e   : > { %p6846_p10 = pnand %p6845_p9, %p6839_p4 }
  0x40   : > { %6849 = shalt.err (!%p6846_p10)
}
  0x41   : > { %s6931_s18 = smov 64   ;;  %s6932_s16 = smov 4  }
  0x42   : > { %6370 = dma.hbm_to_vmem [thread:$0]  (!%p7065_p5), %s8012_s7, 2048, %s7061_s2, [#allocation3], %s6931_s18, %s6931_s18, %s6932_s16  }
  0x43   : > { %s6933_s26 = smov [#allocation7]   ;;  %s6850_s22 = scalar_lea.hbm %s8018_s13, 8192 }
  0x44   : > { %s561_s27 = sshll.u32 %s6933_s26, 4  ;;  %p6851_p11 = scmp.ne.s32.totalorder %s8018_s13, %s6850_s22  ;;  %s562_s27 = int_to_ptr.vmem [resolvable:$true] %s561_s27 }
  0x45   : > { %p6857_p0 = scmp.lt.u32.totalorder %s6850_s22, %s8018_s13 }
  0x46   : > { %p6853_p12 = pnand %p6851_p11, %p7079_p7 }
  0x48   : > { %p6854_p13 = pneg %p6853_p12 }
  0x4a   : > { %p6859_p1 = pnand %p6857_p0, %p6854_p13 }
  0x4c   : > { %6862 = shalt.err (!%p6859_p1)
}
  0x4d   : > { %s6863_s2 = scalar_lea.vmem %s540_s25, 8192  ;;  %p6871_p9 = scmp.lt.s32.totalorder %s540_s25, %s540_s25 }
  0x4e   : > { %p6864_p4 = scmp.ne.s32.totalorder %s540_s25, %s6863_s2  ;;  %p6872_p10 = scmp.lt.s32.totalorder %s6863_s2, %s6863_s2 }
  0x50   : > { %p6866_p6 = pnand %p6864_p4, %p7079_p7  ;;  %p6873_p2 = por %p6872_p10, %p6871_p9 }
  0x52   : > { %p6867_p8 = pneg %p6866_p6 }
  0x54   : > { %p6874_p3 = pnand %p6873_p2, %p6867_p8 }
  0x56   : > { %6877 = shalt.err (!%p6874_p3)
}
  0x57   : > { %6376 = dma.hbm_to_vmem [thread:$0]  (!%p7065_p5), %s8018_s13, 8192, %s540_s25, [#allocation5], %s6931_s18, %s6931_s18, %s6932_s16  }
  0x58   : > { %s6878_s28 = scalar_lea.hbm %s8022_s17, 2048 }
  0x59   : > { %p6879_p11 = scmp.ne.s32.totalorder %s8022_s17, %s6878_s28  ;;  %p6885_p3 = scmp.lt.u32.totalorder %s6878_s28, %s8022_s17 }
  0x5b   : > { %p6881_p12 = pnand %p6879_p11, %p7079_p7 }
  0x5d   : > { %p6882_p2 = pneg %p6881_p12 }
  0x5f   : > { %p6887_p13 = pnand %p6885_p3, %p6882_p2 }
  0x61   : > { %6890 = shalt.err (!%p6887_p13)
}
  0x62   : > { %s6891_s20 = scalar_lea.vmem %s562_s27, 2048  ;;  %p6899_p6 = scmp.lt.s32.totalorder %s562_s27, %s562_s27 }
  0x63   : > { %p6892_p0 = scmp.ne.s32.totalorder %s562_s27, %s6891_s20  ;;  %p6900_p8 = scmp.lt.s32.totalorder %s6891_s20, %s6891_s20 }
  0x65   : > { %p6894_p1 = pnand %p6892_p0, %p7079_p7  ;;  %p6901_p9 = por %p6900_p8, %p6899_p6 }
  0x67   : > { %p6895_p4 = pneg %p6894_p1 }
  0x69   : > { %p6902_p10 = pnand %p6901_p9, %p6895_p4 }
  0x6b   : > { %6905 = shalt.err (!%p6902_p10)
}
  0x6c   : > { %s6934_s25 = smov 128   ;;  %s6935_s18 = smov 8  }
  0x6d   : > { %6379 = dma.hbm_to_vmem [thread:$0]  (!%p7065_p5), %s8022_s17, 2048, %s562_s27, [#allocation8], %s6934_s25, %s6934_s25, %s6935_s18  }
  0x6e   : > { %p8042_p11 = scmp.ne.s32.totalorder %s8038_s1, 0 }
  0x6f   : > { %p8043_p12 = scmp.eq.s32.totalorder (!%p8042_p11), %s7048_s21, 0 }
  0x70   : > { %605 = sbr.rel (%p8042_p11) target bundleno = 9372 (0x249c), region = 96 }
  0x77   : > { %6911 = dma.done.wait (%p8043_p12), [#allocation3], 2048   ;;  %p8044_p7 = pmov %p8043_p12 }
  0x79   : > { %6913 = vsyncadd (%p8044_p7), [#allocation3], 4294965248  ;;  %p8045_p2 = pmov %p8044_p7 }
  0x7b   : > { %6915 = dma.done.wait (%p8045_p2), [#allocation5], 16384   ;;  %p8046_p3 = pmov %p8045_p2 }
  0x7c   : > { %p8047_p13 = pmov %p8045_p2 }
  0x7d   : > { %6917 = vsyncadd (%p8046_p3), [#allocation5], 4294950912 }
  0x7e   : > { %6919 = dma.done.wait (%p8047_p13), [#allocation8], 2048   ;;  %p8048_p5 = pmov %p8045_p2 }
  0x7f   : > { %s5545_s1 = sshll.u32 %s7048_s21, 1  ;;  %s8049_s19 = sld [smem:[#allocation13_spill]]  ;;  %v6412_v2 = vld [vmem:[%s8010_s5 + $0x4] ss:$12 sps:$4 sm:$0xff]   ;;  %v6414_v3 = vld [vmem:[%s8010_s5] ss:$12 sps:$4 sm:$0xff]   ;;  %v783_v53 = vlaneseq }
  0x80   : > { %6921 = vsyncadd (%p8048_p5), [#allocation8], 4294965248  ;;  %p682_p0 = scmp.lt.s32.totalorder %s5545_s1, 3  ;;  %v6936_v4 = vmov 0.0   ;;  %v6415_v5 = vld [vmem:[%s8010_s5 + $0x8] ss:$12 sps:$4 sm:$0xff]   ;;  %926 = vmatprep.subr.bf16.mxu0 %v6412_v2 }
  0x81   : > { %6055 = vmatprep.subr.bf16.mxu1 %v6936_v4  ;;  %v6416_v6 = vld [vmem:[%s8010_s5 + $0x1c] ss:$12 sps:$4 sm:$0xff]   ;;  %927 = vmatpush1.bf16.msra.mxu0 %v6414_v3  ;;  %v6418_v15 = vld [vmem:[%s8010_s5 + $0x18] ss:$12 sps:$4 sm:$0xff]   ;;  %v6419_v16 = vld [vmem:[%s8010_s5 + $0x20] ss:$12 sps:$4 sm:$0xff]  }
  0x82   : > { %s8058_s1 = smov (!%p682_p0, %s5545_s1), 3  ;;  %6056 = vmatpush3.bf16.msra.mxu1 %v6415_v5  ;;  %928 = vmatprep.subr.bf16.mxu0 %v6416_v6  ;;  %v6420_v17 = vld [vmem:[%s8010_s5 + $0x34] ss:$12 sps:$4 sm:$0xff]   ;;  %v6422_v18 = vld [vmem:[%s8010_s5 + $0x30] ss:$12 sps:$4 sm:$0xff]   ;;  %v6937_v30 = vmov 0  }
  0x83   : > { %s5546_s23 = sshll.u32 %s8058_s1, 3  ;;  %6057 = vmatprep.subr.bf16.mxu1 %v6936_v4  ;;  %v6423_v19 = vld [vmem:[%s8010_s5 + $0x38] ss:$12 sps:$4 sm:$0xff]   ;;  %v6426_v21 = vld [vmem:[%s8010_s5 + $0x48] ss:$12 sps:$4 sm:$0xff]   ;;  %958 = vmatprep.mubr.bf16.mxu0 %v6937_v30  ;;  %vm6938_vm0 = vmmov 0  }
  0x84   : > { %v6424_v20 = vld [vmem:[%s8010_s5 + $0x4c] ss:$12 sps:$4 sm:$0xff]   ;;  %v6427_v22 = vld [vmem:[%s8010_s5 + $0x50] ss:$12 sps:$4 sm:$0xff]   ;;  %v6431_v25 = vld [vmem:[%s8010_s5 + $0x68] ss:$12 sps:$4 sm:$0xff]   ;;  %6071 = vmatprep.mubr.msk.bf16.mxu1 %vm6938_vm0, %v6936_v4 }
  0x85   : > { %s685_s0 = scalar_lea.vmem %s8049_s19, %s5546_s23  ;;  %929 = vmatpush1.bf16.msra.mxu0 %v6418_v15  ;;  %v6428_v23 = vld [vmem:[%s8010_s5 + $0x64] ss:$12 sps:$4 sm:$0xff]   ;;  %v6430_v24 = vld [vmem:[%s8010_s5 + $0x60] ss:$12 sps:$4 sm:$0xff]   ;;  %v6432_v26 = vld [vmem:[%s8010_s5 + $0x7c] ss:$12 sps:$4 sm:$0xff]  }
  0x86   : > { %v703_v0 = vld [vmem:[%s685_s0] sm:$0xff]  ;;  %v704_v1 = vld [vmem:[%s685_s0 + $0x8] sm:$0xff]  ;;  %6058 = vmatpush3.bf16.msra.mxu1 %v6419_v16  ;;  %930 = vmatprep.subr.bf16.mxu0 %v6420_v17  ;;  %v6438_v31 = vld [vmem:[%s8010_s5 + $0x90] ss:$12 sps:$4 sm:$0xff]   ;;  %s8050_s0 = sld [smem:[#allocation16_spill]]  ;;  %v7292_v54 = vshrl.u32 %v783_v53, 7 }
  0x87   : > { %707 = vadd.xlane.f32.xlu0 %v703_v0  ;;  %6059 = vmatprep.subr.bf16.mxu1 %v6936_v4  ;;  %v6434_v27 = vld [vmem:[%s8010_s5 + $0x78] ss:$12 sps:$4 sm:$0xff]   ;;  %v6435_v28 = vld [vmem:[%s8010_s5 + $0x80] ss:$12 sps:$4 sm:$0xff]   ;;  %v6442_v34 = vld [vmem:[%s8010_s5 + $0xa8] ss:$12 sps:$4 sm:$0xff]  }
  0x88   : > { %v6436_v29 = vld [vmem:[%s8010_s5 + $0x94] ss:$12 sps:$4 sm:$0xff]   ;;  %v6439_v32 = vld [vmem:[%s8010_s5 + $0x98] ss:$12 sps:$4 sm:$0xff]   ;;  %v6443_v35 = vld [vmem:[%s8010_s5 + $0xb0] ss:$12 sps:$4 sm:$0xff]  }
  0x89   : > { %931 = vmatpush1.bf16.msra.mxu0 %v6422_v18  ;;  %v6440_v33 = vld [vmem:[%s8010_s5 + $0xac] ss:$12 sps:$4 sm:$0xff]   ;;  %v5552_v48 = vld [vmem:[%s8009_s4] ss:$0 sm:$0xff]  ;;  %v7295_v55 = vsub.s32 1, %v7292_v54  ;;  %v7301_v57 = vsub.s32 2, %v7292_v54 }
  0x8a   : > { %6060 = vmatpush3.bf16.msra.mxu1 %v6423_v19  ;;  %932 = vmatprep.subr.bf16.mxu0 %v6424_v20  ;;  %v781_v56 = vld [vmem:[%s8011_s6] sm:$0x7]  ;;  %v7305_v59 = vsub.s32 0, %v7292_v54  ;;  %vm1032_vm1 = vcmask 261120   ;;  %vm1169_vm2 = vcmask 1043456   ;;  %s8051_s3 = sld [smem:[#allocation14_spill]] }
  0x8b   : > { %709 = vadd.xlane.f32.xlu0 %v704_v1  ;;  %6061 = vmatprep.subr.bf16.mxu1 %v6936_v4  ;;  %v790_v58 = vrot.slane %v781_v56, %v7295_v55  ;;  %v794_v62 = vrot.slane %v781_v56, %v7301_v57  ;;  %vm1141_vm3 = vcmask 64512   ;;  %s6939_s25 = smov 96   ;;  %s6940_s18 = smov 64   ;;  %vm5281_vm4 = vcmask 1041409  }
  0x8c   : > { %v5551_v44 = vld [vmem:[%s8050_s0] ss:$0 sm:$0xff]  ;;  %s6941_s16 = smov 32   ;;  %s8052_s22 = sld [smem:[#allocation18_spill]] }
  0x8d   : > { %933 = vmatpush1.bf16.msra.mxu0 %v6426_v21  ;;  %s8053_s28 = sld [smem:[#allocation15_spill]]  ;;  %p697_p1 = scmp.lt.s32.totalorder %s7048_s21, 1 }
  0x8e   : > { %6062 = vmatpush3.bf16.msra.mxu1 %v6427_v22  ;;  %934 = vmatprep.subr.bf16.mxu0 %v6428_v23  ;;  %s8055_s27 = sld [smem:[#allocation20_spill]] }
  0x8f   : > { %6063 = vmatprep.subr.bf16.mxu1 %v6936_v4  ;;  %s8060_s21 = smov (!%p697_p1, %s7048_s21), 1 }
  0x90   : > { %s7342_s20 = scalar_lea.vmem %s8051_s3, %s8058_s1  ;;  %s5860_s2 = sshll.u32 %s8060_s21, 2 }
  0x91   : > { %935 = vmatpush1.bf16.msra.mxu0 %v6430_v24  ;;  %v7345_v21 = vld [vmem:[%s7342_s20] ss:$0 sm:$0xff] }
  0x92   : > { %6064 = vmatpush3.bf16.msra.mxu1 %v6431_v25  ;;  %936 = vmatprep.subr.bf16.mxu0 %v6432_v26 }
  0x93   : > { %6065 = vmatprep.subr.bf16.mxu1 %v6936_v4  ;;  %s695_s29 = scalar_lea.vmem %s8053_s28, %s8058_s1 }
  0x94   : > { %s701_s19 = scalar_lea.vmem %s8055_s27, %s5860_s2 }
  0x95   : > { %937 = vmatpush1.bf16.msra.mxu0 %v6434_v27 }
  0x96   : > { %6066 = vmatpush3.bf16.msra.mxu1 %v6435_v28  ;;  %938 = vmatprep.subr.bf16.mxu0 %v6436_v29  ;;  %v7350_v29 = vld [vmem:[%s7342_s20 + $0x1] ss:$0 sm:$0xff] }
  0x97   : > { %6067 = vmatprep.subr.bf16.mxu1 %v6936_v4 }
  0x99   : > { %939 = vmatpush1.bf16.msra.mxu0 %v6438_v31 }
  0x9a   : > { %6068 = vmatpush3.bf16.msra.mxu1 %v6439_v32  ;;  %940 = vmatprep.subr.bf16.mxu0 %v6440_v33 }
  0x9b   : > { %6069 = vmatprep.subr.bf16.mxu1 %v6936_v4 }
  0x9d   : > { %941 = vmatpush1.bf16.msra.mxu0 %v6442_v34 }
  0x9e   : > { %6070 = vmatpush3.bf16.msra.mxu1 %v6443_v35  ;;  %6099 = vmatprep.subr.bf16.mxu0 %v6936_v4 }
  0x9f   : > { %6075 = vmatprep.subr.bf16.mxu1 %v6936_v4 }
 0x114   : > { %v708_v7 = vpop.xlane.xlu0 %707 }
 0x115   : > { %v712_v8 = vmul.f32 0.0078125, %v708_v7 }
 0x117   : > { %v7195_v9 = vsub.f32 %v703_v0, %v712_v8  ;;  %v786_v8 = vrot.slane %v781_v56, %v7305_v59 }
 0x118   : > { %v710_v10 = vpop.xlane.xlu0 %709 }
 0x119   : > { %v713_v11 = vmul.f32 0.0078125, %v710_v10  ;;  %v716_v12 = vmul.f32 %v7195_v9, %v7195_v9 }
 0x11b   : > { %v7199_v13 = vsub.f32 %v704_v1, %v713_v11  ;;  %718 = vadd.xlane.f32.xlu1 %v716_v12 }
 0x11d   : > { %v717_v14 = vmul.f32 %v7199_v13, %v7199_v13 }
 0x11f   : > { %720 = vadd.xlane.f32.xlu1 %v717_v14 }
 0x1a8   : > { %v719_v36 = vpop.xlane.xlu1 %718 }
 0x1a9   : > { %v722_v37 = vmul.f32 0.0078125, %v719_v36 }
 0x1ab   : > { %v724_v38 = vadd.f32 1e-12, %v722_v37 }
 0x1ac   : > { %v721_v39 = vpop.xlane.xlu1 %720 }
 0x1ad   : > { %6676 = vrsqrt.f32 %v724_v38  ;;  %v723_v40 = vmul.f32 0.0078125, %v721_v39 }
 0x1af   : > { %v725_v41 = vadd.f32 1e-12, %v723_v40 }
 0x1b1   : > { %6678 = vrsqrt.f32 %v725_v41 }
 0x1b7   : > { %v6677_v42 = vpop.eup %6676 }
 0x1b8   : > { %v728_v43 = vmul.f32 %v6677_v42, %v7195_v9 }
 0x1ba   : > { %v736_v47 = vmul.f32 %v5551_v44, %v728_v43 }
 0x1bb   : > { %v6679_v45 = vpop.eup %6678 }
 0x1bc   : > { %v729_v46 = vmul.f32 %v6679_v45, %v7199_v13  ;;  %v7282_v50 = vadd.f32 %v5552_v48, %v736_v47 }
 0x1be   : > { %v737_v49 = vmul.f32 %v5551_v44, %v729_v46 }
 0x1c0   : > { %v7284_v51 = vadd.f32 %v5552_v48, %v737_v49 }
 0x1c2   : > { %v748_v52 = vpack.c.bf16 %v7284_v51, %v7282_v50 }
 0x1c4   : > { %959 = vmatmul.mubr.bf16.vlgmr.msra.gmra.mrb[0].mxu0 %v748_v52  ;;  %6072 = vmatmul.mubr.bf16.vlgmr.msra.gmra.mrb[0].mxu1 %v748_v52 }
 0x1c5   : > { %6077 = vmatprep.mubr.msk.bf16.mxu1 %vm6938_vm0, %v6936_v4  ;;  %6101 = vmatprep.mubr.msk.bf16.mxu0 %vm6938_vm0, %v6936_v4 }
 0x297   : > { %v960_v60 = vpop.f32.mrb[0].mxu0  ;;  %v1003_v61 = vpop.f32.mrb[0].mxu1 }
 0x298   : > { %v962_v63 = vpop.f32.mrb[1].mxu0  ;;  %v6073_v0 = vpop.f32.mrb[1].mxu1  ;;  %v961_v12 = vadd.f32 %v960_v60, %v786_v8  ;;  %v1004_v15 = vadd.f32 %v1003_v61, %v794_v62 }
 0x299   : > { %v963_v1 = vadd.f32 %v962_v63, %v790_v58  ;;  %v964_v2 = vpop.f32.mrb[2].mxu0  ;;  %v1006_v3 = vpop.f32.mrb[2].mxu1 }
 0x29a   : > { %v7308_v5 = vadd.f32 %v1006_v3, %v794_v62  ;;  %v966_v6 = vpop.f32.mrb[3].mxu0  ;;  %v6074_v7 = vpop.f32.mrb[3].mxu1  ;;  %v7318_v14 = vpack.c.bf16 %v961_v12, %v961_v12  ;;  %v965_v17 = vadd.f32 %v964_v2, %v786_v8  ;;  %v7327_v18 = vpack.c.bf16 %v1004_v15, %v1004_v15 }
 0x29b   : > { %v7311_v9 = vpack.c.bf16 %v963_v1, %v963_v1  ;;  %v967_v10 = vadd.f32 %v966_v6, %v790_v58 }
 0x29c   : > { %v7329_v19 = vpack.c.bf16 %v965_v17, %v965_v17  ;;  %v1171_v20 = vsel %vm1169_vm2, %v7327_v18, 0  ;;  %v7368_v60 = vpack.c.bf16 %v7308_v5, %v7308_v5 }
 0x29d   : > { %v1037_v11 = vsel %vm1032_vm1, %v7311_v9, 0  ;;  %v7316_v13 = vpack.c.bf16 %v967_v10, %v967_v10 }
 0x29e   : > { %6076 = vmatpush3.bf16.xpose.msra.mxu1 %v1037_v11  ;;  %v1217_v0 = vsel %vm1169_vm2, %v7368_v60, 0 }
 0x29f   : > { %6081 = vmatprep.subr.bf16.mxu1 %v6936_v4  ;;  %v1083_v16 = vsel %vm1032_vm1, %v7316_v13, 0 }
 0x2a5   : > { %6078 = vmatmul.mubr.msk.bf16.vlgmr.msra.gmra.mrb[4].mxu1 %vm1032_vm1, %v7318_v14 }
 0x2a6   : > { %6082 = vmatpush3.bf16.xpose.msra.mxu1 %v1083_v16  ;;  %6083 = vmatprep.mubr.msk.bf16.mxu1 %vm6938_vm0, %v6936_v4 }
 0x2a7   : > { %6087 = vmatprep.subr.bf16.mxu1 %v6936_v4 }
 0x2ad   : > { %6084 = vmatmul.mubr.msk.bf16.vlgmr.msra.gmra.mrb[8].mxu1 %vm1032_vm1, %v7329_v19 }
 0x2ae   : > { %6088 = vmatpush3.bf16.msra.mxu1 %v1171_v20  ;;  %6089 = vmatprep.mubr.msk.bf16.mxu1 %vm6938_vm0, %v6936_v4 }
 0x2af   : > { %6093 = vmatprep.subr.bf16.mxu1 %v6936_v4 }
 0x378   : > { %v1073_v22 = vpop.f32.mrb[4].mxu1 }
 0x379   : > { %v1125_v23 = vmul.f32 0.17677669, %v1073_v22  ;;  %v6079_v24 = vpop.f32.mrb[5].mxu1 }
 0x37a   : > { %v1076_v25 = vpop.f32.mrb[6].mxu1 }
 0x37b   : > { %v6080_v26 = vpop.f32.mrb[7].mxu1  ;;  %v1139_v27 = vadd.f32 %v7345_v21, %v1125_v23 }
 0x37d   : > { %v1142_v28 = vsel %vm1141_vm3, %v1139_v27, -inf }
 0x37e   : > { %1143 = vmax.xlane.f32.xlu0 %v1142_v28 }
 0x380   : > { %v1119_v31 = vpop.f32.mrb[8].mxu1 }
 0x381   : > { %v1126_v32 = vmul.f32 0.17677669, %v1119_v31  ;;  %v6085_v33 = vpop.f32.mrb[9].mxu1 }
 0x382   : > { %v1122_v34 = vpop.f32.mrb[10].mxu1 }
 0x383   : > { %v6086_v35 = vpop.f32.mrb[11].mxu1  ;;  %v1140_v36 = vadd.f32 %v7350_v29, %v1126_v32 }
 0x385   : > { %v1145_v37 = vsel %vm1141_vm3, %v1140_v36, -inf }
 0x386   : > { %1146 = vmax.xlane.f32.xlu1 %v1145_v37 }
 0x397   : > { %1316 = vrot.lane.b32.xlu1 %v7316_v13, %s6939_s25 }
 0x40b   : > { %v1144_v38 = vpop.xlane.xlu0 %1143 }
 0x40c   : > { %v1148_v39 = vsub.f32 %v1139_v27, %v1144_v38 }
 0x40e   : > { %v1150_v40 = vmul.f32 1.442695, %v1148_v39 }
 0x410   : > { %6680 = vpow2.f32 %v1150_v40 }
 0x413   : > { %v1147_v41 = vpop.xlane.xlu1 %1146 }
 0x414   : > { %v1149_v42 = vsub.f32 %v1140_v36, %v1147_v41 }
 0x416   : > { %v1152_v43 = vmul.f32 1.442695, %v1149_v42 }
 0x417   : > { %v1317_v49 = vpop.permute.xlu1 %1316 }
 0x418   : > { %6682 = vpow2.f32 %v1152_v43  ;;  %v1322_v5 = vsel %vm1032_vm1, %v1317_v49, 0 }
 0x41a   : > { %v6681_v44 = vpop.eup %6680 }
 0x41b   : > { %v1154_v45 = vsel %vm1141_vm3, %v6681_v44, 0.0 }
 0x41c   : > { %1155 = vadd.xlane.f32.xlu0 %v1154_v45 }
 0x422   : > { %v6683_v46 = vpop.eup %6682 }
 0x423   : > { %v1157_v47 = vsel %vm1141_vm3, %v6683_v46, 0.0 }
 0x424   : > { %1158 = vadd.xlane.f32.xlu1 %v1157_v47 }
 0x432   : > { %1264 = vrot.lane.b32.xlu0 %v7311_v9, %s6939_s25 }
 0x435   : > { %1261 = vrot.lane.b32.xlu1 %v7318_v14, %s6939_s25 }
 0x439   : > { %1313 = vrot.lane.b32.xlu1 %v7329_v19, %s6939_s25 }
 0x4a9   : > { %v1156_v48 = vpop.xlane.xlu0 %1155 }
 0x4aa   : > { %6684 = vrcp.f32 %v1156_v48 }
 0x4ad   : > { %v1265_v52 = vpop.permute.xlu0 %1264 }
 0x4ae   : > { %v1270_v53 = vsel %vm1032_vm1, %v1265_v52, 0 }
 0x4af   : > { %6100 = vmatpush3.bf16.xpose.msra.mxu0 %v1270_v53 }
 0x4b0   : > { %6111 = vmatprep.subr.bf16.mxu0 %v6936_v4 }
 0x4b1   : > { %v1159_v56 = vpop.xlane.xlu1 %1158 }
 0x4b2   : > { %6686 = vrcp.f32 %v1159_v56 }
 0x4b4   : > { %v6685_v58 = vpop.eup %6684 }
 0x4b5   : > { %v1162_v61 = vmul.f32 %v6685_v58, %v6681_v44  ;;  %v1262_v62 = vpop.permute.xlu1 %1261 }
 0x4b6   : > { %6102 = vmatmul.mubr.msk.bf16.vlgmr.msra.gmra.mrb[4].mxu0 %vm1032_vm1, %v1262_v62 }
 0x4b7   : > { %v1164_v63 = vpack.c.bf16 %v1162_v61, %v1162_v61  ;;  %6113 = vmatprep.mubr.msk.bf16.mxu0 %vm6938_vm0, %v6936_v4 }
 0x4b9   : > { %6090 = vmatmul.mubr.msk.bf16.vlgmr.msra.gmra.mrb[12].mxu1 %vm1141_vm3, %v1164_v63  ;;  %v1314_v6 = vpop.permute.xlu1 %1313  ;;  %v6446_v63 = vld [vmem:[#allocation2 + $0x10] sm:$0xff]  }
 0x4ba   : > { %6094 = vmatpush3.bf16.msra.mxu1 %v1217_v0  ;;  %6095 = vmatprep.mubr.msk.bf16.mxu1 %vm6938_vm0, %v6936_v4 }
 0x4bb   : > { %6105 = vmatprep.subr.bf16.mxu1 %v6936_v4 }
 0x4bc   : > { %v6687_v1 = vpop.eup %6686 }
 0x4bd   : > { %v1163_v2 = vmul.f32 %v6687_v1, %v6683_v46 }
 0x4bf   : > { %v1165_v3 = vpack.c.bf16 %v1163_v2, %v1163_v2 }
 0x4c1   : > { %6096 = vmatmul.mubr.msk.bf16.vlgmr.msra.gmra.mrb[16].mxu1 %vm1141_vm3, %v1165_v3  ;;  %v6444_v3 = vld [vmem:[#allocation2] sm:$0xff]  }
 0x4c2   : > { %6107 = vmatprep.mubr.msk.bf16.mxu1 %vm6938_vm0, %v6936_v4 }
 0x4c3   : > { %6106 = vmatpush3.bf16.xpose.msra.mxu1 %v1322_v5 }
 0x4c4   : > { %6117 = vmatprep.subr.bf16.mxu1 %v6936_v4 }
 0x4ca   : > { %6108 = vmatmul.mubr.msk.bf16.vlgmr.msra.gmra.mrb[20].mxu1 %vm1032_vm1, %v1314_v6  ;;  %v6445_v6 = vld [vmem:[#allocation2 + $0x8] sm:$0xff]  }
 0x4cb   : > { %6119 = vmatprep.mubr.msk.bf16.mxu1 %vm6938_vm0, %v6936_v4 }
 0x589   : > { %v1306_v7 = vpop.f32.mrb[4].mxu0 }
 0x58a   : > { %v1364_v8 = vmul.f32 0.17677669, %v1306_v7  ;;  %v6103_v10 = vpop.f32.mrb[5].mxu0 }
 0x58b   : > { %v1309_v11 = vpop.f32.mrb[6].mxu0 }
 0x58c   : > { %v7387_v12 = vpop.f32.mrb[12].mxu1  ;;  %v6104_v15 = vpop.f32.mrb[7].mxu0  ;;  %v1366_v16 = vadd.f32 %v7345_v21, %v1364_v8 }
 0x58d   : > { %v6091_v17 = vpop.f32.mrb[13].mxu1  ;;  %v6447_v15 = vld [vmem:[#allocation2 + $0x18] sm:$0xff]  }
 0x58e   : > { %v1210_v20 = vpop.f32.mrb[14].mxu1  ;;  %v1368_v22 = vsel %vm1141_vm3, %v1366_v16, -inf }
 0x58f   : > { %1369 = vmax.xlane.f32.xlu0 %v1368_v22  ;;  %v6092_v23 = vpop.f32.mrb[15].mxu1 }
 0x594   : > { %v7391_v24 = vpop.f32.mrb[16].mxu1 }
 0x595   : > { %v1259_v25 = vpack.c.bf16 %v7391_v24, %v7387_v12  ;;  %v6097_v26 = vpop.f32.mrb[17].mxu1 }
 0x596   : > { %v1256_v27 = vpop.f32.mrb[18].mxu1 }
 0x597   : > { %v6098_v28 = vpop.f32.mrb[19].mxu1 }
 0x59d   : > { %v1358_v31 = vpop.f32.mrb[20].mxu1 }
 0x59e   : > { %v1365_v32 = vmul.f32 0.17677669, %v1358_v31  ;;  %v6109_v33 = vpop.f32.mrb[21].mxu1 }
 0x59f   : > { %v1361_v34 = vpop.f32.mrb[22].mxu1 }
 0x5a0   : > { %v6110_v35 = vpop.f32.mrb[23].mxu1  ;;  %v1367_v36 = vadd.f32 %v7350_v29, %v1365_v32 }
 0x5a2   : > { %v1371_v37 = vsel %vm1141_vm3, %v1367_v36, -inf }
 0x5a3   : > { %1372 = vmax.xlane.f32.xlu1 %v1371_v37 }
 0x5b4   : > { %1442 = vrot.lane.b32.xlu1 %v7368_v60, %s6939_s25 }
 0x5b8   : > { %1605 = vrot.lane.b32.xlu1 %v7311_v9, %s6940_s18 }
 0x5bc   : > { %1655 = vrot.lane.b32.xlu1 %v7316_v13, %s6940_s18 }
 0x5c0   : > { %1653 = vrot.lane.b32.xlu1 %v7329_v19, %s6940_s18 }
 0x61c   : > { %v1370_v38 = vpop.xlane.xlu0 %1369 }
 0x61d   : > { %v1374_v39 = vsub.f32 %v1366_v16, %v1370_v38 }
 0x61f   : > { %v1376_v40 = vmul.f32 1.442695, %v1374_v39 }
 0x621   : > { %6688 = vpow2.f32 %v1376_v40 }
 0x62b   : > { %v6689_v41 = vpop.eup %6688 }
 0x62c   : > { %v1380_v42 = vsel %vm1141_vm3, %v6689_v41, 0.0 }
 0x62d   : > { %1381 = vadd.xlane.f32.xlu0 %v1380_v42 }
 0x630   : > { %v1373_v43 = vpop.xlane.xlu1 %1372 }
 0x631   : > { %v1375_v44 = vsub.f32 %v1367_v36, %v1373_v43 }
 0x633   : > { %v1378_v45 = vmul.f32 1.442695, %v1375_v44 }
 0x634   : > { %v1443_v46 = vpop.permute.xlu1 %1442 }
 0x635   : > { %6690 = vpow2.f32 %v1378_v45  ;;  %v1448_v47 = vsel %vm1169_vm2, %v1443_v46, 0 }
 0x636   : > { %6118 = vmatpush3.bf16.msra.mxu1 %v1448_v47 }
 0x637   : > { %6131 = vmatprep.subr.bf16.mxu1 %v6936_v4 }
 0x638   : > { %v1606_v7 = vpop.permute.xlu1 %1605 }
 0x639   : > { %v1611_v26 = vsel %vm1032_vm1, %v1606_v7, 0 }
 0x63c   : > { %v1656_v8 = vpop.permute.xlu1 %1655 }
 0x63d   : > { %v1661_v10 = vsel %vm1032_vm1, %v1656_v8, 0 }
 0x63f   : > { %v6691_v48 = vpop.eup %6690 }
 0x640   : > { %v1383_v49 = vsel %vm1141_vm3, %v6691_v48, 0.0  ;;  %v1654_v11 = vpop.permute.xlu1 %1653 }
 0x641   : > { %1384 = vadd.xlane.f32.xlu0 %v1383_v49 }
 0x657   : > { %1393 = vrot.lane.b32.xlu0 %v7327_v18, %s6939_s25 }
 0x65b   : > { %1603 = vrot.lane.b32.xlu0 %v7318_v14, %s6940_s18 }
 0x6ba   : > { %v1382_v52 = vpop.xlane.xlu0 %1381 }
 0x6bb   : > { %6692 = vrcp.f32 %v1382_v52 }
 0x6c5   : > { %v6693_v53 = vpop.eup %6692 }
 0x6c6   : > { %v1388_v58 = vmul.f32 %v6693_v53, %v6689_v41 }
 0x6c8   : > { %v1390_v0 = vpack.c.bf16 %v1388_v58, %v1388_v58 }
 0x6ce   : > { %v1385_v56 = vpop.xlane.xlu0 %1384 }
 0x6cf   : > { %6694 = vrcp.f32 %v1385_v56 }
 0x6d2   : > { %v1394_v61 = vpop.permute.xlu0 %1393 }
 0x6d3   : > { %v1399_v62 = vsel %vm1169_vm2, %v1394_v61, 0 }
 0x6d4   : > { %6112 = vmatpush3.bf16.msra.mxu0 %v1399_v62 }
 0x6d5   : > { %6123 = vmatprep.subr.bf16.mxu0 %v6936_v4 }
 0x6d6   : > { %v1604_v32 = vpop.permute.xlu0 %1603 }
 0x6d7   : > { %6114 = vmatmul.mubr.msk.bf16.vlgmr.msra.gmra.mrb[8].mxu0 %vm1141_vm3, %v1390_v0 }
 0x6d8   : > { %6124 = vmatpush3.bf16.msra.mxu0 %v6446_v63  ;;  %6127 = vmatprep.mubr.msk.bf16.mxu0 %vm6938_vm0, %v6936_v4 }
 0x6d9   : > { %v6695_v1 = vpop.eup %6694  ;;  %6125 = vmatprep.subr.bf16.mxu0 %v6936_v4 }
 0x6da   : > { %v1389_v2 = vmul.f32 %v6695_v1, %v6691_v48 }
 0x6dc   : > { %v1391_v5 = vpack.c.bf16 %v1389_v2, %v1389_v2  ;;  %6126 = vmatpush3.bf16.msra.mxu0 %v6447_v15 }
 0x6dd   : > { %6139 = vmatprep.subr.bf16.mxu0 %v6936_v4 }
 0x6de   : > { %6120 = vmatmul.mubr.msk.bf16.vlgmr.msra.gmra.mrb[24].mxu1 %vm1141_vm3, %v1391_v5 }
 0x6df   : > { %6132 = vmatpush3.bf16.msra.mxu1 %v6444_v3  ;;  %6135 = vmatprep.mubr.msk.bf16.mxu1 %vm6938_vm0, %v6936_v4 }
 0x6e0   : > { %6133 = vmatprep.subr.bf16.mxu1 %v6936_v4 }
 0x6e3   : > { %6134 = vmatpush3.bf16.msra.mxu1 %v6445_v6 }
 0x6e4   : > { %6145 = vmatprep.subr.bf16.mxu1 %v6936_v4 }
 0x6e6   : > { %6136 = vmatmul.mubr.msk.bf16.vlgmr.msra.gmra.mrb[28].mxu1 %vm1032_vm1, %v1259_v25 }
 0x6e7   : > { %6147 = vmatprep.mubr.msk.bf16.mxu1 %vm6938_vm0, %v6936_v4 }
 0x6ec   : > { %6146 = vmatpush3.bf16.xpose.msra.mxu1 %v1661_v10 }
 0x6ed   : > { %6157 = vmatprep.subr.bf16.mxu1 %v6936_v4 }
 0x6f3   : > { %6148 = vmatmul.mubr.msk.bf16.vlgmr.msra.gmra.mrb[32].mxu1 %vm1032_vm1, %v1654_v11 }
 0x6f4   : > { %6159 = vmatprep.mubr.msk.bf16.mxu1 %vm6938_vm0, %v6936_v4 }
 0x7aa   : > { %v1435_v12 = vpop.f32.mrb[8].mxu0 }
 0x7ab   : > { %v6115_v16 = vpop.f32.mrb[9].mxu0 }
 0x7ac   : > { %v1438_v17 = vpop.f32.mrb[10].mxu0 }
 0x7ad   : > { %v6116_v20 = vpop.f32.mrb[11].mxu0 }
 0x7b1   : > { %v1484_v22 = vpop.f32.mrb[24].mxu1 }
 0x7b2   : > { %v1490_v23 = vpack.c.bf16 %v1484_v22, %v1435_v12  ;;  %v6121_v24 = vpop.f32.mrb[25].mxu1 }
 0x7b3   : > { %v1487_v25 = vpop.f32.mrb[26].mxu1 }
 0x7b4   : > { %v6122_v27 = vpop.f32.mrb[27].mxu1  ;;  %6128 = vmatmul.mubr.msk.bf16.vlgmr.msra.gmra.mrb[12].mxu0 %vm1032_vm1, %v1490_v23 }
 0x7b5   : > { %6140 = vmatpush3.bf16.xpose.msra.mxu0 %v1611_v26  ;;  %6141 = vmatprep.mubr.msk.bf16.mxu0 %vm6938_vm0, %v6936_v4  ;;  %v6448_v26 = vld [vmem:[#allocation2 + $0x20] sm:$0xff]  }
 0x7b6   : > { %6151 = vmatprep.subr.bf16.mxu0 %v6936_v4 }
 0x7b9   : > { %v1596_v28 = vpop.f32.mrb[28].mxu1 }
 0x7ba   : > { %v6137_v31 = vpop.f32.mrb[29].mxu1 }
 0x7bb   : > { %v1599_v33 = vpop.f32.mrb[30].mxu1 }
 0x7bc   : > { %v6138_v34 = vpop.f32.mrb[31].mxu1  ;;  %6142 = vmatmul.mubr.msk.bf16.vlgmr.msra.gmra.mrb[16].mxu0 %vm1032_vm1, %v1604_v32 }
 0x7bd   : > { %6153 = vmatprep.mubr.msk.bf16.mxu0 %vm6938_vm0, %v6936_v4 }
 0x7c6   : > { %v1697_v35 = vpop.f32.mrb[32].mxu1 }
 0x7c7   : > { %v1704_v36 = vmul.f32 0.17677669, %v1697_v35  ;;  %v6149_v37 = vpop.f32.mrb[33].mxu1 }
 0x7c8   : > { %v1700_v38 = vpop.f32.mrb[34].mxu1 }
 0x7c9   : > { %v6150_v39 = vpop.f32.mrb[35].mxu1  ;;  %v1706_v40 = vadd.f32 %v7350_v29, %v1704_v36 }
 0x7cb   : > { %v1710_v41 = vsel %vm1141_vm3, %v1706_v40, -inf }
 0x7cc   : > { %1711 = vmax.xlane.f32.xlu1 %v1710_v41 }
 0x7dd   : > { %1779 = vrot.lane.b32.xlu1 %v7368_v60, %s6940_s18 }
 0x7e1   : > { %1888 = vrot.lane.b32.xlu1 %v7311_v9, %s6941_s16 }
 0x7e5   : > { %1938 = vrot.lane.b32.xlu1 %v7316_v13, %s6941_s16 }
 0x7e9   : > { %1936 = vrot.lane.b32.xlu1 %v7329_v19, %s6941_s16 }
 0x859   : > { %v1712_v42 = vpop.xlane.xlu1 %1711 }
 0x85a   : > { %v1714_v45 = vsub.f32 %v1706_v40, %v1712_v42 }
 0x85c   : > { %v1717_v46 = vmul.f32 1.442695, %v1714_v45 }
 0x85d   : > { %v1780_v43 = vpop.permute.xlu1 %1779 }
 0x85e   : > { %v1785_v44 = vsel %vm1169_vm2, %v1780_v43, 0  ;;  %6696 = vpow2.f32 %v1717_v46 }
 0x85f   : > { %6158 = vmatpush3.bf16.msra.mxu1 %v1785_v44 }
 0x860   : > { %6171 = vmatprep.subr.bf16.mxu1 %v6936_v4 }
 0x861   : > { %v1889_v15 = vpop.permute.xlu1 %1888 }
 0x862   : > { %v1894_v16 = vsel %vm1032_vm1, %v1889_v15, 0 }
 0x865   : > { %v1939_v41 = vpop.permute.xlu1 %1938 }
 0x866   : > { %v1944_v46 = vsel %vm1032_vm1, %v1939_v41, 0 }
 0x868   : > { %v6697_v0 = vpop.eup %6696 }
 0x869   : > { %v1722_v1 = vsel %vm1141_vm3, %v6697_v0, 0.0 }
 0x887   : > { %v1540_v47 = vpop.f32.mrb[12].mxu0 }
 0x888   : > { %v7456_v48 = vadd.f32 %v1596_v28, %v1540_v47  ;;  %v6129_v49 = vpop.f32.mrb[13].mxu0 }
 0x889   : > { %v1543_v9 = vpop.f32.mrb[14].mxu0 }
 0x88a   : > { %v7458_v52 = vadd.f32 %v1599_v33, %v1543_v9  ;;  %v6130_v13 = vpop.f32.mrb[15].mxu0  ;;  %v6449_v33 = vld [vmem:[#allocation2 + $0x28] sm:$0xff]  }
 0x88f   : > { %v1647_v53 = vpop.f32.mrb[16].mxu0 }
 0x890   : > { %v1703_v19 = vmul.f32 0.17677669, %v1647_v53  ;;  %v6143_v56 = vpop.f32.mrb[17].mxu0 }
 0x891   : > { %v1650_v58 = vpop.f32.mrb[18].mxu0 }
 0x892   : > { %v6144_v61 = vpop.f32.mrb[19].mxu0  ;;  %v1705_v62 = vadd.f32 %v7345_v21, %v1703_v19 }
 0x894   : > { %v1707_v63 = vsel %vm1141_vm3, %v1705_v62, -inf }
 0x895   : > { %1708 = vmax.xlane.f32.xlu0 %v1707_v63 }
 0x899   : > { %1723 = vadd.xlane.f32.xlu0 %v1722_v1 }
 0x922   : > { %v1709_v2 = vpop.xlane.xlu0 %1708 }
 0x923   : > { %v1713_v3 = vsub.f32 %v1705_v62, %v1709_v2 }
 0x925   : > { %v1715_v5 = vmul.f32 1.442695, %v1713_v3 }
 0x926   : > { %v1724_v6 = vpop.xlane.xlu0 %1723 }
 0x927   : > { %6698 = vpow2.f32 %v1715_v5 }
 0x928   : > { %6700 = vrcp.f32 %v1724_v6 }
 0x931   : > { %v6699_v7 = vpop.eup %6698 }
 0x932   : > { %v6701_v8 = vpop.eup %6700  ;;  %v1719_v10 = vsel %vm1141_vm3, %v6699_v7, 0.0 }
 0x933   : > { %v1728_v11 = vmul.f32 %v6701_v8, %v6697_v0  ;;  %1720 = vadd.xlane.f32.xlu0 %v1719_v10 }
 0x935   : > { %v1730_v12 = vpack.c.bf16 %v1728_v11, %v1728_v11 }
 0x937   : > { %6160 = vmatmul.mubr.msk.bf16.vlgmr.msra.gmra.mrb[36].mxu1 %vm1141_vm3, %v1730_v12 }
 0x938   : > { %6172 = vmatpush3.bf16.xpose.msra.mxu1 %v1894_v16  ;;  %6173 = vmatprep.mubr.msk.bf16.mxu1 %vm6938_vm0, %v6936_v4 }
 0x939   : > { %6183 = vmatprep.subr.bf16.mxu1 %v6936_v4 }
 0x949   : > { %1731 = vrot.lane.b32.xlu0 %v7327_v18, %s6940_s18 }
 0x94d   : > { %1886 = vrot.lane.b32.xlu0 %v7318_v14, %s6941_s16 }
 0x9c0   : > { %v1721_v17 = vpop.xlane.xlu0 %1720 }
 0x9c1   : > { %6702 = vrcp.f32 %v1721_v17 }
 0x9c4   : > { %v1732_v20 = vpop.permute.xlu0 %1731 }
 0x9c5   : > { %v1737_v22 = vsel %vm1169_vm2, %v1732_v20, 0 }
 0x9c6   : > { %6152 = vmatpush3.bf16.msra.mxu0 %v1737_v22 }
 0x9c7   : > { %6163 = vmatprep.subr.bf16.mxu0 %v6936_v4 }
 0x9c8   : > { %v1887_v23 = vpop.permute.xlu0 %1886 }
 0x9c9   : > { %6174 = vmatmul.mubr.msk.bf16.vlgmr.msra.gmra.mrb[40].mxu1 %vm1032_vm1, %v1887_v23 }
 0x9ca   : > { %6185 = vmatprep.mubr.msk.bf16.mxu1 %vm6938_vm0, %v6936_v4 }
 0x9cb   : > { %v6703_v24 = vpop.eup %6702 }
 0x9cc   : > { %v1727_v25 = vmul.f32 %v6703_v24, %v6699_v7 }
 0x9ce   : > { %v1729_v27 = vpack.c.bf16 %v1727_v25, %v1727_v25 }
 0x9d0   : > { %6154 = vmatmul.mubr.msk.bf16.vlgmr.msra.gmra.mrb[20].mxu0 %vm1141_vm3, %v1729_v27  ;;  %v6450_v27 = vld [vmem:[#allocation2 + $0x30] sm:$0xff]  }
 0x9d1   : > { %6164 = vmatpush3.bf16.msra.mxu0 %v6448_v26  ;;  %6167 = vmatprep.mubr.msk.bf16.mxu0 %vm6938_vm0, %v6936_v4 }
 0x9d2   : > { %6165 = vmatprep.subr.bf16.mxu0 %v6936_v4 }
 0x9d5   : > { %6166 = vmatpush3.bf16.msra.mxu0 %v6449_v33 }
 0x9d6   : > { %6177 = vmatprep.subr.bf16.mxu0 %v6936_v4 }
 0xa0a   : > { %v1821_v14 = vpop.f32.mrb[36].mxu1 }
 0xa0b   : > { %v6161_v28 = vpop.f32.mrb[37].mxu1 }
 0xa0c   : > { %v1824_v31 = vpop.f32.mrb[38].mxu1 }
 0xa0d   : > { %v6162_v32 = vpop.f32.mrb[39].mxu1 }
 0xa9c   : > { %v1930_v34 = vpop.f32.mrb[40].mxu1 }
 0xa9d   : > { %v1986_v35 = vmul.f32 0.17677669, %v1930_v34  ;;  %v6175_v36 = vpop.f32.mrb[41].mxu1 }
 0xa9e   : > { %v1933_v37 = vpop.f32.mrb[42].mxu1 }
 0xa9f   : > { %v6176_v38 = vpop.f32.mrb[43].mxu1  ;;  %v1988_v39 = vadd.f32 %v7345_v21, %v1986_v35  ;;  %v1937_v21 = vpop.permute.xlu1 %1936 }
 0xaa1   : > { %v1990_v40 = vsel %vm1141_vm3, %v1988_v39, -inf }
 0xaa2   : > { %1991 = vmax.xlane.f32.xlu0 %v1990_v40  ;;  %v5607_v40 = vld [vmem:[%s8013_s8] ss:$0 sm:$0xff] }
 0xaa3   : > { %v1773_v42 = vpop.f32.mrb[20].mxu0 }
 0xaa4   : > { %v1827_v43 = vpack.c.bf16 %v1821_v14, %v1773_v42  ;;  %v6155_v44 = vpop.f32.mrb[21].mxu0  ;;  %v6451_v14 = vld [vmem:[#allocation2 + $0x38] sm:$0xff]  }
 0xaa5   : > { %v1776_v45 = vpop.f32.mrb[22].mxu0 }
 0xaa6   : > { %v6156_v47 = vpop.f32.mrb[23].mxu0  ;;  %6168 = vmatmul.mubr.msk.bf16.vlgmr.msra.gmra.mrb[24].mxu0 %vm1032_vm1, %v1827_v43 }
 0xaa7   : > { %6178 = vmatpush3.bf16.xpose.msra.mxu0 %v1944_v46  ;;  %6179 = vmatprep.mubr.msk.bf16.mxu0 %vm6938_vm0, %v6936_v4 }
 0xaa8   : > { %6189 = vmatprep.subr.bf16.mxu0 %v6936_v4 }
 0xaae   : > { %6180 = vmatmul.mubr.msk.bf16.vlgmr.msra.gmra.mrb[28].mxu0 %vm1032_vm1, %v1937_v21 }
 0xaaf   : > { %6191 = vmatprep.mubr.msk.bf16.mxu0 %vm6938_vm0, %v6936_v4 }
 0xb2f   : > { %v1992_v49 = vpop.xlane.xlu0 %1991 }
 0xb30   : > { %v1996_v9 = vsub.f32 %v1988_v39, %v1992_v49 }
 0xb32   : > { %v1998_v13 = vmul.f32 1.442695, %v1996_v9  ;;  %v6452_v9 = vld [vmem:[#allocation4] ss:$16 sps:$4 sm:$0xff]  }
 0xb34   : > { %6704 = vpow2.f32 %v1998_v13  ;;  %v6454_v13 = vld [vmem:[#allocation4 + $0x4] ss:$16 sps:$4 sm:$0xff]  }
 0xb3e   : > { %v6705_v53 = vpop.eup %6704 }
 0xb3f   : > { %v2002_v19 = vsel %vm1141_vm3, %v6705_v53, 0.0 }
 0xb40   : > { %2003 = vadd.xlane.f32.xlu0 %v2002_v19  ;;  %v6457_v19 = vld [vmem:[#allocation4 + $0xc] ss:$16 sps:$4 sm:$0xff]  }
 0xb79   : > { %v1877_v56 = vpop.f32.mrb[24].mxu0 }
 0xb7a   : > { %v1884_v58 = vadd.f32 %v1877_v56, %v7456_v48  ;;  %v6169_v61 = vpop.f32.mrb[25].mxu0  ;;  %v6460_v56 = vld [vmem:[#allocation4 + $0x24] ss:$16 sps:$4 sm:$0xff]  }
 0xb7b   : > { %v1880_v62 = vpop.f32.mrb[26].mxu0  ;;  %v6463_v61 = vld [vmem:[#allocation4 + $0x2c] ss:$16 sps:$4 sm:$0xff]  }
 0xb7c   : > { %v1885_v63 = vadd.f32 %v1880_v62, %v7458_v52  ;;  %v6170_v0 = vpop.f32.mrb[27].mxu0  ;;  %v6461_v62 = vld [vmem:[#allocation4 + $0x28] ss:$16 sps:$4 sm:$0xff]  }
 0xb81   : > { %v1980_v1 = vpop.f32.mrb[28].mxu0 }
 0xb82   : > { %v1987_v2 = vmul.f32 0.17677669, %v1980_v1  ;;  %v6181_v3 = vpop.f32.mrb[29].mxu0 }
 0xb83   : > { %v1983_v5 = vpop.f32.mrb[30].mxu0 }
 0xb84   : > { %v6182_v6 = vpop.f32.mrb[31].mxu0  ;;  %v1989_v7 = vadd.f32 %v7350_v29, %v1987_v2 }
 0xb85   : > { %v6466_v6 = vld [vmem:[#allocation4 + $0x44] ss:$16 sps:$4 sm:$0xff]  }
 0xb86   : > { %v1993_v8 = vsel %vm1141_vm3, %v1989_v7, -inf }
 0xb87   : > { %1994 = vmax.xlane.f32.xlu1 %v1993_v8  ;;  %v6464_v8 = vld [vmem:[#allocation4 + $0x40] ss:$16 sps:$4 sm:$0xff]  }
 0xb98   : > { %2062 = vrot.lane.b32.xlu1 %v7368_v60, %s6941_s16 }
 0xbcd   : > { %v2004_v29 = vpop.xlane.xlu0 %2003 }
 0xc14   : > { %v1995_v10 = vpop.xlane.xlu1 %1994 }
 0xc15   : > { %v1997_v48 = vsub.f32 %v1989_v7, %v1995_v10  ;;  %v6469_v7 = vld [vmem:[#allocation4 + $0x4c] ss:$16 sps:$4 sm:$0xff]   ;;  %v6467_v10 = vld [vmem:[#allocation4 + $0x48] ss:$16 sps:$4 sm:$0xff]  }
 0xc17   : > { %v2000_v11 = vmul.f32 1.442695, %v1997_v48  ;;  %v6472_v48 = vld [vmem:[#allocation4 + $0x64] ss:$16 sps:$4 sm:$0xff]  }
 0xc18   : > { %v2063_v15 = vpop.permute.xlu1 %2062 }
 0xc19   : > { %6706 = vpow2.f32 %v2000_v11  ;;  %v2068_v52 = vsel %vm1169_vm2, %v2063_v15, 0  ;;  %v6475_v11 = vld [vmem:[#allocation4 + $0x6c] ss:$16 sps:$4 sm:$0xff]   ;;  %v6470_v15 = vld [vmem:[#allocation4 + $0x60] ss:$16 sps:$4 sm:$0xff]  }
 0xc1a   : > { %6190 = vmatpush3.bf16.msra.mxu0 %v2068_v52  ;;  %6708 = vrcp.f32 %v2004_v29  ;;  %v6473_v52 = vld [vmem:[#allocation4 + $0x68] ss:$16 sps:$4 sm:$0xff]   ;;  %v6476_v29 = vld [vmem:[#allocation4 + $0x80] ss:$16 sps:$4 sm:$0xff]  }
 0xc1b   : > { %2435 = vmatprep.subr.bf16.mxu0 %v6454_v13  ;;  %v6502_v13 = vld [vmem:[#allocation6] sm:$0xff]  }
 0xc23   : > { %v6707_v12 = vpop.eup %6706 }
 0xc24   : > { %v2005_v16 = vsel %vm1141_vm3, %v6707_v12, 0.0  ;;  %v6709_v17 = vpop.eup %6708 }
 0xc25   : > { %2006 = vadd.xlane.f32.xlu0 %v2005_v16  ;;  %v2010_v60 = vmul.f32 %v6709_v17, %v6705_v53  ;;  %v6455_v53 = vld [vmem:[#allocation4 + $0x8] ss:$16 sps:$4 sm:$0xff]   ;;  %v6481_v16 = vld [vmem:[#allocation4 + $0x8c] ss:$16 sps:$4 sm:$0xff]  }
 0xc26   : > { %v6479_v17 = vld [vmem:[#allocation4 + $0x88] ss:$16 sps:$4 sm:$0xff]  }
 0xc27   : > { %v2012_v24 = vpack.c.bf16 %v2010_v60, %v2010_v60  ;;  %v6487_v60 = vld [vmem:[#allocation4 + $0xac] ss:$16 sps:$4 sm:$0xff]  }
 0xc3b   : > { %2014 = vrot.lane.b32.xlu0 %v7327_v18, %s6941_s16 }
 0xcb2   : > { %v2007_v20 = vpop.xlane.xlu0 %2006 }
 0xcb3   : > { %6710 = vrcp.f32 %v2007_v20  ;;  %v6484_v20 = vld [vmem:[#allocation4 + $0xa4] ss:$16 sps:$4 sm:$0xff]  }
 0xcb6   : > { %v2015_v22 = vpop.permute.xlu0 %2014 }
 0xcb7   : > { %v2020_v23 = vsel %vm1169_vm2, %v2015_v22, 0  ;;  %v6482_v22 = vld [vmem:[#allocation4 + $0xa0] ss:$16 sps:$4 sm:$0xff]  }
 0xcb8   : > { %6184 = vmatpush3.bf16.msra.mxu1 %v2020_v23  ;;  %v6485_v23 = vld [vmem:[#allocation4 + $0xa8] ss:$16 sps:$4 sm:$0xff]  }
 0xcb9   : > { %6195 = vmatprep.subr.bf16.mxu1 %v6936_v4 }
 0xcbb   : > { %6186 = vmatmul.mubr.msk.bf16.vlgmr.msra.gmra.mrb[44].mxu1 %vm1141_vm3, %v2012_v24  ;;  %v6488_v24 = vld [vmem:[#allocation4 + $0xc0] ss:$16 sps:$4 sm:$0xff]  }
 0xcbc   : > { %6199 = vmatprep.mubr.msk.bf16.mxu1 %vm6938_vm0, %v6936_v4  ;;  %6196 = vmatpush3.bf16.msra.mxu1 %v6450_v27  ;;  %v6496_v27 = vld [vmem:[#allocation4 + $0xe4] ss:$16 sps:$4 sm:$0xff]  }
 0xcbd   : > { %v6711_v25 = vpop.eup %6710  ;;  %6197 = vmatprep.subr.bf16.mxu1 %v6936_v4 }
 0xcbe   : > { %v2011_v18 = vmul.f32 %v6711_v25, %v6707_v12  ;;  %v6478_v12 = vld [vmem:[#allocation4 + $0x84] ss:$16 sps:$4 sm:$0xff]  }
 0xcbf   : > { %v6490_v25 = vld [vmem:[#allocation4 + $0xc4] ss:$16 sps:$4 sm:$0xff]  }
 0xcc0   : > { %v2013_v26 = vpack.c.bf16 %v2011_v18, %v2011_v18  ;;  %6198 = vmatpush3.bf16.msra.mxu1 %v6451_v14  ;;  %v6491_v18 = vld [vmem:[#allocation4 + $0xc8] ss:$16 sps:$4 sm:$0xff]   ;;  %v6499_v14 = vld [vmem:[#allocation4 + $0xec] ss:$16 sps:$4 sm:$0xff]  }
 0xcc1   : > { %2478 = vmatprep.subr.bf16.mxu1 %v6457_v19  ;;  %v6504_v19 = vld [vmem:[#allocation6 + $0x48] sm:$0xff]  }
 0xcc2   : > { %6192 = vmatmul.mubr.msk.bf16.vlgmr.msra.gmra.mrb[32].mxu0 %vm1141_vm3, %v2013_v26  ;;  %v6493_v26 = vld [vmem:[#allocation4 + $0xcc] ss:$16 sps:$4 sm:$0xff]  }
 0xcc3   : > { %2467 = vmatprep.mubr.bf16.mxu0 %v6937_v30  ;;  %2436 = vmatpush1.bf16.msra.mxu0 %v6452_v9  ;;  %v6501_v9 = vld [vmem:[#allocation6 + $0xc0] sm:$0xff]  }
 0xcc4   : > { %2437 = vmatprep.subr.bf16.mxu0 %v6460_v56  ;;  %v6505_v56 = vld [vmem:[#allocation6 + $0xc8] sm:$0xff]  }
 0xd8e   : > { %v2056_v28 = vpop.f32.mrb[44].mxu1 }
 0xd8f   : > { %v6187_v31 = vpop.f32.mrb[45].mxu1 }
 0xd90   : > { %v2059_v32 = vpop.f32.mrb[46].mxu1  ;;  %v6497_v31 = vld [vmem:[#allocation4 + $0xe8] ss:$16 sps:$4 sm:$0xff]  }
 0xd91   : > { %v6188_v33 = vpop.f32.mrb[47].mxu1 }
 0xd95   : > { %v2104_v34 = vpop.f32.mrb[32].mxu0 }
 0xd96   : > { %v2110_v35 = vpack.c.bf16 %v2104_v34, %v2056_v28  ;;  %v6193_v36 = vpop.f32.mrb[33].mxu0  ;;  %v6494_v28 = vld [vmem:[#allocation4 + $0xe0] ss:$16 sps:$4 sm:$0xff]  }
 0xd97   : > { %v2107_v37 = vpop.f32.mrb[34].mxu0 }
 0xd98   : > { %v6194_v38 = vpop.f32.mrb[35].mxu0  ;;  %6200 = vmatmul.mubr.msk.bf16.vlgmr.msra.gmra.mrb[48].mxu1 %vm1032_vm1, %v2110_v35 }
 0xd99   : > { %2510 = vmatprep.mubr.bf16.mxu1 %v6937_v30  ;;  %2479 = vmatpush1.bf16.msra.mxu1 %v6455_v53  ;;  %v6503_v53 = vld [vmem:[#allocation6 + $0x80] sm:$0xff]  }
 0xd9a   : > { %2480 = vmatprep.subr.bf16.mxu1 %v6463_v61  ;;  %v6506_v61 = vld [vmem:[#allocation6 + $0x8] sm:$0xff]  }
 0xd9d   : > { %2481 = vmatpush1.bf16.msra.mxu1 %v6461_v62  ;;  %v6508_v62 = vld [vmem:[#allocation6 + $0x50] sm:$0xff]  }
 0xd9e   : > { %2482 = vmatprep.subr.bf16.mxu1 %v6469_v7  ;;  %v6518_v7 = vld [vmem:[#allocation6 + $0x20] sm:$0xff]  }
 0xda1   : > { %2483 = vmatpush1.bf16.msra.mxu1 %v6467_v10  ;;  %v6520_v10 = vld [vmem:[#allocation6 + $0x68] sm:$0xff]  }
 0xda2   : > { %2484 = vmatprep.subr.bf16.mxu1 %v6475_v11  ;;  %v6522_v11 = vld [vmem:[#allocation6 + $0x28] sm:$0xff]  }
 0xda5   : > { %2485 = vmatpush1.bf16.msra.mxu1 %v6473_v52  ;;  %v6524_v52 = vld [vmem:[#allocation6 + $0x70] sm:$0xff]  }
 0xda6   : > { %2486 = vmatprep.subr.bf16.mxu1 %v6481_v16  ;;  %v6526_v16 = vld [vmem:[#allocation6 + $0x30] sm:$0xff]  }
 0xda9   : > { %2487 = vmatpush1.bf16.msra.mxu1 %v6479_v17  ;;  %v6528_v17 = vld [vmem:[#allocation6 + $0x78] sm:$0xff]  }
 0xdaa   : > { %2488 = vmatprep.subr.bf16.mxu1 %v6487_v60  ;;  %v6530_v60 = vld [vmem:[#allocation6 + $0x38] sm:$0xff]  }
 0xdad   : > { %2489 = vmatpush1.bf16.msra.mxu1 %v6485_v23  ;;  %v2253_v23 = vld [vmem:[%s8017_s12] sm:$0xf] }
 0xdae   : > { %2490 = vmatprep.subr.bf16.mxu1 %v6493_v26  ;;  %v2262_v26 = vrot.slane %v2253_v23, %v7295_v55 }
 0xdb1   : > { %2491 = vmatpush1.bf16.msra.mxu1 %v6491_v18  ;;  %v2266_v18 = vrot.slane %v2253_v23, %v7301_v57 }
 0xdb2   : > { %2492 = vmatprep.subr.bf16.mxu1 %v6499_v14 }
 0xdb5   : > { %2493 = vmatpush1.bf16.msra.mxu1 %v6497_v31 }
 0xdb6   : > { %5936 = vmatprep.subr.bf16.mxu1 %v6501_v9 }
 0xe6b   : > { %v2160_v39 = vpop.f32.mrb[48].mxu1 }
 0xe6c   : > { %v2167_v41 = vadd.f32 %v2160_v39, %v1884_v58  ;;  %v6201_v42 = vpop.f32.mrb[49].mxu1  ;;  %v6458_v58 = vld [vmem:[#allocation4 + $0x20] ss:$16 sps:$4 sm:$0xff]  }
 0xe6d   : > { %v2163_v43 = vpop.f32.mrb[50].mxu1  ;;  %2438 = vmatpush1.bf16.msra.mxu0 %v6458_v58  ;;  %v5608_v39 = vld [vmem:[%s8014_s9] ss:$0 sm:$0xff]  ;;  %v6507_v58 = vld [vmem:[#allocation6 + $0x88] sm:$0xff]  }
 0xe6e   : > { %v2176_v44 = vadd.f32 %v5607_v40, %v2167_v41  ;;  %v2168_v45 = vadd.f32 %v2163_v43, %v1885_v63  ;;  %v6202_v46 = vpop.f32.mrb[51].mxu1  ;;  %2439 = vmatprep.subr.bf16.mxu0 %v6466_v6  ;;  %v6517_v6 = vld [vmem:[#allocation6 + $0xe0] sm:$0xff]  }
 0xe70   : > { %v2177_v47 = vadd.f32 %v5607_v40, %v2168_v45  ;;  %v2178_v21 = vadd.f32 %v2176_v44, %v7282_v50  ;;  %v5609_v44 = vld [vmem:[%s8015_s10] ss:$0 sm:$0xff] }
 0xe71   : > { %2440 = vmatpush1.bf16.msra.mxu0 %v6464_v8  ;;  %v6519_v8 = vld [vmem:[#allocation6 + $0xa0] sm:$0xff]  }
 0xe72   : > { %2182 = vadd.xlane.f32.xlu1 %v2178_v21  ;;  %v2179_v49 = vadd.f32 %v2177_v47, %v7284_v51  ;;  %2441 = vmatprep.subr.bf16.mxu0 %v6472_v48  ;;  %v6521_v48 = vld [vmem:[#allocation6 + $0xe8] sm:$0xff]  }
 0xe74   : > { %2184 = vadd.xlane.f32.xlu0 %v2179_v49 }
 0xe75   : > { %2442 = vmatpush1.bf16.msra.mxu0 %v6470_v15  ;;  %v6523_v15 = vld [vmem:[#allocation6 + $0xa8] sm:$0xff]  }
 0xe76   : > { %2443 = vmatprep.subr.bf16.mxu0 %v6478_v12  ;;  %v6525_v12 = vld [vmem:[#allocation6 + $0xf0] sm:$0xff]  }
 0xe79   : > { %2444 = vmatpush1.bf16.msra.mxu0 %v6476_v29  ;;  %v6527_v29 = vld [vmem:[#allocation6 + $0xb0] sm:$0xff]  }
 0xe7a   : > { %2445 = vmatprep.subr.bf16.mxu0 %v6484_v20  ;;  %v6529_v20 = vld [vmem:[#allocation6 + $0xf8] sm:$0xff]  }
 0xe7d   : > { %2446 = vmatpush1.bf16.msra.mxu0 %v6482_v22  ;;  %v6531_v22 = vld [vmem:[#allocation6 + $0xb8] sm:$0xff]  }
 0xe7e   : > { %2447 = vmatprep.subr.bf16.mxu0 %v6490_v25  ;;  %v2258_v25 = vrot.slane %v2253_v23, %v7305_v59 }
 0xe81   : > { %2448 = vmatpush1.bf16.msra.mxu0 %v6488_v24  ;;  %v2269_v24 = vsub.s32 3, %v7292_v54 }
 0xe82   : > { %2449 = vmatprep.subr.bf16.mxu0 %v6496_v27 }
 0xe83   : > { %v2270_v27 = vrot.slane %v2253_v23, %v2269_v24 }
 0xe85   : > { %2450 = vmatpush1.bf16.msra.mxu0 %v6494_v28 }
 0xeff   : > { %v2183_v50 = vpop.xlane.xlu1 %2182 }
 0xf00   : > { %v2186_v63 = vmul.f32 0.0078125, %v2183_v50  ;;  %v6509_v50 = vld [vmem:[#allocation6 + $0xd0] sm:$0xff]  }
 0xf01   : > { %v2185_v51 = vpop.xlane.xlu0 %2184 }
 0xf02   : > { %v7519_v0 = vsub.f32 %v2178_v21, %v2186_v63  ;;  %v2187_v1 = vmul.f32 0.0078125, %v2185_v51  ;;  %v6510_v63 = vld [vmem:[#allocation6 + $0x10] sm:$0xff]  }
 0xf03   : > { %v6511_v51 = vld [vmem:[#allocation6 + $0x90] sm:$0xff]  }
 0xf04   : > { %v7521_v2 = vsub.f32 %v2179_v49, %v2187_v1  ;;  %v2190_v3 = vmul.f32 %v7519_v0, %v7519_v0  ;;  %v6500_v49 = vld [vmem:[#allocation6 + $0x40] sm:$0xff]   ;;  %v6513_v1 = vld [vmem:[#allocation6 + $0xd8] sm:$0xff]  }
 0xf05   : > { %5914 = vmatprep.subr.bf16.mxu0 %v6500_v49 }
 0xf06   : > { %2192 = vadd.xlane.f32.xlu0 %v2190_v3  ;;  %v2191_v5 = vmul.f32 %v7521_v2, %v7521_v2  ;;  %v6515_v3 = vld [vmem:[#allocation6 + $0x98] sm:$0xff]  }
 0xf08   : > { %2194 = vadd.xlane.f32.xlu1 %v2191_v5  ;;  %v6516_v5 = vld [vmem:[#allocation6 + $0x60] sm:$0xff]  }
 0xf93   : > { %v2193_v32 = vpop.xlane.xlu0 %2192 }
 0xf94   : > { %v2196_v33 = vmul.f32 0.0078125, %v2193_v32 }
 0xf95   : > { %v2195_v34 = vpop.xlane.xlu1 %2194 }
 0xf96   : > { %v2198_v35 = vadd.f32 1e-12, %v2196_v33  ;;  %v2197_v36 = vmul.f32 0.0078125, %v2195_v34 }
 0xf98   : > { %6712 = vrsqrt.f32 %v2198_v35  ;;  %v2199_v37 = vadd.f32 1e-12, %v2197_v36 }
 0xf9a   : > { %6714 = vrsqrt.f32 %v2199_v37 }
 0xfa2   : > { %v6713_v38 = vpop.eup %6712 }
 0xfa3   : > { %v2202_v40 = vmul.f32 %v6713_v38, %v7519_v0  ;;  %v6512_v0 = vld [vmem:[#allocation6 + $0x58] sm:$0xff]  }
 0xfa4   : > { %v6715_v41 = vpop.eup %6714 }
 0xfa5   : > { %v2203_v42 = vmul.f32 %v6715_v41, %v7521_v2  ;;  %v2210_v43 = vmul.f32 %v5608_v39, %v2202_v40  ;;  %v6514_v2 = vld [vmem:[#allocation6 + $0x18] sm:$0xff]  }
 0xfa7   : > { %v2211_v45 = vmul.f32 %v5608_v39, %v2203_v42  ;;  %v7535_v46 = vadd.f32 %v5609_v44, %v2210_v43 }
 0xfa9   : > { %v7537_v47 = vadd.f32 %v5609_v44, %v2211_v45 }
 0xfab   : > { %v2220_v21 = vpack.c.bf16 %v7537_v47, %v7535_v46 }
 0xfad   : > { %2468 = vmatmul.mubr.bf16.vlgmr.msra.gmra.mrb[36].mxu0 %v2220_v21  ;;  %2511 = vmatmul.mubr.bf16.vlgmr.msra.gmra.mrb[52].mxu1 %v2220_v21 }
 0xfae   : > { %5915 = vmatpush3.bf16.msra.mxu0 %v6502_v13  ;;  %5937 = vmatpush3.bf16.msra.mxu1 %v6503_v53 }
 0xfaf   : > { %5916 = vmatprep.subr.bf16.mxu0 %v6504_v19  ;;  %5938 = vmatprep.subr.bf16.mxu1 %v6505_v56 }
 0xfb2   : > { %5917 = vmatpush3.bf16.msra.mxu0 %v6506_v61  ;;  %5939 = vmatpush3.bf16.msra.mxu1 %v6507_v58 }
 0xfb3   : > { %5918 = vmatprep.subr.bf16.mxu0 %v6508_v62  ;;  %5940 = vmatprep.subr.bf16.mxu1 %v6509_v50 }
 0xfb6   : > { %5919 = vmatpush3.bf16.msra.mxu0 %v6510_v63  ;;  %5941 = vmatpush3.bf16.msra.mxu1 %v6511_v51 }
 0xfb7   : > { %5920 = vmatprep.subr.bf16.mxu0 %v6512_v0  ;;  %5942 = vmatprep.subr.bf16.mxu1 %v6513_v1 }
 0xfba   : > { %5921 = vmatpush3.bf16.msra.mxu0 %v6514_v2  ;;  %5943 = vmatpush3.bf16.msra.mxu1 %v6515_v3 }
 0xfbb   : > { %5922 = vmatprep.subr.bf16.mxu0 %v6516_v5  ;;  %5944 = vmatprep.subr.bf16.mxu1 %v6517_v6 }
 0xfbe   : > { %5923 = vmatpush3.bf16.msra.mxu0 %v6518_v7  ;;  %5945 = vmatpush3.bf16.msra.mxu1 %v6519_v8 }
 0xfbf   : > { %5924 = vmatprep.subr.bf16.mxu0 %v6520_v10  ;;  %5946 = vmatprep.subr.bf16.mxu1 %v6521_v48 }
 0xfc2   : > { %5925 = vmatpush3.bf16.msra.mxu0 %v6522_v11  ;;  %5947 = vmatpush3.bf16.msra.mxu1 %v6523_v15 }
 0xfc3   : > { %5926 = vmatprep.subr.bf16.mxu0 %v6524_v52  ;;  %5948 = vmatprep.subr.bf16.mxu1 %v6525_v12 }
 0xfc6   : > { %5927 = vmatpush3.bf16.msra.mxu0 %v6526_v16  ;;  %5949 = vmatpush3.bf16.msra.mxu1 %v6527_v29 }
 0xfc7   : > { %5928 = vmatprep.subr.bf16.mxu0 %v6528_v17  ;;  %5950 = vmatprep.subr.bf16.mxu1 %v6529_v20 }
 0xfca   : > { %5929 = vmatpush3.bf16.msra.mxu0 %v6530_v60  ;;  %5951 = vmatpush3.bf16.msra.mxu1 %v6531_v22 }
 0xfcb   : > { %6203 = vmatprep.subr.bf16.mxu1 %v6936_v4 }
0x1080   : > { %v2469_v14 = vpop.f32.mrb[36].mxu0  ;;  %v2512_v28 = vpop.f32.mrb[52].mxu1 }
0x1081   : > { %v7551_v31 = vadd.f32 %v2469_v14, %v2258_v25  ;;  %v7553_v32 = vadd.f32 %v2512_v28, %v2266_v18  ;;  %v2471_v33 = vpop.f32.mrb[37].mxu0  ;;  %v2514_v34 = vpop.f32.mrb[53].mxu1 }
0x1082   : > { %v7555_v35 = vadd.f32 %v2471_v33, %v2262_v26  ;;  %v7557_v36 = vadd.f32 %v2514_v34, %v2270_v27  ;;  %v2473_v37 = vpop.f32.mrb[38].mxu0  ;;  %v2516_v38 = vpop.f32.mrb[54].mxu1 }
0x1083   : > { %v2529_v39 = vmul.f32 0.044715, %v7551_v31  ;;  %v2531_v40 = vmul.f32 0.044715, %v7553_v32  ;;  %v2474_v41 = vadd.f32 %v2473_v37, %v2258_v25  ;;  %v2517_v42 = vadd.f32 %v2516_v38, %v2266_v18  ;;  %v2475_v43 = vpop.f32.mrb[39].mxu0  ;;  %v2518_v44 = vpop.f32.mrb[55].mxu1 }
0x1084   : > { %v2530_v45 = vmul.f32 0.044715, %v7555_v35  ;;  %v2532_v21 = vmul.f32 0.044715, %v7557_v36  ;;  %v7563_v49 = vadd.f32 %v2475_v43, %v2262_v26  ;;  %v7565_v9 = vadd.f32 %v2518_v44, %v2270_v27 }
0x1085   : > { %v2537_v13 = vmul.f32 %v2529_v39, %v7551_v31  ;;  %v2539_v53 = vmul.f32 %v2531_v40, %v7553_v32  ;;  %v2533_v19 = vmul.f32 0.044715, %v2474_v41  ;;  %v2535_v56 = vmul.f32 0.044715, %v2517_v42 }
0x1086   : > { %v2538_v61 = vmul.f32 %v2530_v45, %v7555_v35  ;;  %v2540_v58 = vmul.f32 %v2532_v21, %v7557_v36  ;;  %v2534_v62 = vmul.f32 0.044715, %v7563_v49  ;;  %v2536_v50 = vmul.f32 0.044715, %v7565_v9 }
0x1087   : > { %v2545_v63 = vmul.f32 %v2537_v13, %v7551_v31  ;;  %v2547_v51 = vmul.f32 %v2539_v53, %v7553_v32  ;;  %v2541_v0 = vmul.f32 %v2533_v19, %v2474_v41  ;;  %v2543_v1 = vmul.f32 %v2535_v56, %v2517_v42 }
0x1088   : > { %v2546_v2 = vmul.f32 %v2538_v61, %v7555_v35  ;;  %v2548_v3 = vmul.f32 %v2540_v58, %v7557_v36  ;;  %v2542_v5 = vmul.f32 %v2534_v62, %v7563_v49  ;;  %v2544_v6 = vmul.f32 %v2536_v50, %v7565_v9 }
0x1089   : > { %v2553_v7 = vadd.f32 %v2545_v63, %v7551_v31  ;;  %v2555_v8 = vadd.f32 %v2547_v51, %v7553_v32  ;;  %v2549_v10 = vmul.f32 %v2541_v0, %v2474_v41  ;;  %v2551_v48 = vmul.f32 %v2543_v1, %v2517_v42 }
0x108a   : > { %v2550_v11 = vmul.f32 %v2542_v5, %v7563_v49  ;;  %v2552_v15 = vmul.f32 %v2544_v6, %v7565_v9  ;;  %v2554_v17 = vadd.f32 %v2546_v2, %v7555_v35  ;;  %v2556_v23 = vadd.f32 %v2548_v3, %v7557_v36 }
0x108b   : > { %v2561_v52 = vmul.f32 0.7978846, %v2553_v7  ;;  %v2563_v12 = vmul.f32 0.7978846, %v2555_v8  ;;  %v2557_v16 = vadd.f32 %v2549_v10, %v2474_v41  ;;  %v2559_v29 = vadd.f32 %v2551_v48, %v2517_v42 }
0x108c   : > { %v2558_v20 = vadd.f32 %v2550_v11, %v7563_v49  ;;  %v2562_v25 = vmul.f32 0.7978846, %v2554_v17  ;;  %v2560_v26 = vadd.f32 %v2552_v15, %v7565_v9  ;;  %v2564_v27 = vmul.f32 0.7978846, %v2556_v23 }
0x108d   : > { %6716 = vtanh.f32 %v2561_v52  ;;  %v2565_v60 = vmul.f32 0.7978846, %v2557_v16  ;;  %v2567_v22 = vmul.f32 0.7978846, %v2559_v29  ;;  %v2521_v40 = vmul.f32 0.5, %v7551_v31 }
0x108e   : > { %6718 = vtanh.f32 %v2563_v12  ;;  %v2566_v18 = vmul.f32 0.7978846, %v2558_v20  ;;  %v2568_v14 = vmul.f32 0.7978846, %v2560_v26  ;;  %v2525_v43 = vmul.f32 0.5, %v2474_v41 }
0x108f   : > { %6720 = vtanh.f32 %v2565_v60  ;;  %v2523_v21 = vmul.f32 0.5, %v7553_v32  ;;  %v2527_v13 = vmul.f32 0.5, %v2517_v42  ;;  %v2522_v56 = vmul.f32 0.5, %v7555_v35 }
0x1090   : > { %6722 = vtanh.f32 %v2567_v22  ;;  %v2526_v63 = vmul.f32 0.5, %v7563_v49  ;;  %v2524_v41 = vmul.f32 0.5, %v7557_v36  ;;  %v2528_v2 = vmul.f32 0.5, %v7565_v9  ;;  %v5642_v49 = vld [vmem:[%s8019_s14] ss:$0 sm:$0xff] }
0x1091   : > { %6724 = vtanh.f32 %v2562_v25 }
0x1092   : > { %6726 = vtanh.f32 %v2566_v18 }
0x1093   : > { %6728 = vtanh.f32 %v2564_v27 }
0x1094   : > { %6730 = vtanh.f32 %v2568_v14 }
0x1097   : > { %v6717_v28 = vpop.eup %6716 }
0x1098   : > { %v6719_v33 = vpop.eup %6718  ;;  %v2577_v34 = vadd.f32 1.0, %v6717_v28  ;;  %v6532_v28 = vld [vmem:[%s8010_s5 + $0xc0] ss:$12 sps:$4 sm:$0xff]  }
0x1099   : > { %v6721_v37 = vpop.eup %6720  ;;  %v2579_v38 = vadd.f32 1.0, %v6719_v33  ;;  %v6534_v33 = vld [vmem:[%s8010_s5 + $0xc4] ss:$12 sps:$4 sm:$0xff]  }
0x109a   : > { %v6723_v39 = vpop.eup %6722  ;;  %v2581_v44 = vadd.f32 1.0, %v6721_v37  ;;  %v2585_v58 = vmul.f32 %v2577_v34, %v2521_v40  ;;  %v6535_v34 = vld [vmem:[%s8010_s5 + $0xc8] ss:$12 sps:$4 sm:$0xff]   ;;  %3164 = vmatprep.subr.bf16.mxu0 %v6534_v33  ;;  %v6536_v37 = vld [vmem:[%s8010_s5 + $0xd8] ss:$12 sps:$4 sm:$0xff]  }
0x109b   : > { %v6725_v45 = vpop.eup %6724  ;;  %v2583_v53 = vadd.f32 1.0, %v6723_v39  ;;  %v2587_v0 = vmul.f32 %v2579_v38, %v2523_v21 }
0x109c   : > { %v6727_v19 = vpop.eup %6726  ;;  %v2578_v61 = vadd.f32 1.0, %v6725_v45  ;;  %v2589_v62 = vmul.f32 %v2581_v44, %v2525_v43 }
0x109d   : > { %v6729_v50 = vpop.eup %6728  ;;  %v2582_v51 = vadd.f32 1.0, %v6727_v19  ;;  %v2591_v1 = vmul.f32 %v2583_v53, %v2527_v13  ;;  %v6542_v53 = vld [vmem:[%s8010_s5 + $0xf4] ss:$12 sps:$4 sm:$0xff]   ;;  %v6540_v19 = vld [vmem:[%s8010_s5 + $0xf0] ss:$12 sps:$4 sm:$0xff]  }
0x109e   : > { %v6731_v31 = vpop.eup %6730  ;;  %v2580_v32 = vadd.f32 1.0, %v6729_v50  ;;  %v2593_v42 = vpack.c.bf16 %v2589_v62, %v2585_v58  ;;  %v2586_v3 = vmul.f32 %v2578_v61, %v2522_v56  ;;  %v6543_v56 = vld [vmem:[%s8010_s5 + $0xf8] ss:$12 sps:$4 sm:$0xff]   ;;  %v6544_v58 = vld [vmem:[%s8010_s5 + $0x108] ss:$12 sps:$4 sm:$0xff]  }
0x109f   : > { %v2590_v5 = vmul.f32 %v2582_v51, %v2526_v63  ;;  %v2584_v6 = vadd.f32 1.0, %v6731_v31  ;;  %v2595_v35 = vpack.c.bf16 %v2591_v1, %v2587_v0  ;;  %v6546_v61 = vld [vmem:[%s8010_s5 + $0x10c] ss:$12 sps:$4 sm:$0xff]   ;;  %v6547_v62 = vld [vmem:[%s8010_s5 + $0x110] ss:$12 sps:$4 sm:$0xff]  }
0x10a0   : > { %v2588_v8 = vmul.f32 %v2580_v32, %v2524_v41  ;;  %v6548_v50 = vld [vmem:[%s8010_s5 + $0x120] ss:$12 sps:$4 sm:$0xff]   ;;  %v6550_v63 = vld [vmem:[%s8010_s5 + $0x124] ss:$12 sps:$4 sm:$0xff]   ;;  %v6551_v51 = vld [vmem:[%s8010_s5 + $0x128] ss:$12 sps:$4 sm:$0xff]  }
0x10a1   : > { %v2594_v7 = vpack.c.bf16 %v2590_v5, %v2586_v3  ;;  %v2592_v10 = vmul.f32 %v2584_v6, %v2528_v2  ;;  %v6554_v0 = vld [vmem:[%s8010_s5 + $0x13c] ss:$12 sps:$4 sm:$0xff]   ;;  %v6552_v1 = vld [vmem:[%s8010_s5 + $0x138] ss:$12 sps:$4 sm:$0xff]   ;;  %v6555_v31 = vld [vmem:[%s8010_s5 + $0x140] ss:$12 sps:$4 sm:$0xff]  }
0x10a2   : > { %v6558_v41 = vld [vmem:[%s8010_s5 + $0x154] ss:$12 sps:$4 sm:$0xff]   ;;  %v6556_v2 = vld [vmem:[%s8010_s5 + $0x150] ss:$12 sps:$4 sm:$0xff]   ;;  %v6559_v32 = vld [vmem:[%s8010_s5 + $0x158] ss:$12 sps:$4 sm:$0xff]  }
0x10a3   : > { %2892 = vmatprep.mubr.bf16.mxu0 %v2594_v7  ;;  %v2596_v48 = vpack.c.bf16 %v2592_v10, %v2588_v8  ;;  %v6560_v3 = vld [vmem:[%s8010_s5 + $0x168] ss:$12 sps:$4 sm:$0xff]   ;;  %v6563_v5 = vld [vmem:[%s8010_s5 + $0x170] ss:$12 sps:$4 sm:$0xff]  }
0x10a4   : > { %2893 = vmatmul.mubr.bf16.vlgmr.msra.gmra.mrb[40].mxu0 %v2593_v42  ;;  %v6562_v42 = vld [vmem:[%s8010_s5 + $0x16c] ss:$12 sps:$4 sm:$0xff]  }
0x10a5   : > { %2933 = vmatprep.mubr.bf16.mxu1 %v2596_v48  ;;  %3196 = vmatprep.mubr.bf16.mxu0 %v6937_v30 }
0x10a6   : > { %2934 = vmatmul.mubr.bf16.vlgmr.msra.gmra.mrb[56].mxu1 %v2595_v35  ;;  %3165 = vmatpush1.bf16.msra.mxu0 %v6532_v28 }
0x10a7   : > { %6219 = vmatprep.mubr.msk.bf16.mxu1 %vm6938_vm0, %v6936_v4  ;;  %6204 = vmatpush3.bf16.msra.mxu1 %v6535_v34 }
0x10a8   : > { %6205 = vmatprep.subr.bf16.mxu1 %v6936_v4 }
0x1177   : > { %v5930_v36 = vpop.f32.mrb[40].mxu0 }
0x1178   : > { %v5931_v9 = vpop.f32.mrb[41].mxu0 }
0x1179   : > { %v5952_v11 = vpop.f32.mrb[56].mxu1  ;;  %v5932_v15 = vadd.f32 %v5931_v9, %v5930_v36  ;;  %v5933_v52 = vpop.f32.mrb[42].mxu0 }
0x117a   : > { %v5953_v12 = vpop.f32.mrb[57].mxu1  ;;  %v5934_v16 = vpop.f32.mrb[43].mxu0 }
0x117b   : > { %v2895_v29 = vadd.f32 %v5932_v15, %v5642_v49  ;;  %v5954_v17 = vadd.f32 %v5953_v12, %v5952_v11  ;;  %v5955_v20 = vpop.f32.mrb[58].mxu1  ;;  %v5935_v60 = vadd.f32 %v5934_v16, %v5933_v52  ;;  %v5676_v12 = vld [vmem:[%s8052_s22] ss:$0 sm:$0xff] }
0x117c   : > { %v5956_v22 = vpop.f32.mrb[59].mxu1 }
0x117d   : > { %v2936_v23 = vadd.f32 %v5954_v17, %v2895_v29  ;;  %v2898_v25 = vadd.f32 %v5935_v60, %v5642_v49  ;;  %v5957_v18 = vadd.f32 %v5956_v22, %v5955_v20  ;;  %v5675_v49 = vld [vmem:[%s8020_s15] ss:$0 sm:$0xff]  ;;  %v5709_v60 = vld [vmem:[%s8011_s6 + $0x3] sm:$0x7] }
0x117e   : > { %v3028_v22 = vrot.slane %v5709_v60, %v7295_v55 }
0x117f   : > { %v2939_v26 = vadd.f32 %v5957_v18, %v2898_v25  ;;  %v2942_v27 = vadd.f32 %v2936_v23, %v7535_v46  ;;  %v6538_v46 = vld [vmem:[%s8010_s5 + $0xdc] ss:$12 sps:$4 sm:$0xff]  }
0x1180   : > { %3166 = vmatprep.subr.bf16.mxu0 %v6538_v46 }
0x1181   : > { %2946 = vadd.xlane.f32.xlu0 %v2942_v27  ;;  %v2943_v14 = vadd.f32 %v2939_v26, %v7537_v47  ;;  %v6539_v47 = vld [vmem:[%s8010_s5 + $0xe0] ss:$12 sps:$4 sm:$0xff]   ;;  %3167 = vmatpush1.bf16.msra.mxu0 %v6536_v37 }
0x1182   : > { %6206 = vmatpush3.bf16.msra.mxu1 %v6539_v47  ;;  %3168 = vmatprep.subr.bf16.mxu0 %v6542_v53  ;;  %v3024_v47 = vrot.slane %v5709_v60, %v7305_v59 }
0x1183   : > { %2948 = vadd.xlane.f32.xlu1 %v2943_v14  ;;  %6207 = vmatprep.subr.bf16.mxu1 %v6936_v4 }
0x1185   : > { %3169 = vmatpush1.bf16.msra.mxu0 %v6540_v19 }
0x1186   : > { %6208 = vmatpush3.bf16.msra.mxu1 %v6543_v56  ;;  %3170 = vmatprep.subr.bf16.mxu0 %v6546_v61 }
0x1187   : > { %6209 = vmatprep.subr.bf16.mxu1 %v6936_v4 }
0x1189   : > { %3171 = vmatpush1.bf16.msra.mxu0 %v6544_v58 }
0x118a   : > { %6210 = vmatpush3.bf16.msra.mxu1 %v6547_v62  ;;  %3172 = vmatprep.subr.bf16.mxu0 %v6550_v63 }
0x118b   : > { %6211 = vmatprep.subr.bf16.mxu1 %v6936_v4 }
0x118d   : > { %3173 = vmatpush1.bf16.msra.mxu0 %v6548_v50 }
0x118e   : > { %6212 = vmatpush3.bf16.msra.mxu1 %v6551_v51  ;;  %3174 = vmatprep.subr.bf16.mxu0 %v6554_v0 }
0x118f   : > { %6213 = vmatprep.subr.bf16.mxu1 %v6936_v4 }
0x1191   : > { %3175 = vmatpush1.bf16.msra.mxu0 %v6552_v1 }
0x1192   : > { %6214 = vmatpush3.bf16.msra.mxu1 %v6555_v31  ;;  %3176 = vmatprep.subr.bf16.mxu0 %v6558_v41 }
0x1193   : > { %6215 = vmatprep.subr.bf16.mxu1 %v6936_v4 }
0x1195   : > { %3177 = vmatpush1.bf16.msra.mxu0 %v6556_v2 }
0x1196   : > { %6216 = vmatpush3.bf16.msra.mxu1 %v6559_v32  ;;  %3178 = vmatprep.subr.bf16.mxu0 %v6562_v42  ;;  %v7737_v32 = vld [vmem:[%s7342_s20] ss:$0 sm:$0xff] }
0x1197   : > { %6217 = vmatprep.subr.bf16.mxu1 %v6936_v4 }
0x1199   : > { %3179 = vmatpush1.bf16.msra.mxu0 %v6560_v3 }
0x119a   : > { %6218 = vmatpush3.bf16.msra.mxu1 %v6563_v5  ;;  %6223 = vmatprep.subr.bf16.mxu0 %v6936_v4 }
0x119b   : > { %6229 = vmatprep.subr.bf16.mxu1 %v6936_v4 }
0x120e   : > { %v2947_v38 = vpop.xlane.xlu0 %2946 }
0x120f   : > { %v2950_v39 = vmul.f32 0.0078125, %v2947_v38 }
0x1210   : > { %v2949_v40 = vpop.xlane.xlu1 %2948 }
0x1211   : > { %v2952_v43 = vsub.f32 %v2942_v27, %v2950_v39  ;;  %v2951_v44 = vmul.f32 0.0078125, %v2949_v40  ;;  %v3032_v27 = vrot.slane %v5709_v60, %v7301_v57 }
0x1213   : > { %v2953_v45 = vsub.f32 %v2943_v14, %v2951_v44  ;;  %v2954_v21 = vmul.f32 %v2952_v43, %v2952_v43 }
0x1215   : > { %2956 = vadd.xlane.f32.xlu0 %v2954_v21  ;;  %v2955_v13 = vmul.f32 %v2953_v45, %v2953_v45 }
0x1217   : > { %2958 = vadd.xlane.f32.xlu1 %v2955_v13 }
0x12a2   : > { %v2957_v6 = vpop.xlane.xlu0 %2956 }
0x12a3   : > { %v2960_v35 = vmul.f32 0.0078125, %v2957_v6 }
0x12a4   : > { %v2959_v7 = vpop.xlane.xlu1 %2958 }
0x12a5   : > { %v2962_v8 = vadd.f32 1e-12, %v2960_v35  ;;  %v2961_v10 = vmul.f32 0.0078125, %v2959_v7  ;;  %v7742_v35 = vld [vmem:[%s7342_s20 + $0x1] ss:$0 sm:$0xff] }
0x12a7   : > { %6732 = vrsqrt.f32 %v2962_v8  ;;  %v2963_v48 = vadd.f32 1e-12, %v2961_v10 }
0x12a9   : > { %6734 = vrsqrt.f32 %v2963_v48 }
0x12b1   : > { %v6733_v36 = vpop.eup %6732 }
0x12b2   : > { %v2966_v9 = vmul.f32 %v6733_v36, %v2952_v43 }
0x12b3   : > { %v6735_v11 = vpop.eup %6734 }
0x12b4   : > { %v2967_v15 = vmul.f32 %v6735_v11, %v2953_v45  ;;  %v2974_v52 = vmul.f32 %v5675_v49, %v2966_v9 }
0x12b6   : > { %v2975_v16 = vmul.f32 %v5675_v49, %v2967_v15  ;;  %v7688_v29 = vadd.f32 %v5676_v12, %v2974_v52 }
0x12b8   : > { %v7690_v17 = vadd.f32 %v5676_v12, %v2975_v16 }
0x12ba   : > { %v2984_v20 = vpack.c.bf16 %v7690_v17, %v7688_v29 }
0x12bc   : > { %3197 = vmatmul.mubr.bf16.vlgmr.msra.gmra.mrb[44].mxu0 %v2984_v20  ;;  %6220 = vmatmul.mubr.bf16.vlgmr.msra.gmra.mrb[60].mxu1 %v2984_v20 }
0x12bd   : > { %6225 = vmatprep.mubr.msk.bf16.mxu0 %vm6938_vm0, %v6936_v4  ;;  %6231 = vmatprep.mubr.msk.bf16.mxu1 %vm6938_vm0, %v6936_v4 }
0x138f   : > { %v3198_v23 = vpop.f32.mrb[44].mxu0  ;;  %v3241_v25 = vpop.f32.mrb[60].mxu1 }
0x1390   : > { %v3200_v18 = vpop.f32.mrb[45].mxu0  ;;  %v6221_v26 = vpop.f32.mrb[61].mxu1  ;;  %v3242_v39 = vadd.f32 %v3241_v25, %v3032_v27  ;;  %v3199_v44 = vadd.f32 %v3198_v23, %v3024_v47 }
0x1391   : > { %v3201_v14 = vadd.f32 %v3200_v18, %v3028_v22  ;;  %v3202_v28 = vpop.f32.mrb[46].mxu0  ;;  %v3244_v33 = vpop.f32.mrb[62].mxu1 }
0x1392   : > { %v3204_v34 = vpop.f32.mrb[47].mxu0  ;;  %v6222_v46 = vpop.f32.mrb[63].mxu1  ;;  %v3245_v45 = vadd.f32 %v3244_v33, %v3032_v27  ;;  %v7713_v13 = vpack.c.bf16 %v3242_v39, %v3242_v39  ;;  %v3203_v53 = vadd.f32 %v3202_v28, %v3024_v47  ;;  %v7716_v19 = vpack.c.bf16 %v3199_v44, %v3199_v44 }
0x1393   : > { %v7704_v37 = vpack.c.bf16 %v3201_v14, %v3201_v14  ;;  %v3205_v38 = vadd.f32 %v3204_v34, %v3028_v22 }
0x1394   : > { %v7718_v56 = vpack.c.bf16 %v3245_v45, %v3245_v45  ;;  %v7720_v61 = vpack.c.bf16 %v3203_v53, %v3203_v53  ;;  %v3395_v58 = vsel %vm1169_vm2, %v7713_v13, 0 }
0x1395   : > { %v7706_v40 = vpack.c.bf16 %v3205_v38, %v3205_v38  ;;  %v3275_v43 = vsel %vm1032_vm1, %v7704_v37, 0 }
0x1396   : > { %6224 = vmatpush3.bf16.xpose.msra.mxu0 %v3275_v43  ;;  %v3441_v62 = vsel %vm1169_vm2, %v7718_v56, 0 }
0x1397   : > { %v3321_v21 = vsel %vm1032_vm1, %v7706_v40, 0  ;;  %6235 = vmatprep.subr.bf16.mxu0 %v6936_v4 }
0x1398   : > { %6230 = vmatpush3.bf16.xpose.msra.mxu1 %v3321_v21 }
0x1399   : > { %6241 = vmatprep.subr.bf16.mxu1 %v6936_v4 }
0x139d   : > { %6226 = vmatmul.mubr.msk.bf16.vlgmr.msra.gmra.mrb[48].mxu0 %vm1032_vm1, %v7716_v19 }
0x139e   : > { %6236 = vmatpush3.bf16.msra.mxu0 %v3395_v58  ;;  %6237 = vmatprep.mubr.msk.bf16.mxu0 %vm6938_vm0, %v6936_v4 }
0x139f   : > { %6232 = vmatmul.mubr.msk.bf16.vlgmr.msra.gmra.mrb[64].mxu1 %vm1032_vm1, %v7720_v61  ;;  %6247 = vmatprep.subr.bf16.mxu0 %v6936_v4 }
0x13a0   : > { %6242 = vmatpush3.bf16.msra.mxu1 %v3441_v62  ;;  %6243 = vmatprep.mubr.msk.bf16.mxu1 %vm6938_vm0, %v6936_v4 }
0x13a1   : > { %6253 = vmatprep.subr.bf16.mxu1 %v6936_v4 }
0x1470   : > { %v3311_v50 = vpop.f32.mrb[48].mxu0 }
0x1471   : > { %v3363_v63 = vmul.f32 0.17677669, %v3311_v50  ;;  %v6227_v51 = vpop.f32.mrb[49].mxu0 }
0x1472   : > { %v3314_v0 = vpop.f32.mrb[50].mxu0  ;;  %v3357_v1 = vpop.f32.mrb[64].mxu1 }
0x1473   : > { %v3364_v31 = vmul.f32 0.17677669, %v3357_v1  ;;  %v6228_v41 = vpop.f32.mrb[51].mxu0  ;;  %v6233_v2 = vpop.f32.mrb[65].mxu1  ;;  %v3365_v42 = vadd.f32 %v7737_v32, %v3363_v63 }
0x1474   : > { %v3360_v3 = vpop.f32.mrb[66].mxu1 }
0x1475   : > { %v6234_v5 = vpop.f32.mrb[67].mxu1  ;;  %v3367_v6 = vsel %vm1141_vm3, %v3365_v42, -inf  ;;  %v3366_v7 = vadd.f32 %v7742_v35, %v3364_v31 }
0x1476   : > { %3368 = vmax.xlane.f32.xlu0 %v3367_v6 }
0x1477   : > { %v3370_v8 = vsel %vm1141_vm3, %v3366_v7, -inf }
0x1478   : > { %3371 = vmax.xlane.f32.xlu1 %v3370_v8 }
0x1489   : > { %3540 = vrot.lane.b32.xlu1 %v7706_v40, %s6939_s25 }
0x1503   : > { %v3369_v10 = vpop.xlane.xlu0 %3368 }
0x1504   : > { %v3373_v48 = vsub.f32 %v3365_v42, %v3369_v10 }
0x1505   : > { %v3372_v36 = vpop.xlane.xlu1 %3371 }
0x1506   : > { %v3375_v49 = vmul.f32 1.442695, %v3373_v48  ;;  %v3374_v9 = vsub.f32 %v3366_v7, %v3372_v36 }
0x1508   : > { %6736 = vpow2.f32 %v3375_v49  ;;  %v3377_v11 = vmul.f32 1.442695, %v3374_v9 }
0x1509   : > { %v3541_v20 = vpop.permute.xlu1 %3540 }
0x150a   : > { %6738 = vpow2.f32 %v3377_v11  ;;  %v3546_v34 = vsel %vm1032_vm1, %v3541_v20, 0 }
0x1512   : > { %v6737_v15 = vpop.eup %6736 }
0x1513   : > { %v3379_v52 = vsel %vm1141_vm3, %v6737_v15, 0.0 }
0x1514   : > { %v6739_v12 = vpop.eup %6738  ;;  %3380 = vadd.xlane.f32.xlu0 %v3379_v52 }
0x1515   : > { %v3382_v16 = vsel %vm1141_vm3, %v6739_v12, 0.0 }
0x1516   : > { %3383 = vadd.xlane.f32.xlu1 %v3382_v16 }
0x1527   : > { %3485 = vrot.lane.b32.xlu1 %v7716_v19, %s6939_s25 }
0x152a   : > { %3488 = vrot.lane.b32.xlu0 %v7704_v37, %s6939_s25 }
0x152b   : > { %3537 = vrot.lane.b32.xlu1 %v7720_v61, %s6939_s25 }
0x15a1   : > { %v3381_v60 = vpop.xlane.xlu0 %3380 }
0x15a2   : > { %6740 = vrcp.f32 %v3381_v60 }
0x15a3   : > { %v3384_v22 = vpop.xlane.xlu1 %3383 }
0x15a4   : > { %6742 = vrcp.f32 %v3384_v22 }
0x15a5   : > { %v3489_v26 = vpop.permute.xlu0 %3488 }
0x15a6   : > { %v3494_v28 = vsel %vm1032_vm1, %v3489_v26, 0 }
0x15a7   : > { %v3486_v46 = vpop.permute.xlu1 %3485 }
0x15ab   : > { %v3538_v47 = vpop.permute.xlu1 %3537 }
0x15ac   : > { %v6741_v23 = vpop.eup %6740 }
0x15ad   : > { %v3387_v25 = vmul.f32 %v6741_v23, %v6737_v15 }
0x15ae   : > { %v6743_v18 = vpop.eup %6742 }
0x15af   : > { %v3388_v27 = vmul.f32 %v6743_v18, %v6739_v12  ;;  %v3389_v14 = vpack.c.bf16 %v3387_v25, %v3387_v25 }
0x15b1   : > { %6238 = vmatmul.mubr.msk.bf16.vlgmr.msra.gmra.mrb[52].mxu0 %vm1141_vm3, %v3389_v14  ;;  %v3390_v33 = vpack.c.bf16 %v3388_v27, %v3388_v27  ;;  %v6566_v14 = vld [vmem:[#allocation2 + $0x50] sm:$0xff]  }
0x15b2   : > { %6248 = vmatpush3.bf16.xpose.msra.mxu0 %v3494_v28  ;;  %6249 = vmatprep.mubr.msk.bf16.mxu0 %vm6938_vm0, %v6936_v4 }
0x15b3   : > { %6244 = vmatmul.mubr.msk.bf16.vlgmr.msra.gmra.mrb[68].mxu1 %vm1141_vm3, %v3390_v33  ;;  %6259 = vmatprep.subr.bf16.mxu0 %v6936_v4 }
0x15b4   : > { %6254 = vmatpush3.bf16.xpose.msra.mxu1 %v3546_v34  ;;  %6255 = vmatprep.mubr.msk.bf16.mxu1 %vm6938_vm0, %v6936_v4 }
0x15b5   : > { %6265 = vmatprep.subr.bf16.mxu1 %v6936_v4 }
0x15b9   : > { %6250 = vmatmul.mubr.msk.bf16.vlgmr.msra.gmra.mrb[56].mxu0 %vm1032_vm1, %v3486_v46  ;;  %v6564_v46 = vld [vmem:[#allocation2 + $0x40] sm:$0xff]  }
0x15ba   : > { %6261 = vmatprep.mubr.msk.bf16.mxu0 %vm6938_vm0, %v6936_v4 }
0x15bb   : > { %6256 = vmatmul.mubr.msk.bf16.vlgmr.msra.gmra.mrb[72].mxu1 %vm1032_vm1, %v3538_v47 }
0x15bc   : > { %6267 = vmatprep.mubr.msk.bf16.mxu1 %vm6938_vm0, %v6936_v4 }
0x1684   : > { %v7772_v38 = vpop.f32.mrb[52].mxu0 }
0x1685   : > { %v6239_v39 = vpop.f32.mrb[53].mxu0 }
0x1686   : > { %v3434_v43 = vpop.f32.mrb[54].mxu0  ;;  %v7774_v44 = vpop.f32.mrb[68].mxu1  ;;  %v6567_v39 = vld [vmem:[#allocation2 + $0x58] sm:$0xff]  }
0x1687   : > { %v3483_v45 = vpack.c.bf16 %v7774_v44, %v7772_v38  ;;  %v6240_v21 = vpop.f32.mrb[55].mxu0  ;;  %v6245_v53 = vpop.f32.mrb[69].mxu1  ;;  %v6565_v43 = vld [vmem:[#allocation2 + $0x48] sm:$0xff]  }
0x1688   : > { %v3480_v58 = vpop.f32.mrb[70].mxu1 }
0x1689   : > { %v6246_v62 = vpop.f32.mrb[71].mxu1 }
0x168c   : > { %v3530_v50 = vpop.f32.mrb[56].mxu0 }
0x168d   : > { %v3588_v63 = vmul.f32 0.17677669, %v3530_v50  ;;  %v6251_v51 = vpop.f32.mrb[57].mxu0 }
0x168e   : > { %v3533_v0 = vpop.f32.mrb[58].mxu0  ;;  %v3582_v1 = vpop.f32.mrb[72].mxu1 }
0x168f   : > { %v3589_v31 = vmul.f32 0.17677669, %v3582_v1  ;;  %v6252_v41 = vpop.f32.mrb[59].mxu0  ;;  %v6257_v2 = vpop.f32.mrb[73].mxu1  ;;  %v3590_v42 = vadd.f32 %v7737_v32, %v3588_v63 }
0x1690   : > { %v3585_v3 = vpop.f32.mrb[74].mxu1 }
0x1691   : > { %v6258_v5 = vpop.f32.mrb[75].mxu1  ;;  %v3592_v6 = vsel %vm1141_vm3, %v3590_v42, -inf  ;;  %v3591_v7 = vadd.f32 %v7742_v35, %v3589_v31 }
0x1692   : > { %3593 = vmax.xlane.f32.xlu0 %v3592_v6 }
0x1693   : > { %v3595_v8 = vsel %vm1141_vm3, %v3591_v7, -inf }
0x1694   : > { %3596 = vmax.xlane.f32.xlu1 %v3595_v8 }
0x16a5   : > { %3666 = vrot.lane.b32.xlu1 %v7718_v56, %s6939_s25 }
0x16a9   : > { %3829 = vrot.lane.b32.xlu1 %v7704_v37, %s6940_s18 }
0x16ad   : > { %3879 = vrot.lane.b32.xlu1 %v7706_v40, %s6940_s18 }
0x16b1   : > { %3877 = vrot.lane.b32.xlu1 %v7720_v61, %s6940_s18 }
0x171f   : > { %v3594_v10 = vpop.xlane.xlu0 %3593 }
0x1720   : > { %v3598_v48 = vsub.f32 %v3590_v42, %v3594_v10 }
0x1721   : > { %v3597_v36 = vpop.xlane.xlu1 %3596 }
0x1722   : > { %v3600_v49 = vmul.f32 1.442695, %v3598_v48  ;;  %v3599_v9 = vsub.f32 %v3591_v7, %v3597_v36 }
0x1724   : > { %6744 = vpow2.f32 %v3600_v49  ;;  %v3602_v11 = vmul.f32 1.442695, %v3599_v9 }
0x1725   : > { %v3667_v15 = vpop.permute.xlu1 %3666 }
0x1726   : > { %6746 = vpow2.f32 %v3602_v11  ;;  %v3672_v52 = vsel %vm1169_vm2, %v3667_v15, 0 }
0x1727   : > { %6266 = vmatpush3.bf16.msra.mxu1 %v3672_v52 }
0x1728   : > { %6279 = vmatprep.subr.bf16.mxu1 %v6936_v4 }
0x1729   : > { %v3830_v21 = vpop.permute.xlu1 %3829 }
0x172a   : > { %v3835_v31 = vsel %vm1032_vm1, %v3830_v21, 0 }
0x172d   : > { %v3880_v53 = vpop.permute.xlu1 %3879 }
0x172e   : > { %v6745_v12 = vpop.eup %6744  ;;  %v3885_v58 = vsel %vm1032_vm1, %v3880_v53, 0 }
0x172f   : > { %v3604_v16 = vsel %vm1141_vm3, %v6745_v12, 0.0 }
0x1730   : > { %v6747_v20 = vpop.eup %6746  ;;  %3605 = vadd.xlane.f32.xlu0 %v3604_v16 }
0x1731   : > { %v3607_v60 = vsel %vm1141_vm3, %v6747_v20, 0.0  ;;  %v3878_v62 = vpop.permute.xlu1 %3877 }
0x1734   : > { %3608 = vadd.xlane.f32.xlu0 %v3607_v60 }
0x174a   : > { %3617 = vrot.lane.b32.xlu0 %v7713_v13, %s6939_s25 }
0x174e   : > { %3827 = vrot.lane.b32.xlu0 %v7716_v19, %s6940_s18 }
0x17bd   : > { %v3606_v22 = vpop.xlane.xlu0 %3605 }
0x17be   : > { %6748 = vrcp.f32 %v3606_v22 }
0x17c1   : > { %v3609_v23 = vpop.xlane.xlu0 %3608 }
0x17c2   : > { %6750 = vrcp.f32 %v3609_v23 }
0x17c5   : > { %v3618_v25 = vpop.permute.xlu0 %3617 }
0x17c6   : > { %v3623_v18 = vsel %vm1169_vm2, %v3618_v25, 0 }
0x17c7   : > { %6260 = vmatpush3.bf16.msra.mxu0 %v3623_v18 }
0x17c8   : > { %v6749_v26 = vpop.eup %6748  ;;  %6271 = vmatprep.subr.bf16.mxu0 %v6936_v4 }
0x17c9   : > { %v3612_v27 = vmul.f32 %v6749_v26, %v6745_v12  ;;  %v3828_v3 = vpop.permute.xlu0 %3827 }
0x17cb   : > { %v3614_v28 = vpack.c.bf16 %v3612_v27, %v3612_v27 }
0x17cc   : > { %v6751_v33 = vpop.eup %6750 }
0x17cd   : > { %v3613_v34 = vmul.f32 %v6751_v33, %v6747_v20  ;;  %6262 = vmatmul.mubr.msk.bf16.vlgmr.msra.gmra.mrb[60].mxu0 %vm1141_vm3, %v3614_v28 }
0x17ce   : > { %6272 = vmatpush3.bf16.msra.mxu0 %v6566_v14  ;;  %6275 = vmatprep.mubr.msk.bf16.mxu0 %vm6938_vm0, %v6936_v4 }
0x17cf   : > { %v3615_v47 = vpack.c.bf16 %v3613_v34, %v3613_v34  ;;  %6273 = vmatprep.subr.bf16.mxu0 %v6936_v4 }
0x17d1   : > { %6268 = vmatmul.mubr.msk.bf16.vlgmr.msra.gmra.mrb[76].mxu1 %vm1141_vm3, %v3615_v47 }
0x17d2   : > { %6280 = vmatpush3.bf16.msra.mxu1 %v6564_v46  ;;  %6283 = vmatprep.mubr.msk.bf16.mxu1 %vm6938_vm0, %v6936_v4 }
0x17d3   : > { %6281 = vmatprep.subr.bf16.mxu1 %v6936_v4  ;;  %6274 = vmatpush3.bf16.msra.mxu0 %v6567_v39 }
0x17d4   : > { %6287 = vmatprep.subr.bf16.mxu0 %v6936_v4 }
0x17d6   : > { %6282 = vmatpush3.bf16.msra.mxu1 %v6565_v43 }
0x17d7   : > { %6293 = vmatprep.subr.bf16.mxu1 %v6936_v4 }
0x17d9   : > { %6284 = vmatmul.mubr.msk.bf16.vlgmr.msra.gmra.mrb[80].mxu1 %vm1032_vm1, %v3483_v45 }
0x17da   : > { %6295 = vmatprep.mubr.msk.bf16.mxu1 %vm6938_vm0, %v6936_v4 }
0x17df   : > { %6294 = vmatpush3.bf16.xpose.msra.mxu1 %v3885_v58 }
0x17e0   : > { %6305 = vmatprep.subr.bf16.mxu1 %v6936_v4 }
0x17e6   : > { %6296 = vmatmul.mubr.msk.bf16.vlgmr.msra.gmra.mrb[84].mxu1 %vm1032_vm1, %v3878_v62 }
0x17e7   : > { %6307 = vmatprep.mubr.msk.bf16.mxu1 %vm6938_vm0, %v6936_v4 }
0x18a0   : > { %v3659_v50 = vpop.f32.mrb[60].mxu0 }
0x18a1   : > { %v6263_v63 = vpop.f32.mrb[61].mxu0 }
0x18a2   : > { %v3662_v38 = vpop.f32.mrb[62].mxu0 }
0x18a3   : > { %v6264_v44 = vpop.f32.mrb[63].mxu0 }
0x18a4   : > { %v3708_v45 = vpop.f32.mrb[76].mxu1 }
0x18a5   : > { %v3714_v51 = vpack.c.bf16 %v3708_v45, %v3659_v50  ;;  %v6269_v0 = vpop.f32.mrb[77].mxu1 }
0x18a6   : > { %v3711_v1 = vpop.f32.mrb[78].mxu1 }
0x18a7   : > { %v6270_v41 = vpop.f32.mrb[79].mxu1  ;;  %6276 = vmatmul.mubr.msk.bf16.vlgmr.msra.gmra.mrb[64].mxu0 %vm1032_vm1, %v3714_v51 }
0x18a8   : > { %6288 = vmatpush3.bf16.xpose.msra.mxu0 %v3835_v31  ;;  %6289 = vmatprep.mubr.msk.bf16.mxu0 %vm6938_vm0, %v6936_v4  ;;  %v6568_v41 = vld [vmem:[#allocation2 + $0x60] sm:$0xff]  }
0x18a9   : > { %6299 = vmatprep.subr.bf16.mxu0 %v6936_v4 }
0x18ac   : > { %v3820_v2 = vpop.f32.mrb[80].mxu1 }
0x18ad   : > { %v6285_v42 = vpop.f32.mrb[81].mxu1 }
0x18ae   : > { %v3823_v5 = vpop.f32.mrb[82].mxu1 }
0x18af   : > { %v6286_v6 = vpop.f32.mrb[83].mxu1  ;;  %6290 = vmatmul.mubr.msk.bf16.vlgmr.msra.gmra.mrb[68].mxu0 %vm1032_vm1, %v3828_v3 }
0x18b0   : > { %6301 = vmatprep.mubr.msk.bf16.mxu0 %vm6938_vm0, %v6936_v4  ;;  %v6569_v6 = vld [vmem:[#allocation2 + $0x68] sm:$0xff]  }
0x18b9   : > { %v3921_v7 = vpop.f32.mrb[84].mxu1 }
0x18ba   : > { %v3928_v8 = vmul.f32 0.17677669, %v3921_v7  ;;  %v6297_v10 = vpop.f32.mrb[85].mxu1 }
0x18bb   : > { %v3924_v48 = vpop.f32.mrb[86].mxu1 }
0x18bc   : > { %v6298_v36 = vpop.f32.mrb[87].mxu1  ;;  %v3930_v49 = vadd.f32 %v7742_v35, %v3928_v8 }
0x18be   : > { %v3934_v9 = vsel %vm1141_vm3, %v3930_v49, -inf }
0x18bf   : > { %3935 = vmax.xlane.f32.xlu1 %v3934_v9 }
0x18d0   : > { %4003 = vrot.lane.b32.xlu1 %v7718_v56, %s6940_s18 }
0x18d4   : > { %4112 = vrot.lane.b32.xlu1 %v7704_v37, %s6941_s16 }
0x18d8   : > { %4162 = vrot.lane.b32.xlu1 %v7706_v40, %s6941_s16 }
0x18dc   : > { %4160 = vrot.lane.b32.xlu1 %v7720_v61, %s6941_s16 }
0x194c   : > { %v3936_v11 = vpop.xlane.xlu1 %3935 }
0x194d   : > { %v3938_v12 = vsub.f32 %v3930_v49, %v3936_v11 }
0x194f   : > { %v3941_v16 = vmul.f32 1.442695, %v3938_v12 }
0x1950   : > { %v4004_v15 = vpop.permute.xlu1 %4003 }
0x1951   : > { %v4009_v52 = vsel %vm1169_vm2, %v4004_v15, 0  ;;  %6752 = vpow2.f32 %v3941_v16 }
0x1952   : > { %6306 = vmatpush3.bf16.msra.mxu1 %v4009_v52 }
0x1953   : > { %6319 = vmatprep.subr.bf16.mxu1 %v6936_v4 }
0x1954   : > { %v4113_v50 = vpop.permute.xlu1 %4112 }
0x1955   : > { %v4118_v38 = vsel %vm1032_vm1, %v4113_v50, 0 }
0x1958   : > { %v4163_v11 = vpop.permute.xlu1 %4162 }
0x195b   : > { %v6753_v33 = vpop.eup %6752 }
0x195c   : > { %v3946_v34 = vsel %vm1141_vm3, %v6753_v33, 0.0 }
0x197a   : > { %v3764_v20 = vpop.f32.mrb[64].mxu0 }
0x197b   : > { %v7841_v60 = vadd.f32 %v3820_v2, %v3764_v20  ;;  %v6277_v22 = vpop.f32.mrb[65].mxu0  ;;  %v4168_v20 = vsel %vm1032_vm1, %v4163_v11, 0 }
0x197c   : > { %v3767_v37 = vpop.f32.mrb[66].mxu0 }
0x197d   : > { %v7843_v23 = vadd.f32 %v3823_v5, %v3767_v37  ;;  %v6278_v40 = vpop.f32.mrb[67].mxu0 }
0x1982   : > { %v3871_v25 = vpop.f32.mrb[68].mxu0 }
0x1983   : > { %v3927_v61 = vmul.f32 0.17677669, %v3871_v25  ;;  %v6291_v18 = vpop.f32.mrb[69].mxu0 }
0x1984   : > { %v3874_v26 = vpop.f32.mrb[70].mxu0 }
0x1985   : > { %v6292_v27 = vpop.f32.mrb[71].mxu0  ;;  %v3929_v14 = vadd.f32 %v7737_v32, %v3927_v61 }
0x1987   : > { %v3931_v28 = vsel %vm1141_vm3, %v3929_v14, -inf }
0x1988   : > { %3932 = vmax.xlane.f32.xlu0 %v3931_v28 }
0x198c   : > { %3947 = vadd.xlane.f32.xlu0 %v3946_v34 }
0x1a15   : > { %v3933_v46 = vpop.xlane.xlu0 %3932 }
0x1a16   : > { %v3937_v47 = vsub.f32 %v3929_v14, %v3933_v46 }
0x1a18   : > { %v3939_v39 = vmul.f32 1.442695, %v3937_v47 }
0x1a19   : > { %v3948_v43 = vpop.xlane.xlu0 %3947 }
0x1a1a   : > { %6754 = vpow2.f32 %v3939_v39 }
0x1a1b   : > { %6756 = vrcp.f32 %v3948_v43 }
0x1a24   : > { %v6755_v21 = vpop.eup %6754 }
0x1a25   : > { %v6757_v53 = vpop.eup %6756  ;;  %v3943_v58 = vsel %vm1141_vm3, %v6755_v21, 0.0 }
0x1a26   : > { %v3952_v62 = vmul.f32 %v6757_v53, %v6753_v33  ;;  %3944 = vadd.xlane.f32.xlu0 %v3943_v58 }
0x1a28   : > { %v3954_v63 = vpack.c.bf16 %v3952_v62, %v3952_v62 }
0x1a2a   : > { %6308 = vmatmul.mubr.msk.bf16.vlgmr.msra.gmra.mrb[88].mxu1 %vm1141_vm3, %v3954_v63 }
0x1a2b   : > { %6320 = vmatpush3.bf16.xpose.msra.mxu1 %v4118_v38  ;;  %6321 = vmatprep.mubr.msk.bf16.mxu1 %vm6938_vm0, %v6936_v4 }
0x1a2c   : > { %6331 = vmatprep.subr.bf16.mxu1 %v6936_v4 }
0x1a3c   : > { %3955 = vrot.lane.b32.xlu0 %v7713_v13, %s6940_s18 }
0x1a40   : > { %4110 = vrot.lane.b32.xlu0 %v7716_v19, %s6941_s16 }
0x1ab3   : > { %v3945_v44 = vpop.xlane.xlu0 %3944 }
0x1ab4   : > { %6758 = vrcp.f32 %v3945_v44 }
0x1ab7   : > { %v3956_v45 = vpop.permute.xlu0 %3955 }
0x1ab8   : > { %v3961_v51 = vsel %vm1169_vm2, %v3956_v45, 0 }
0x1ab9   : > { %6300 = vmatpush3.bf16.msra.mxu0 %v3961_v51 }
0x1aba   : > { %6311 = vmatprep.subr.bf16.mxu0 %v6936_v4 }
0x1abb   : > { %v4111_v0 = vpop.permute.xlu0 %4110 }
0x1abc   : > { %6322 = vmatmul.mubr.msk.bf16.vlgmr.msra.gmra.mrb[92].mxu1 %vm1032_vm1, %v4111_v0 }
0x1abd   : > { %6333 = vmatprep.mubr.msk.bf16.mxu1 %vm6938_vm0, %v6936_v4 }
0x1abe   : > { %v6759_v1 = vpop.eup %6758 }
0x1abf   : > { %v3951_v31 = vmul.f32 %v6759_v1, %v6755_v21 }
0x1ac1   : > { %v3953_v2 = vpack.c.bf16 %v3951_v31, %v3951_v31 }
0x1ac3   : > { %6302 = vmatmul.mubr.msk.bf16.vlgmr.msra.gmra.mrb[72].mxu0 %vm1141_vm3, %v3953_v2 }
0x1ac4   : > { %6312 = vmatpush3.bf16.msra.mxu0 %v6568_v41  ;;  %6315 = vmatprep.mubr.msk.bf16.mxu0 %vm6938_vm0, %v6936_v4 }
0x1ac5   : > { %6313 = vmatprep.subr.bf16.mxu0 %v6936_v4 }
0x1ac8   : > { %6314 = vmatpush3.bf16.msra.mxu0 %v6569_v6 }
0x1ac9   : > { %6325 = vmatprep.subr.bf16.mxu0 %v6936_v4 }
0x1afd   : > { %v4045_v19 = vpop.f32.mrb[88].mxu1 }
0x1afe   : > { %v6309_v42 = vpop.f32.mrb[89].mxu1 }
0x1aff   : > { %v4048_v3 = vpop.f32.mrb[90].mxu1  ;;  %v6571_v42 = vld [vmem:[#allocation2 + $0x78] sm:$0xff]  }
0x1b00   : > { %v6310_v5 = vpop.f32.mrb[91].mxu1 }
0x1b8f   : > { %v4154_v7 = vpop.f32.mrb[92].mxu1 }
0x1b90   : > { %v4210_v8 = vmul.f32 0.17677669, %v4154_v7  ;;  %v6323_v10 = vpop.f32.mrb[93].mxu1 }
0x1b91   : > { %v4157_v48 = vpop.f32.mrb[94].mxu1 }
0x1b92   : > { %v6324_v36 = vpop.f32.mrb[95].mxu1  ;;  %v4212_v49 = vadd.f32 %v7737_v32, %v4210_v8  ;;  %v4161_v32 = vpop.permute.xlu1 %4160 }
0x1b94   : > { %v4214_v9 = vsel %vm1141_vm3, %v4212_v49, -inf }
0x1b95   : > { %4215 = vmax.xlane.f32.xlu0 %v4214_v9 }
0x1b96   : > { %v3997_v15 = vpop.f32.mrb[72].mxu0 }
0x1b97   : > { %v4051_v52 = vpack.c.bf16 %v4045_v19, %v3997_v15  ;;  %v6303_v12 = vpop.f32.mrb[73].mxu0  ;;  %v6570_v19 = vld [vmem:[#allocation2 + $0x70] sm:$0xff]  }
0x1b98   : > { %v4000_v16 = vpop.f32.mrb[74].mxu0 }
0x1b99   : > { %v6304_v22 = vpop.f32.mrb[75].mxu0  ;;  %6316 = vmatmul.mubr.msk.bf16.vlgmr.msra.gmra.mrb[76].mxu0 %vm1032_vm1, %v4051_v52 }
0x1b9a   : > { %6326 = vmatpush3.bf16.xpose.msra.mxu0 %v4168_v20  ;;  %6327 = vmatprep.mubr.msk.bf16.mxu0 %vm6938_vm0, %v6936_v4 }
0x1b9b   : > { %6337 = vmatprep.subr.bf16.mxu0 %v6936_v4 }
0x1ba1   : > { %6328 = vmatmul.mubr.msk.bf16.vlgmr.msra.gmra.mrb[80].mxu0 %vm1032_vm1, %v4161_v32 }
0x1ba2   : > { %6339 = vmatprep.mubr.msk.bf16.mxu0 %vm6938_vm0, %v6936_v4 }
0x1c22   : > { %v4216_v37 = vpop.xlane.xlu0 %4215 }
0x1c23   : > { %v4220_v40 = vsub.f32 %v4212_v49, %v4216_v37 }
0x1c25   : > { %v4222_v25 = vmul.f32 1.442695, %v4220_v40  ;;  %v6572_v40 = vld [vmem:[#allocation4 + $0x100] ss:$16 sps:$4 sm:$0xff]  }
0x1c27   : > { %6760 = vpow2.f32 %v4222_v25  ;;  %v6574_v25 = vld [vmem:[#allocation4 + $0x104] ss:$16 sps:$4 sm:$0xff]  }
0x1c31   : > { %v6761_v61 = vpop.eup %6760 }
0x1c32   : > { %v4226_v18 = vsel %vm1141_vm3, %v6761_v61, 0.0 }
0x1c33   : > { %4227 = vadd.xlane.f32.xlu0 %v4226_v18  ;;  %v6577_v18 = vld [vmem:[#allocation4 + $0x10c] ss:$16 sps:$4 sm:$0xff]  }
0x1c6c   : > { %v4101_v26 = vpop.f32.mrb[76].mxu0 }
0x1c6d   : > { %v4108_v27 = vadd.f32 %v4101_v26, %v7841_v60  ;;  %v6317_v14 = vpop.f32.mrb[77].mxu0  ;;  %v6580_v26 = vld [vmem:[#allocation4 + $0x124] ss:$16 sps:$4 sm:$0xff]  }
0x1c6e   : > { %v4104_v28 = vpop.f32.mrb[78].mxu0  ;;  %v6583_v14 = vld [vmem:[#allocation4 + $0x12c] ss:$16 sps:$4 sm:$0xff]  }
0x1c6f   : > { %v4109_v33 = vadd.f32 %v4104_v28, %v7843_v23  ;;  %v6318_v34 = vpop.f32.mrb[79].mxu0  ;;  %v6581_v28 = vld [vmem:[#allocation4 + $0x128] ss:$16 sps:$4 sm:$0xff]  }
0x1c74   : > { %v4204_v46 = vpop.f32.mrb[80].mxu0 }
0x1c75   : > { %v4211_v47 = vmul.f32 0.17677669, %v4204_v46  ;;  %v6329_v39 = vpop.f32.mrb[81].mxu0 }
0x1c76   : > { %v4207_v43 = vpop.f32.mrb[82].mxu0 }
0x1c77   : > { %v6330_v21 = vpop.f32.mrb[83].mxu0  ;;  %v4213_v53 = vadd.f32 %v7742_v35, %v4211_v47 }
0x1c78   : > { %v6586_v21 = vld [vmem:[#allocation4 + $0x144] ss:$16 sps:$4 sm:$0xff]  }
0x1c79   : > { %v4217_v58 = vsel %vm1141_vm3, %v4213_v53, -inf }
0x1c7a   : > { %4218 = vmax.xlane.f32.xlu1 %v4217_v58  ;;  %v6584_v58 = vld [vmem:[#allocation4 + $0x140] ss:$16 sps:$4 sm:$0xff]  }
0x1c8b   : > { %4286 = vrot.lane.b32.xlu1 %v7718_v56, %s6941_s16 }
0x1cc0   : > { %v4228_v35 = vpop.xlane.xlu0 %4227 }
0x1d07   : > { %v4219_v62 = vpop.xlane.xlu1 %4218 }
0x1d08   : > { %v4221_v60 = vsub.f32 %v4213_v53, %v4219_v62  ;;  %v6589_v53 = vld [vmem:[#allocation4 + $0x14c] ss:$16 sps:$4 sm:$0xff]   ;;  %v6587_v62 = vld [vmem:[#allocation4 + $0x148] ss:$16 sps:$4 sm:$0xff]  }
0x1d0a   : > { %v4224_v50 = vmul.f32 1.442695, %v4221_v60  ;;  %v6592_v60 = vld [vmem:[#allocation4 + $0x164] ss:$16 sps:$4 sm:$0xff]  }
0x1d0b   : > { %v4287_v63 = vpop.permute.xlu1 %4286 }
0x1d0c   : > { %6762 = vpow2.f32 %v4224_v50  ;;  %v4292_v23 = vsel %vm1169_vm2, %v4287_v63, 0  ;;  %v6595_v50 = vld [vmem:[#allocation4 + $0x16c] ss:$16 sps:$4 sm:$0xff]   ;;  %v6590_v63 = vld [vmem:[#allocation4 + $0x160] ss:$16 sps:$4 sm:$0xff]  }
0x1d0d   : > { %6338 = vmatpush3.bf16.msra.mxu0 %v4292_v23  ;;  %6764 = vrcp.f32 %v4228_v35  ;;  %v6593_v23 = vld [vmem:[#allocation4 + $0x168] ss:$16 sps:$4 sm:$0xff]  }
0x1d0e   : > { %4664 = vmatprep.subr.bf16.mxu0 %v6574_v25  ;;  %v6599_v35 = vld [vmem:[#allocation4 + $0x188] ss:$16 sps:$4 sm:$0xff]   ;;  %v6622_v25 = vld [vmem:[#allocation6 + $0x100] sm:$0xff]  }
0x1d16   : > { %v6763_v38 = vpop.eup %6762 }
0x1d17   : > { %v4229_v44 = vsel %vm1141_vm3, %v6763_v38, 0.0  ;;  %v6765_v45 = vpop.eup %6764 }
0x1d18   : > { %4230 = vadd.xlane.f32.xlu0 %v4229_v44  ;;  %v4234_v56 = vmul.f32 %v6765_v45, %v6761_v61  ;;  %v6575_v61 = vld [vmem:[#allocation4 + $0x108] ss:$16 sps:$4 sm:$0xff]   ;;  %v6598_v44 = vld [vmem:[#allocation4 + $0x184] ss:$16 sps:$4 sm:$0xff]   ;;  %v6601_v45 = vld [vmem:[#allocation4 + $0x18c] ss:$16 sps:$4 sm:$0xff]  }
0x1d1a   : > { %v4236_v31 = vpack.c.bf16 %v4234_v56, %v4234_v56  ;;  %v6607_v56 = vld [vmem:[#allocation4 + $0x1ac] ss:$16 sps:$4 sm:$0xff]  }
0x1d2e   : > { %4238 = vrot.lane.b32.xlu0 %v7713_v13, %s6941_s16  ;;  %s8054_s16 = sld [smem:[#allocation19_spill]] }
0x1da5   : > { %v4231_v51 = vpop.xlane.xlu0 %4230 }
0x1da6   : > { %6766 = vrcp.f32 %v4231_v51  ;;  %v6604_v51 = vld [vmem:[#allocation4 + $0x1a4] ss:$16 sps:$4 sm:$0xff]  }
0x1da9   : > { %v4239_v0 = vpop.permute.xlu0 %4238 }
0x1daa   : > { %v4244_v1 = vsel %vm1169_vm2, %v4239_v0, 0  ;;  %v6602_v0 = vld [vmem:[#allocation4 + $0x1a0] ss:$16 sps:$4 sm:$0xff]  }
0x1dab   : > { %6332 = vmatpush3.bf16.msra.mxu1 %v4244_v1  ;;  %v6605_v1 = vld [vmem:[#allocation4 + $0x1a8] ss:$16 sps:$4 sm:$0xff]  }
0x1dac   : > { %6343 = vmatprep.subr.bf16.mxu1 %v6936_v4 }
0x1dae   : > { %6334 = vmatmul.mubr.msk.bf16.vlgmr.msra.gmra.mrb[96].mxu1 %vm1141_vm3, %v4236_v31  ;;  %v6610_v31 = vld [vmem:[#allocation4 + $0x1c4] ss:$16 sps:$4 sm:$0xff]  }
0x1daf   : > { %6347 = vmatprep.mubr.msk.bf16.mxu1 %vm6938_vm0, %v6936_v4  ;;  %6344 = vmatpush3.bf16.msra.mxu1 %v6570_v19  ;;  %v6616_v19 = vld [vmem:[#allocation4 + $0x1e4] ss:$16 sps:$4 sm:$0xff]  }
0x1db0   : > { %v6767_v41 = vpop.eup %6766  ;;  %6345 = vmatprep.subr.bf16.mxu1 %v6936_v4  ;;  %v5763_v4 = vld [vmem:[%s8013_s8 + $0x1] ss:$0 sm:$0xff] }
0x1db1   : > { %v4235_v13 = vmul.f32 %v6767_v41, %v6763_v38  ;;  %v6596_v38 = vld [vmem:[#allocation4 + $0x180] ss:$16 sps:$4 sm:$0xff]   ;;  %v6613_v41 = vld [vmem:[#allocation4 + $0x1cc] ss:$16 sps:$4 sm:$0xff]  }
0x1db3   : > { %v4237_v2 = vpack.c.bf16 %v4235_v13, %v4235_v13  ;;  %6346 = vmatpush3.bf16.msra.mxu1 %v6571_v42  ;;  %v6608_v13 = vld [vmem:[#allocation4 + $0x1c0] ss:$16 sps:$4 sm:$0xff]   ;;  %v6619_v42 = vld [vmem:[#allocation4 + $0x1ec] ss:$16 sps:$4 sm:$0xff]  }
0x1db4   : > { %4707 = vmatprep.subr.bf16.mxu1 %v6577_v18  ;;  %v6624_v18 = vld [vmem:[#allocation6 + $0x148] sm:$0xff]  }
0x1db5   : > { %6340 = vmatmul.mubr.msk.bf16.vlgmr.msra.gmra.mrb[84].mxu0 %vm1141_vm3, %v4237_v2  ;;  %v6611_v2 = vld [vmem:[#allocation4 + $0x1c8] ss:$16 sps:$4 sm:$0xff]  }
0x1db6   : > { %4696 = vmatprep.mubr.bf16.mxu0 %v6937_v30  ;;  %4665 = vmatpush1.bf16.msra.mxu0 %v6572_v40  ;;  %v6621_v40 = vld [vmem:[#allocation6 + $0x1c0] sm:$0xff]  }
0x1db7   : > { %4666 = vmatprep.subr.bf16.mxu0 %v6580_v26  ;;  %v6625_v26 = vld [vmem:[#allocation6 + $0x1c8] sm:$0xff]  }
0x1e81   : > { %v4280_v3 = vpop.f32.mrb[96].mxu1 }
0x1e82   : > { %v6335_v5 = vpop.f32.mrb[97].mxu1 }
0x1e83   : > { %v4283_v6 = vpop.f32.mrb[98].mxu1  ;;  %v6617_v5 = vld [vmem:[#allocation4 + $0x1e8] ss:$16 sps:$4 sm:$0xff]  }
0x1e84   : > { %v6336_v7 = vpop.f32.mrb[99].mxu1 }
0x1e88   : > { %v4328_v8 = vpop.f32.mrb[84].mxu0 }
0x1e89   : > { %v4334_v10 = vpack.c.bf16 %v4328_v8, %v4280_v3  ;;  %v6341_v48 = vpop.f32.mrb[85].mxu0  ;;  %v6614_v3 = vld [vmem:[#allocation4 + $0x1e0] ss:$16 sps:$4 sm:$0xff]  }
0x1e8a   : > { %v4331_v36 = vpop.f32.mrb[86].mxu0 }
0x1e8b   : > { %v6342_v49 = vpop.f32.mrb[87].mxu0  ;;  %6348 = vmatmul.mubr.msk.bf16.vlgmr.msra.gmra.mrb[100].mxu1 %vm1032_vm1, %v4334_v10 }
0x1e8c   : > { %4739 = vmatprep.mubr.bf16.mxu1 %v6937_v30  ;;  %4708 = vmatpush1.bf16.msra.mxu1 %v6575_v61  ;;  %v6623_v61 = vld [vmem:[#allocation6 + $0x180] sm:$0xff]  }
0x1e8d   : > { %4709 = vmatprep.subr.bf16.mxu1 %v6583_v14  ;;  %v6626_v14 = vld [vmem:[#allocation6 + $0x108] sm:$0xff]  }
0x1e90   : > { %4710 = vmatpush1.bf16.msra.mxu1 %v6581_v28  ;;  %v6628_v28 = vld [vmem:[#allocation6 + $0x150] sm:$0xff]  }
0x1e91   : > { %4711 = vmatprep.subr.bf16.mxu1 %v6589_v53  ;;  %v6638_v53 = vld [vmem:[#allocation6 + $0x120] sm:$0xff]  }
0x1e94   : > { %4712 = vmatpush1.bf16.msra.mxu1 %v6587_v62  ;;  %v6640_v62 = vld [vmem:[#allocation6 + $0x168] sm:$0xff]  }
0x1e95   : > { %4713 = vmatprep.subr.bf16.mxu1 %v6595_v50  ;;  %v6642_v50 = vld [vmem:[#allocation6 + $0x128] sm:$0xff]  }
0x1e98   : > { %4714 = vmatpush1.bf16.msra.mxu1 %v6593_v23  ;;  %v6644_v23 = vld [vmem:[#allocation6 + $0x170] sm:$0xff]  }
0x1e99   : > { %4715 = vmatprep.subr.bf16.mxu1 %v6601_v45  ;;  %v6648_v45 = vld [vmem:[#allocation6 + $0x178] sm:$0xff]  }
0x1e9c   : > { %4716 = vmatpush1.bf16.msra.mxu1 %v6599_v35  ;;  %v6647_v35 = vld [vmem:[#allocation6 + $0x1b0] sm:$0xff]  }
0x1e9d   : > { %4717 = vmatprep.subr.bf16.mxu1 %v6607_v56  ;;  %v6650_v56 = vld [vmem:[#allocation6 + $0x138] sm:$0xff]  }
0x1ea0   : > { %4718 = vmatpush1.bf16.msra.mxu1 %v6605_v1  ;;  %v5768_v1 = vld [vmem:[%s8017_s12 + $0x4] sm:$0xf] }
0x1ea1   : > { %4719 = vmatprep.subr.bf16.mxu1 %v6613_v41  ;;  %v4495_v41 = vrot.slane %v5768_v1, %v7301_v57 }
0x1ea4   : > { %4720 = vmatpush1.bf16.msra.mxu1 %v6611_v2  ;;  %v4499_v2 = vrot.slane %v5768_v1, %v2269_v24 }
0x1ea5   : > { %4721 = vmatprep.subr.bf16.mxu1 %v6619_v42 }
0x1ea8   : > { %4722 = vmatpush1.bf16.msra.mxu1 %v6617_v5 }
0x1ea9   : > { %6033 = vmatprep.subr.bf16.mxu1 %v6621_v40 }
0x1f5e   : > { %v4384_v9 = vpop.f32.mrb[100].mxu1 }
0x1f5f   : > { %v4391_v11 = vadd.f32 %v4384_v9, %v4108_v27  ;;  %v6349_v15 = vpop.f32.mrb[101].mxu1  ;;  %v6578_v27 = vld [vmem:[#allocation4 + $0x120] ss:$16 sps:$4 sm:$0xff]  }
0x1f60   : > { %v4387_v52 = vpop.f32.mrb[102].mxu1  ;;  %4667 = vmatpush1.bf16.msra.mxu0 %v6578_v27  ;;  %v5766_v9 = vld [vmem:[%s8014_s9 + $0x1] ss:$0 sm:$0xff]  ;;  %v6627_v27 = vld [vmem:[#allocation6 + $0x188] sm:$0xff]  }
0x1f61   : > { %v4401_v12 = vadd.f32 %v5763_v4, %v4391_v11  ;;  %v4392_v16 = vadd.f32 %v4387_v52, %v4109_v33  ;;  %v6350_v20 = vpop.f32.mrb[103].mxu1  ;;  %4668 = vmatprep.subr.bf16.mxu0 %v6586_v21  ;;  %v6637_v21 = vld [vmem:[#allocation6 + $0x1e0] sm:$0xff]  }
0x1f63   : > { %v4402_v22 = vadd.f32 %v5763_v4, %v4392_v16  ;;  %v4403_v32 = vadd.f32 %v4401_v12, %v7688_v29  ;;  %v5767_v12 = vld [vmem:[%s8015_s10 + $0x1] ss:$0 sm:$0xff] }
0x1f64   : > { %4669 = vmatpush1.bf16.msra.mxu0 %v6584_v58  ;;  %v6639_v58 = vld [vmem:[#allocation6 + $0x1a0] sm:$0xff]  }
0x1f65   : > { %4409 = vadd.xlane.f32.xlu1 %v4403_v32  ;;  %v4404_v37 = vadd.f32 %v4402_v22, %v7690_v17  ;;  %4670 = vmatprep.subr.bf16.mxu0 %v6592_v60  ;;  %v6641_v60 = vld [vmem:[#allocation6 + $0x1e8] sm:$0xff]  }
0x1f67   : > { %4411 = vadd.xlane.f32.xlu0 %v4404_v37 }
0x1f68   : > { %4671 = vmatpush1.bf16.msra.mxu0 %v6590_v63  ;;  %v6643_v63 = vld [vmem:[#allocation6 + $0x1a8] sm:$0xff]  }
0x1f69   : > { %4672 = vmatprep.subr.bf16.mxu0 %v6598_v44  ;;  %v6646_v44 = vld [vmem:[#allocation6 + $0x130] sm:$0xff]  }
0x1f6c   : > { %4673 = vmatpush1.bf16.msra.mxu0 %v6596_v38  ;;  %v6645_v38 = vld [vmem:[#allocation6 + $0x1f0] sm:$0xff]  }
0x1f6d   : > { %4674 = vmatprep.subr.bf16.mxu0 %v6604_v51  ;;  %v6649_v51 = vld [vmem:[#allocation6 + $0x1f8] sm:$0xff]  }
0x1f70   : > { %4675 = vmatpush1.bf16.msra.mxu0 %v6602_v0  ;;  %v6651_v0 = vld [vmem:[#allocation6 + $0x1b8] sm:$0xff]  }
0x1f71   : > { %4676 = vmatprep.subr.bf16.mxu0 %v6610_v31  ;;  %v4487_v31 = vrot.slane %v5768_v1, %v7305_v59 }
0x1f74   : > { %4677 = vmatpush1.bf16.msra.mxu0 %v6608_v13  ;;  %v4491_v13 = vrot.slane %v5768_v1, %v7295_v55 }
0x1f75   : > { %4678 = vmatprep.subr.bf16.mxu0 %v6616_v19 }
0x1f78   : > { %4679 = vmatpush1.bf16.msra.mxu0 %v6614_v3 }
0x1ff2   : > { %v4410_v29 = vpop.xlane.xlu1 %4409 }
0x1ff3   : > { %v4413_v33 = vmul.f32 0.0078125, %v4410_v29  ;;  %v6629_v29 = vld [vmem:[#allocation6 + $0x1d0] sm:$0xff]  }
0x1ff4   : > { %v4412_v17 = vpop.xlane.xlu0 %4411 }
0x1ff5   : > { %v7904_v34 = vsub.f32 %v4403_v32, %v4413_v33  ;;  %v4414_v46 = vmul.f32 0.0078125, %v4412_v17  ;;  %v6630_v33 = vld [vmem:[#allocation6 + $0x110] sm:$0xff]  }
0x1ff6   : > { %v6631_v17 = vld [vmem:[#allocation6 + $0x190] sm:$0xff]  }
0x1ff7   : > { %v7906_v47 = vsub.f32 %v4404_v37, %v4414_v46  ;;  %v4417_v39 = vmul.f32 %v7904_v34, %v7904_v34  ;;  %v6620_v37 = vld [vmem:[#allocation6 + $0x140] sm:$0xff]   ;;  %v6633_v46 = vld [vmem:[#allocation6 + $0x1d8] sm:$0xff]  }
0x1ff8   : > { %6011 = vmatprep.subr.bf16.mxu0 %v6620_v37 }
0x1ff9   : > { %4419 = vadd.xlane.f32.xlu0 %v4417_v39  ;;  %v4418_v43 = vmul.f32 %v7906_v47, %v7906_v47  ;;  %v6635_v39 = vld [vmem:[#allocation6 + $0x198] sm:$0xff]  }
0x1ffb   : > { %4421 = vadd.xlane.f32.xlu1 %v4418_v43  ;;  %v6636_v43 = vld [vmem:[#allocation6 + $0x160] sm:$0xff]  }
0x2086   : > { %v4420_v6 = vpop.xlane.xlu0 %4419 }
0x2087   : > { %v4423_v7 = vmul.f32 0.0078125, %v4420_v6 }
0x2088   : > { %v4422_v8 = vpop.xlane.xlu1 %4421 }
0x2089   : > { %v4425_v10 = vadd.f32 1e-12, %v4423_v7  ;;  %v4424_v48 = vmul.f32 0.0078125, %v4422_v8 }
0x208b   : > { %6768 = vrsqrt.f32 %v4425_v10  ;;  %v4426_v36 = vadd.f32 1e-12, %v4424_v48 }
0x208d   : > { %6770 = vrsqrt.f32 %v4426_v36 }
0x2095   : > { %v6769_v49 = vpop.eup %6768 }
0x2096   : > { %v4429_v4 = vmul.f32 %v6769_v49, %v7904_v34  ;;  %v6632_v34 = vld [vmem:[#allocation6 + $0x158] sm:$0xff]  }
0x2097   : > { %v6771_v11 = vpop.eup %6770 }
0x2098   : > { %v4430_v15 = vmul.f32 %v6771_v11, %v7906_v47  ;;  %v4437_v52 = vmul.f32 %v5766_v9, %v4429_v4  ;;  %v6634_v47 = vld [vmem:[#allocation6 + $0x118] sm:$0xff]  }
0x209a   : > { %v4438_v16 = vmul.f32 %v5766_v9, %v4430_v15  ;;  %v7920_v20 = vadd.f32 %v5767_v12, %v4437_v52 }
0x209c   : > { %v7922_v22 = vadd.f32 %v5767_v12, %v4438_v16 }
0x209e   : > { %v4447_v32 = vpack.c.bf16 %v7922_v22, %v7920_v20 }
0x20a0   : > { %4697 = vmatmul.mubr.bf16.vlgmr.msra.gmra.mrb[88].mxu0 %v4447_v32  ;;  %4740 = vmatmul.mubr.bf16.vlgmr.msra.gmra.mrb[104].mxu1 %v4447_v32 }
0x20a1   : > { %6012 = vmatpush3.bf16.msra.mxu0 %v6622_v25  ;;  %6034 = vmatpush3.bf16.msra.mxu1 %v6623_v61 }
0x20a2   : > { %6013 = vmatprep.subr.bf16.mxu0 %v6624_v18  ;;  %6035 = vmatprep.subr.bf16.mxu1 %v6625_v26 }
0x20a5   : > { %6014 = vmatpush3.bf16.msra.mxu0 %v6626_v14  ;;  %6036 = vmatpush3.bf16.msra.mxu1 %v6627_v27 }
0x20a6   : > { %6015 = vmatprep.subr.bf16.mxu0 %v6628_v28  ;;  %6037 = vmatprep.subr.bf16.mxu1 %v6629_v29 }
0x20a9   : > { %6016 = vmatpush3.bf16.msra.mxu0 %v6630_v33  ;;  %6038 = vmatpush3.bf16.msra.mxu1 %v6631_v17 }
0x20aa   : > { %6017 = vmatprep.subr.bf16.mxu0 %v6632_v34  ;;  %6039 = vmatprep.subr.bf16.mxu1 %v6633_v46 }
0x20ad   : > { %6018 = vmatpush3.bf16.msra.mxu0 %v6634_v47  ;;  %6040 = vmatpush3.bf16.msra.mxu1 %v6635_v39 }
0x20ae   : > { %6019 = vmatprep.subr.bf16.mxu0 %v6636_v43  ;;  %6041 = vmatprep.subr.bf16.mxu1 %v6637_v21 }
0x20b1   : > { %6020 = vmatpush3.bf16.msra.mxu0 %v6638_v53  ;;  %6042 = vmatpush3.bf16.msra.mxu1 %v6639_v58 }
0x20b2   : > { %6021 = vmatprep.subr.bf16.mxu0 %v6640_v62  ;;  %6043 = vmatprep.subr.bf16.mxu1 %v6641_v60 }
0x20b5   : > { %6022 = vmatpush3.bf16.msra.mxu0 %v6642_v50  ;;  %6044 = vmatpush3.bf16.msra.mxu1 %v6643_v63 }
0x20b6   : > { %6023 = vmatprep.subr.bf16.mxu0 %v6644_v23  ;;  %6045 = vmatprep.subr.bf16.mxu1 %v6645_v38 }
0x20b9   : > { %6024 = vmatpush3.bf16.msra.mxu0 %v6646_v44  ;;  %6046 = vmatpush3.bf16.msra.mxu1 %v6647_v35 }
0x20ba   : > { %6025 = vmatprep.subr.bf16.mxu0 %v6648_v45  ;;  %6047 = vmatprep.subr.bf16.mxu1 %v6649_v51 }
0x20bd   : > { %6026 = vmatpush3.bf16.msra.mxu0 %v6650_v56  ;;  %6048 = vmatpush3.bf16.msra.mxu1 %v6651_v0 }
0x2173   : > { %v4698_v19 = vpop.f32.mrb[88].mxu0  ;;  %v4741_v42 = vpop.f32.mrb[104].mxu1 }
0x2174   : > { %v7934_v3 = vadd.f32 %v4698_v19, %v4487_v31  ;;  %v7936_v5 = vadd.f32 %v4741_v42, %v4495_v41  ;;  %v4700_v6 = vpop.f32.mrb[89].mxu0  ;;  %v4743_v7 = vpop.f32.mrb[105].mxu1 }
0x2175   : > { %v7938_v8 = vadd.f32 %v4700_v6, %v4491_v13  ;;  %v7940_v10 = vadd.f32 %v4743_v7, %v4499_v2  ;;  %v4702_v48 = vpop.f32.mrb[90].mxu0  ;;  %v4745_v36 = vpop.f32.mrb[106].mxu1 }
0x2176   : > { %v4758_v57 = vmul.f32 0.044715, %v7934_v3  ;;  %v4760_v49 = vmul.f32 0.044715, %v7936_v5  ;;  %v4703_v54 = vadd.f32 %v4702_v48, %v4487_v31  ;;  %v4746_v24 = vadd.f32 %v4745_v36, %v4495_v41  ;;  %v4704_v9 = vpop.f32.mrb[91].mxu0  ;;  %v4747_v4 = vpop.f32.mrb[107].mxu1 }
0x2177   : > { %v4759_v11 = vmul.f32 0.044715, %v7938_v8  ;;  %v4761_v15 = vmul.f32 0.044715, %v7940_v10  ;;  %v7946_v52 = vadd.f32 %v4704_v9, %v4491_v13  ;;  %v7948_v12 = vadd.f32 %v4747_v4, %v4499_v2 }
0x2178   : > { %v4766_v16 = vmul.f32 %v4758_v57, %v7934_v3  ;;  %v4768_v32 = vmul.f32 %v4760_v49, %v7936_v5  ;;  %v4762_v37 = vmul.f32 0.044715, %v4703_v54  ;;  %v4764_v40 = vmul.f32 0.044715, %v4746_v24 }
0x2179   : > { %v4767_v25 = vmul.f32 %v4759_v11, %v7938_v8  ;;  %v4769_v61 = vmul.f32 %v4761_v15, %v7940_v10  ;;  %v4763_v18 = vmul.f32 0.044715, %v7946_v52  ;;  %v4765_v26 = vmul.f32 0.044715, %v7948_v12 }
0x217a   : > { %v4774_v14 = vmul.f32 %v4766_v16, %v7934_v3  ;;  %v4776_v27 = vmul.f32 %v4768_v32, %v7936_v5  ;;  %v4770_v28 = vmul.f32 %v4762_v37, %v4703_v54  ;;  %v4772_v29 = vmul.f32 %v4764_v40, %v4746_v24 }
0x217b   : > { %v4775_v33 = vmul.f32 %v4767_v25, %v7938_v8  ;;  %v4777_v17 = vmul.f32 %v4769_v61, %v7940_v10  ;;  %v4771_v34 = vmul.f32 %v4763_v18, %v7946_v52  ;;  %v4773_v46 = vmul.f32 %v4765_v26, %v7948_v12 }
0x217c   : > { %v4782_v47 = vadd.f32 %v4774_v14, %v7934_v3  ;;  %v4784_v39 = vadd.f32 %v4776_v27, %v7936_v5  ;;  %v4778_v43 = vmul.f32 %v4770_v28, %v4703_v54  ;;  %v4780_v21 = vmul.f32 %v4772_v29, %v4746_v24 }
0x217d   : > { %v4779_v53 = vmul.f32 %v4771_v34, %v7946_v52  ;;  %v4781_v58 = vmul.f32 %v4773_v46, %v7948_v12  ;;  %v4783_v23 = vadd.f32 %v4775_v33, %v7938_v8  ;;  %v4785_v45 = vadd.f32 %v4777_v17, %v7940_v10 }
0x217e   : > { %v4790_v62 = vmul.f32 0.7978846, %v4782_v47  ;;  %v4792_v60 = vmul.f32 0.7978846, %v4784_v39  ;;  %v4786_v50 = vadd.f32 %v4778_v43, %v4703_v54  ;;  %v4788_v63 = vadd.f32 %v4780_v21, %v4746_v24 }
0x217f   : > { %v4787_v38 = vadd.f32 %v4779_v53, %v7946_v52  ;;  %v4791_v51 = vmul.f32 0.7978846, %v4783_v23  ;;  %v4789_v0 = vadd.f32 %v4781_v58, %v7948_v12  ;;  %v4793_v1 = vmul.f32 0.7978846, %v4785_v45 }
0x2180   : > { %6772 = vtanh.f32 %v4790_v62  ;;  %v4794_v44 = vmul.f32 0.7978846, %v4786_v50  ;;  %v4796_v35 = vmul.f32 0.7978846, %v4788_v63  ;;  %v4750_v7 = vmul.f32 0.5, %v7934_v3 }
0x2181   : > { %6774 = vtanh.f32 %v4792_v60  ;;  %v4795_v56 = vmul.f32 0.7978846, %v4787_v38  ;;  %v4797_v31 = vmul.f32 0.7978846, %v4789_v0  ;;  %v4754_v48 = vmul.f32 0.5, %v4703_v54 }
0x2182   : > { %6776 = vtanh.f32 %v4794_v44  ;;  %v4752_v49 = vmul.f32 0.5, %v7936_v5  ;;  %v4756_v9 = vmul.f32 0.5, %v4746_v24  ;;  %v4751_v15 = vmul.f32 0.5, %v7938_v8 }
0x2183   : > { %6778 = vtanh.f32 %v4796_v35  ;;  %v4755_v25 = vmul.f32 0.5, %v7946_v52  ;;  %v4753_v54 = vmul.f32 0.5, %v7940_v10  ;;  %v4757_v14 = vmul.f32 0.5, %v7948_v12  ;;  %v5802_v10 = vld [vmem:[%s8019_s14 + $0x1] ss:$0 sm:$0xff] }
0x2184   : > { %6780 = vtanh.f32 %v4791_v51 }
0x2185   : > { %6782 = vtanh.f32 %v4795_v56 }
0x2186   : > { %6784 = vtanh.f32 %v4793_v1 }
0x2187   : > { %6786 = vtanh.f32 %v4797_v31 }
0x218a   : > { %v6773_v41 = vpop.eup %6772 }
0x218b   : > { %v6775_v13 = vpop.eup %6774  ;;  %v4806_v2 = vadd.f32 1.0, %v6773_v41 }
0x218c   : > { %v6777_v19 = vpop.eup %6776  ;;  %v4808_v42 = vadd.f32 1.0, %v6775_v13 }
0x218d   : > { %v6779_v6 = vpop.eup %6778  ;;  %v4810_v36 = vadd.f32 1.0, %v6777_v19  ;;  %v4814_v32 = vmul.f32 %v4806_v2, %v4750_v7  ;;  %v5840_v19 = vld [vmem:[%s695_s29 + $0x1] ss:$0 sm:$0xff]  ;;  %v6655_v7 = vld [vmem:[#allocation7 + $0x10] ss:$8 sps:$4 sm:$0xff]  }
0x218e   : > { %v6781_v57 = vpop.eup %6780  ;;  %v4812_v4 = vadd.f32 1.0, %v6779_v6  ;;  %v4816_v18 = vmul.f32 %v4808_v42, %v4752_v49  ;;  %v6652_v42 = vld [vmem:[#allocation7] ss:$8 sps:$4 sm:$0xff]   ;;  %v6657_v6 = vld [vmem:[#allocation7 + $0x14] ss:$8 sps:$4 sm:$0xff]  }
0x218f   : > { %v6783_v11 = vpop.eup %6782  ;;  %v4807_v16 = vadd.f32 1.0, %v6781_v57  ;;  %v4818_v37 = vmul.f32 %v4810_v36, %v4754_v48  ;;  %v6660_v48 = vld [vmem:[#allocation7 + $0x24] ss:$8 sps:$4 sm:$0xff]   ;;  %v6658_v36 = vld [vmem:[#allocation7 + $0x20] ss:$8 sps:$4 sm:$0xff]  }
0x2190   : > { %v6785_v40 = vpop.eup %6784  ;;  %v4811_v61 = vadd.f32 1.0, %v6783_v11  ;;  %v4820_v26 = vmul.f32 %v4812_v4, %v4756_v9  ;;  %v6663_v57 = vld [vmem:[#allocation7 + $0x34] ss:$8 sps:$4 sm:$0xff]   ;;  %v6661_v49 = vld [vmem:[#allocation7 + $0x30] ss:$8 sps:$4 sm:$0xff]  }
0x2191   : > { %v6787_v3 = vpop.eup %6786  ;;  %v4809_v5 = vadd.f32 1.0, %v6785_v40  ;;  %v4822_v24 = vpack.c.bf16 %v4818_v37, %v4814_v32  ;;  %v4815_v27 = vmul.f32 %v4807_v16, %v4751_v15  ;;  %v6666_v9 = vld [vmem:[#allocation7 + $0x44] ss:$8 sps:$4 sm:$0xff]   ;;  %v6664_v4 = vld [vmem:[#allocation7 + $0x40] ss:$8 sps:$4 sm:$0xff]  }
0x2192   : > { %v4819_v28 = vmul.f32 %v4811_v61, %v4755_v25  ;;  %v4813_v29 = vadd.f32 1.0, %v6787_v3  ;;  %v4824_v8 = vpack.c.bf16 %v4820_v26, %v4816_v18  ;;  %v6669_v11 = vld [vmem:[#allocation7 + $0x54] ss:$8 sps:$4 sm:$0xff]   ;;  %v6667_v15 = vld [vmem:[#allocation7 + $0x50] ss:$8 sps:$4 sm:$0xff]  }
0x2193   : > { %v4817_v17 = vmul.f32 %v4809_v5, %v4753_v54  ;;  %v6672_v16 = vld [vmem:[#allocation7 + $0x64] ss:$8 sps:$4 sm:$0xff]   ;;  %v6670_v32 = vld [vmem:[#allocation7 + $0x60] ss:$8 sps:$4 sm:$0xff]   ;;  %v6675_v37 = vld [vmem:[#allocation7 + $0x74] ss:$8 sps:$4 sm:$0xff]  }
0x2194   : > { %v4823_v33 = vpack.c.bf16 %v4819_v28, %v4815_v27  ;;  %v4821_v34 = vmul.f32 %v4813_v29, %v4757_v14  ;;  %v6673_v40 = vld [vmem:[#allocation7 + $0x70] ss:$8 sps:$4 sm:$0xff]   ;;  %v5837_v5 = vld [vmem:[%s8020_s15 + $0x1] ss:$0 sm:$0xff] }
0x2195   : > { %v5838_v28 = vld [vmem:[%s8052_s22 + $0x1] ss:$0 sm:$0xff] }
0x2196   : > { %5123 = vmatprep.mubr.bf16.mxu0 %v4823_v33  ;;  %v4825_v46 = vpack.c.bf16 %v4821_v34, %v4817_v17 }
0x2197   : > { %5124 = vmatmul.mubr.bf16.vlgmr.msra.gmra.mrb[92].mxu0 %v4822_v24 }
0x2198   : > { %5164 = vmatprep.mubr.bf16.mxu1 %v4825_v46  ;;  %5397 = vmatprep.mubr.bf16.mxu0 %v6937_v30 }
0x2199   : > { %5165 = vmatmul.mubr.bf16.vlgmr.msra.gmra.mrb[108].mxu1 %v4824_v8 }
0x226a   : > { %v6027_v52 = vpop.f32.mrb[92].mxu0 }
0x226b   : > { %v6028_v12 = vpop.f32.mrb[93].mxu0 }
0x226c   : > { %v6049_v47 = vpop.f32.mrb[108].mxu1  ;;  %v6029_v39 = vadd.f32 %v6028_v12, %v6027_v52  ;;  %v6030_v43 = vpop.f32.mrb[94].mxu0 }
0x226d   : > { %v6050_v21 = vpop.f32.mrb[109].mxu1  ;;  %v6031_v53 = vpop.f32.mrb[95].mxu0 }
0x226e   : > { %v5126_v58 = vadd.f32 %v6029_v39, %v5802_v10  ;;  %v6051_v62 = vadd.f32 %v6050_v21, %v6049_v47  ;;  %v6052_v60 = vpop.f32.mrb[110].mxu1  ;;  %v6032_v50 = vadd.f32 %v6031_v53, %v6030_v43 }
0x226f   : > { %v6053_v63 = vpop.f32.mrb[111].mxu1 }
0x2270   : > { %v5167_v23 = vadd.f32 %v6051_v62, %v5126_v58  ;;  %v5129_v38 = vadd.f32 %v6032_v50, %v5802_v10  ;;  %v6054_v30 = vadd.f32 %v6053_v63, %v6052_v60 }
0x2272   : > { %v5170_v44 = vadd.f32 %v6054_v30, %v5129_v38  ;;  %v5173_v35 = vadd.f32 %v5167_v23, %v7920_v20  ;;  %v5839_v20 = vld [vmem:[%s695_s29] ss:$0 sm:$0xff] }
0x2274   : > { %5179 = vadd.xlane.f32.xlu0 %v5173_v35  ;;  %v5174_v45 = vadd.f32 %v5170_v44, %v7922_v22  ;;  %v6654_v22 = vld [vmem:[#allocation7 + $0x4] ss:$8 sps:$4 sm:$0xff]  }
0x2275   : > { %5365 = vmatprep.subr.bf16.mxu0 %v6654_v22 }
0x2276   : > { %5181 = vadd.xlane.f32.xlu1 %v5174_v45  ;;  %5366 = vmatpush1.bf16.msra.mxu0 %v6652_v42 }
0x2277   : > { %5367 = vmatprep.subr.bf16.mxu0 %v6657_v6 }
0x227a   : > { %5368 = vmatpush1.bf16.msra.mxu0 %v6655_v7 }
0x227b   : > { %5369 = vmatprep.subr.bf16.mxu0 %v6660_v48 }
0x227e   : > { %5370 = vmatpush1.bf16.msra.mxu0 %v6658_v36 }
0x227f   : > { %5371 = vmatprep.subr.bf16.mxu0 %v6663_v57 }
0x2282   : > { %5372 = vmatpush1.bf16.msra.mxu0 %v6661_v49 }
0x2283   : > { %5373 = vmatprep.subr.bf16.mxu0 %v6666_v9 }
0x2286   : > { %5374 = vmatpush1.bf16.msra.mxu0 %v6664_v4 }
0x2287   : > { %5375 = vmatprep.subr.bf16.mxu0 %v6669_v11 }
0x228a   : > { %5376 = vmatpush1.bf16.msra.mxu0 %v6667_v15 }
0x228b   : > { %5377 = vmatprep.subr.bf16.mxu0 %v6672_v16 }
0x228e   : > { %5378 = vmatpush1.bf16.msra.mxu0 %v6670_v32 }
0x228f   : > { %5379 = vmatprep.subr.bf16.mxu0 %v6675_v37 }
0x2292   : > { %5380 = vmatpush1.bf16.msra.mxu0 %v6673_v40 }
0x2301   : > { %v5180_v51 = vpop.xlane.xlu0 %5179 }
0x2302   : > { %v5183_v56 = vmul.f32 0.0078125, %v5180_v51 }
0x2303   : > { %v5182_v0 = vpop.xlane.xlu1 %5181 }
0x2304   : > { %v5185_v1 = vsub.f32 %v5173_v35, %v5183_v56  ;;  %v5184_v31 = vmul.f32 0.0078125, %v5182_v0  ;;  %v5265_v0 = vld [vmem:[%s8054_s16] sm:$0x3] }
0x2306   : > { %v5186_v41 = vsub.f32 %v5174_v45, %v5184_v31  ;;  %v5187_v13 = vmul.f32 %v5185_v1, %v5185_v1  ;;  %v5274_v31 = vrot.slane %v5265_v0, %v7295_v55 }
0x2308   : > { %5189 = vadd.xlane.f32.xlu0 %v5187_v13  ;;  %v5188_v2 = vmul.f32 %v5186_v41, %v5186_v41 }
0x230a   : > { %5191 = vadd.xlane.f32.xlu1 %v5188_v2 }
0x231b   : > { %5231 = vbcast.lane.b32.xlu1 %v5840_v19, 256 }
0x231e   : > { %5224 = vbcast.lane.b32.xlu0 %v5839_v20, 256 }
0x2395   : > { %v5190_v25 = vpop.xlane.xlu0 %5189 }
0x2396   : > { %v5193_v61 = vmul.f32 0.0078125, %v5190_v25 }
0x2397   : > { %v5192_v18 = vpop.xlane.xlu1 %5191 }
0x2398   : > { %v5195_v26 = vadd.f32 1e-12, %v5193_v61  ;;  %v5194_v3 = vmul.f32 0.0078125, %v5192_v18 }
0x2399   : > { %v5225_v33 = vpop.permute.xlu0 %5224 }
0x239a   : > { %6788 = vrsqrt.f32 %v5195_v26  ;;  %v5196_v54 = vadd.f32 1e-12, %v5194_v3 }
0x239b   : > { %v5232_v46 = vpop.permute.xlu1 %5231 }
0x239c   : > { %6790 = vrsqrt.f32 %v5196_v54 }
0x23a4   : > { %v6789_v14 = vpop.eup %6788 }
0x23a5   : > { %v5199_v24 = vmul.f32 %v6789_v14, %v5185_v1  ;;  %v5270_v1 = vrot.slane %v5265_v0, %v7305_v59 }
0x23a6   : > { %v6791_v27 = vpop.eup %6790 }
0x23a7   : > { %v5207_v29 = vmul.f32 %v5837_v5, %v5199_v24  ;;  %v5200_v8 = vmul.f32 %v6791_v27, %v5186_v41 }
0x23a9   : > { %v5215_v17 = vadd.f32 %v5838_v28, %v5207_v29  ;;  %v5208_v34 = vmul.f32 %v5837_v5, %v5200_v8 }
0x23ab   : > { %v5233_v52 = vmul.f32 %v5225_v33, %v5215_v17  ;;  %v5216_v10 = vadd.f32 %v5838_v28, %v5208_v34 }
0x23ad   : > { %v5235_v12 = vrot.slane %v5233_v52, 4  ;;  %v5234_v47 = vmul.f32 %v5232_v46, %v5216_v10 }
0x23af   : > { %v5236_v39 = vadd.f32 %v5235_v12, %v5233_v52  ;;  %v5241_v43 = vrot.slane %v5234_v47, 4 }
0x23b1   : > { %v5237_v21 = vrot.slane %v5236_v39, 2  ;;  %v5242_v53 = vadd.f32 %v5241_v43, %v5234_v47 }
0x23b3   : > { %v5238_v58 = vadd.f32 %v5237_v21, %v5236_v39  ;;  %v5243_v62 = vrot.slane %v5242_v53, 2 }
0x23b5   : > { %v5239_v60 = vrot.slane %v5238_v58, 1  ;;  %v5244_v50 = vadd.f32 %v5243_v62, %v5242_v53 }
0x23b7   : > { %v5240_v63 = vadd.f32 %v5239_v60, %v5238_v58  ;;  %v5245_v23 = vrot.slane %v5244_v50, 1 }
0x23b9   : > { %v5247_v38 = vpack.c.bf16 %v5240_v63, %v5240_v63  ;;  %v5246_v30 = vadd.f32 %v5245_v23, %v5244_v50 }
0x23bb   : > { %v5248_v44 = vpack.c.bf16 %v5246_v30, %v5246_v30  ;;  %v5279_v35 = vunpack.c.l.b16 %v5247_v38 }
0x23bd   : > { %v5280_v45 = vunpack.c.l.b16 %v5248_v44 }
0x23bf   : > { %v5282_v51 = vsel %vm5281_vm4, %v5280_v45, %v5279_v35 }
0x23c0   : > { %v5283_v56 = vpack.c.b16 %v5282_v51, %v5282_v51 }
0x23c2   : > { %5398 = vmatmul.mubr.bf16.vlgmr.msra.gmra.mrb[96].mxu0 %v5283_v56 }
0x2495   : > { %v5399_v41 = vpop.f32.mrb[96].mxu0 }
0x2496   : > { %v5400_v13 = vadd.f32 %v5399_v41, %v5270_v1  ;;  %v5401_v2 = vpop.f32.mrb[97].mxu0 }
0x2497   : > { %v5402_v19 = vadd.f32 %v5401_v2, %v5274_v31  ;;  %v5403_v20 = vpop.f32.mrb[98].mxu0 }
0x2498   : > { %v5404_v42 = vpop.f32.mrb[99].mxu0 }
0x2499   : > { %v5408_v22 = vcombine.low %v5400_v13, %v5402_v19 }
0x249b   : > { %5857 = vst.sshfl [vmem:[%s701_s19] sm:$0x33 pattern:$0x76325410] %v5408_v22 }
0x249c PF: > { %s8056_s0 = sld [smem:[#allocation12_spill]] }
0x24a2   : > { %s32_s0 = sadd.s32 1, %s8056_s0  }
0x24a3   : > { %p29_p4 = scmp.ge.s32.totalorder %s32_s0, 4  }
0x24a5   :  { %31 = sbr.rel (!%p29_p4) target bundleno = 12 (0xc), region = 161 }
0x24ac   :  { %5439 = vsyncpa [#allocation3], 1 }
0x24ad   :  { %5441 = vsyncpa [#allocation3 + $0x1], 1 }
0x24ae   :  { %5442 = vsyncpa [#allocation5], 1 }
0x24af   :  { %5443 = vsyncpa [#allocation8], 1 }

</bundles_post_ra>
